<compile_context>
chip_gen: v7x
topology: tpu7x:2x2x1
jax: 0.10.0
libtpu: 0.0.40
codegen_flags: <defaults>
</compile_context>

<pallas_src>
import functools
import numpy as np
import jax
import jax.numpy as jnp
from jax.experimental import pallas as pl
from jax.experimental.pallas import tpu as pltpu

# ---------------- synthetic "opt" config (small shapes) ----------------
L_3D   = 4                        # opt.arch.posenc.L_3D
L_VIEW = 2                        # opt.arch.posenc.L_view
IN3D   = 3 + 6 * L_3D             # 27
INVIEW = 3 + 6 * L_VIEW           # 15
HID    = 32                       # layers_feat / layers_rgb hidden width
ENC    = 6 + 6 * L_3D + 6 * L_VIEW  # 42: [p3 | ru | sin_p | sin_r | cos_p | cos_r]
# layers_feat = [None, 32, 32, 32, 32] -> 4 linear layers, skip at layer 2
# layers_rgb  = [None, 32, 3]          -> 2 linear layers
C2F      = (0.1, 0.5)             # opt.c2f
PROGRESS = 0.3                    # self.progress (eval-time scalar, baked at trace)
# density_activ = softplus ; view_dep = True ; mode = eval (no density noise)

MXU_DTYPE = jnp.bfloat16          # matmul operand dtype (f32 accumulation)
SUB = 128                         # compute sub-block rows (fits the vreg file)


def _act_dtype():
    """bf16 elementwise on v6e/v7x (bf16 VPU); f32 on v5e (no bf16 VPU/EUP)."""
    try:
        kind = jax.devices()[0].device_kind.lower()
    except Exception:
        kind = ""
    return jnp.float32 if "v5" in kind else jnp.bfloat16


ACT_DTYPE = _act_dtype()


def _c2f_weights():
    """Coarse-to-fine per-frequency weights (static host-side scalar math)."""
    start, end = C2F
    alpha = (PROGRESS - start) / (end - start) * L_3D
    k = np.arange(L_3D, dtype=np.float64)
    return ((1.0 - np.cos(np.clip(alpha - k, 0.0, 1.0) * np.pi)) / 2.0)


# ------------------------------ kernel ------------------------------
def nerf_kernel(inp_ref,
                w0_ref, b0_ref, w1_ref, b1_ref, w2a_ref, b2_ref,
                w3_ref, b3_ref,
                wr0f_ref, wr0vp_ref, br0_ref, wr1_ref, br1_ref,
                out_ref, *, n_sub, act_dtype):
    fp = [float((2.0 ** l) * np.pi) for l in range(L_3D)]
    fr = [float((2.0 ** l) * np.pi) for l in range(L_VIEW)]

    def mm(a, w_ref):
        # bf16 MXU operands, f32 accumulation.
        return jnp.dot(a.astype(MXU_DTYPE), w_ref[...],
                       preferred_element_type=jnp.float32)

    def body(sub, carry):
        r0 = pl.multiple_of(sub * SUB, SUB)
        blk = inp_ref[pl.ds(r0, SUB), :]            # (SUB, 8) f32: [p3 | ru | pad]
        pr = blk[:, 0:6]
        p3, ru = pr[:, 0:3], pr[:, 3:6]

        # --- lane-dense positional encoding: one sin + one cos pass ---
        ang = jnp.concatenate([p3 * f for f in fp] + [ru * f for f in fr],
                              axis=-1)              # (SUB, 18)
        enc = jnp.concatenate([pr, jnp.sin(ang), jnp.cos(ang)], axis=-1)  # (SUB, 42)
        enc = enc.astype(MXU_DTYPE)                 # single bf16 cast, reused twice

        # ---- mlp_feat ----
        # layer 0 + skip contribution in one MXU push (merged W0 || W2b,
        # zero rows for the ray columns, c2f folded into the weight rows).
        h64 = mm(enc, w0_ref)                       # (SUB, 64) f32
        f = jnp.maximum(h64[:, :HID].astype(act_dtype) + b0_ref[...], 0)
        skip = h64[:, HID:].astype(act_dtype)       # enc @ W2b (no bias / relu)
        # layer 1
        f = jnp.maximum(mm(f, w1_ref).astype(act_dtype) + b1_ref[...], 0)
        # layer 2 (skip): relu(f @ W2a + enc @ W2b + b2)
        f = jnp.maximum(mm(f, w2a_ref).astype(act_dtype) + skip + b2_ref[...], 0)
        # layer 3 (last feat layer, out = HID + 1; density is the LAST column
        # so the 32-wide feature block stays lane-aligned).
        o = mm(f, w3_ref) + b3_ref[...]             # (SUB, 33) f32
        density = jax.nn.softplus(o[:, HID:HID + 1])          # f32 (SUB, 1)
        f = jnp.maximum(o[:, :HID].astype(act_dtype), 0)

        # ---- mlp_rgb (view dependent): concat([feat, ray_enc, points_3D]) ----
        # two MXU pushes accumulated back-to-back (MRB-friendly on v7x).
        h = mm(f, wr0f_ref) + mm(enc, wr0vp_ref)
        h = jnp.maximum(h.astype(act_dtype) + br0_ref[...], 0)
        rgb = jax.nn.sigmoid(mm(h, wr1_ref) + br1_ref[...])   # f32 (SUB, 3)

        # direct stores — no output lane-concat
        out_ref[pl.ds(r0, SUB), 0:3] = rgb
        out_ref[pl.ds(r0, SUB), 3:4] = density
        return carry

    jax.lax.fori_loop(0, n_sub, body, 0, unroll=True)


# ------------------------------ init ------------------------------
def _xavier(key, shape, fan_in, fan_out, gain=1.0):
    bound = gain * float(np.sqrt(6.0 / (fan_in + fan_out)))
    return jax.random.uniform(key, shape, jnp.float32, -bound, bound)


def init_params(key, act_dtype=ACT_DTYPE):
    """tensorflow_init_weights-style init; weights stored (in, out), rows laid
    out to match the kernel's [p3|ru|sin_p|sin_r|cos_p|cos_r] encoding. c2f is
    folded (in f32) into the posenc rows of W0/W2b before the bf16 cast."""
    ks = jax.random.split(key, 9)
    rg = float(np.sqrt(2.0))                      # relu gain
    c2f = _c2f_weights()
    # scale for the 27 "point" rows in order [p3(3), sin_p(12), cos_p(12)]
    scale27 = np.concatenate([np.ones(3), np.repeat(c2f, 3),
                              np.repeat(c2f, 3)]).astype(np.float32)

    def place_pts(w27):                           # (27, n) -> (42, n)
        n = w27.shape[1]
        full = jnp.zeros((ENC, n), jnp.float32)
        full = full.at[0:3].set(w27[0:3])         # p3
        full = full.at[6:18].set(w27[3:15])       # sin_p
        full = full.at[24:36].set(w27[15:27])     # cos_p
        return full                               # ray rows stay zero

    # layer 0 (torch fan 27->32) and skip half W2b (torch layer-2 fan 59->32)
    w0_27  = _xavier(ks[0], (IN3D, HID), IN3D, HID, rg) * scale27[:, None]
    w2b_27 = _xavier(ks[1], (IN3D, HID), HID + IN3D, HID, rg) * scale27[:, None]
    W0m = jnp.concatenate([place_pts(w0_27), place_pts(w2b_27)],
                          axis=1).astype(MXU_DTYPE)          # (42, 64)
    b0 = jnp.zeros((1, HID), act_dtype)

    W1 = _xavier(ks[2], (HID, HID), HID, HID, rg).astype(MXU_DTYPE)
    b1 = jnp.zeros((1, HID), act_dtype)

    W2a = _xavier(ks[3], (HID, HID), HID + IN3D, HID, rg).astype(MXU_DTYPE)
    b2 = jnp.zeros((1, HID), act_dtype)

    # last feat layer 32 -> 33 ('first' init): density column LAST, gain 1;
    # feature columns relu gain.
    W3 = jnp.concatenate([_xavier(ks[4], (HID, HID), HID, HID, rg),
                          _xavier(ks[5], (HID, 1), HID, 1, 1.0)],
                         axis=1).astype(MXU_DTYPE)           # (32, 33)
    b3 = jnp.zeros((1, HID + 1), jnp.float32)

    # rgb layer 0 (torch fan 50->32), split into feat part and [ru|sin_r|cos_r|p3]
    fan_rgb0 = HID + INVIEW + 3
    Wr0f = _xavier(ks[6], (HID, HID), fan_rgb0, HID, rg).astype(MXU_DTYPE)
    wvp = _xavier(ks[7], (INVIEW + 3, HID), fan_rgb0, HID, rg)  # [ru, sin_r, cos_r, p3]
    wvp_full = jnp.zeros((ENC, HID), jnp.float32)
    wvp_full = wvp_full.at[3:6].set(wvp[0:3])      # ru
    wvp_full = wvp_full.at[18:24].set(wvp[3:9])    # sin_r
    wvp_full = wvp_full.at[36:42].set(wvp[9:15])   # cos_r
    wvp_full = wvp_full.at[0:3].set(wvp[15:18])    # raw points_3D
    Wr0vp = wvp_full.astype(MXU_DTYPE)             # (42, 32)
    br0 = jnp.zeros((1, HID), act_dtype)

    # rgb last layer ('all' init, gain 1)
    Wr1 = _xavier(ks[8], (HID, 3), HID, 3, 1.0).astype(MXU_DTYPE)
    br1 = jnp.zeros((1, 3), jnp.float32)

    return [W0m, b0, W1, b1, W2a, b2, W3, b3, Wr0f, Wr0vp, br0, Wr1, br1]


# ------------------------------ glue ------------------------------
def _pick_tile(m):
    """Largest DMA tile in {128, 256, 512} keeping >= 4 grid steps when
    possible (>= 2 per v7x TensorCore); compute is sub-blocked at SUB rows."""
    tile = 512
    while tile > SUB and m < 4 * tile:
        tile //= 2
    return tile


def nerf_forward(points_3D, ray_unit, params):
    """points_3D, ray_unit: (B, N, 3) f32 -> (rgb (B,N,3), density (B,N))."""
    B, N, _ = points_3D.shape
    M = B * N
    tile = _pick_tile(M)
    n_steps = -(-M // tile)
    if n_steps > 1 and n_steps % 2 == 1:
        n_steps += 1                      # even grid -> balanced v7x TensorCores
    m_pad = n_steps * tile

    # single packed (M, 8) input: cols 0-2 points, 3-5 rays, 6-7 pad
    inp = jnp.zeros((m_pad, 8), jnp.float32)
    inp = inp.at[:M, 0:3].set(points_3D.reshape(M, 3).astype(jnp.float32))
    inp = inp.at[:M, 3:6].set(ray_unit.reshape(M, 3).astype(jnp.float32))

    row_in  = pl.BlockSpec((tile, 8), lambda i: (i, 0))
    row_out = pl.BlockSpec((tile, 4), lambda i: (i, 0))
    full = lambda p: pl.BlockSpec(p.shape, lambda i: (0,) * p.ndim)

    flops = 2 * (ENC * 2 * HID + 2 * HID * HID + HID * (HID + 1)
                 + HID * HID + ENC * HID + HID * 3) * m_pad
    trans = (2 * (3 * L_3D + 3 * L_VIEW) + 6) * m_pad
    bytes_acc = m_pad * (8 + 4) * 4 + sum(
        int(np.prod(p.shape)) * p.dtype.itemsize for p in params)

    out = pl.pallas_call(
        functools.partial(nerf_kernel, n_sub=tile // SUB, act_dtype=ACT_DTYPE),
        out_shape=jax.ShapeDtypeStruct((m_pad, 4), jnp.float32),
        grid=(n_steps,),
        in_specs=[row_in] + [full(p) for p in params],
        out_specs=row_out,
        compiler_params=pltpu.CompilerParams(
            dimension_semantics=("parallel",)),
        cost_estimate=pl.CostEstimate(flops=flops, transcendentals=trans,
                                      bytes_accessed=bytes_acc),
    )(inp, *params)

    out = out[:M]
    return out[:, 0:3].reshape(B, N, 3), out[:, 3].reshape(B, N)


# TODO(synk): density_noise_reg (train-mode randn on density) is skipped; this
# implements the eval-mode forward path only, with C2F/PROGRESS baked at trace.

if __name__ == "__main__":
    key = jax.random.PRNGKey(0)
    kp, k1, k2 = jax.random.split(key, 3)
    params = init_params(kp)

    B, N = 2, 128
    points_3D = jax.random.uniform(k1, (B, N, 3), jnp.float32, -1.0, 1.0)
    ray = jax.random.normal(k2, (B, N, 3), jnp.float32)
    ray_unit = ray / jnp.linalg.norm(ray, axis=-1, keepdims=True)

    rgb, density = jax.jit(nerf_forward)(points_3D, ray_unit, params)
    jax.block_until_ready((rgb, density))

    assert rgb.shape == (B, N, 3) and density.shape == (B, N)
    assert bool(jnp.all(jnp.isfinite(rgb))) and bool(jnp.all(jnp.isfinite(density)))
    assert bool(jnp.all((rgb >= 0.0) & (rgb <= 1.0)))
    print("KERNEL_OK")
</pallas_src>

<mosaic_0001>
module attributes {stable_mosaic.version = 11 : i64} {
  func.func @nerf_kernel(%arg0: i32, %arg1: memref<128x8xf32, #tpu.memory_space<vmem>>, %arg2: memref<42x64xbf16, #tpu.memory_space<vmem>>, %arg3: memref<1x32xbf16, #tpu.memory_space<vmem>>, %arg4: memref<32x32xbf16, #tpu.memory_space<vmem>>, %arg5: memref<1x32xbf16, #tpu.memory_space<vmem>>, %arg6: memref<32x32xbf16, #tpu.memory_space<vmem>>, %arg7: memref<1x32xbf16, #tpu.memory_space<vmem>>, %arg8: memref<32x33xbf16, #tpu.memory_space<vmem>>, %arg9: memref<1x33xf32, #tpu.memory_space<vmem>>, %arg10: memref<32x32xbf16, #tpu.memory_space<vmem>>, %arg11: memref<42x32xbf16, #tpu.memory_space<vmem>>, %arg12: memref<1x32xbf16, #tpu.memory_space<vmem>>, %arg13: memref<32x3xbf16, #tpu.memory_space<vmem>>, %arg14: memref<1x3xf32, #tpu.memory_space<vmem>>, %arg15: memref<128x4xf32, #tpu.memory_space<vmem>>) attributes {dimension_semantics = [#tpu.dimension_semantics<parallel>], iteration_bounds = array<i64: 2>, scalar_prefetch = 0 : i64, scratch_operands = 0 : i64, tpu.core_type = #tpu.core_type<tc>, window_params = [{transform_indices = @transform_0, window_bounds = array<i64: 128, 8>}, {pipeline_mode = #tpu.pipeline_mode<synchronous>, transform_indices = @transform_1, window_bounds = array<i64: 42, 64>}, {pipeline_mode = #tpu.pipeline_mode<synchronous>, transform_indices = @transform_2, window_bounds = array<i64: 1, 32>}, {pipeline_mode = #tpu.pipeline_mode<synchronous>, transform_indices = @transform_3, window_bounds = array<i64: 32, 32>}, {pipeline_mode = #tpu.pipeline_mode<synchronous>, transform_indices = @transform_4, window_bounds = array<i64: 1, 32>}, {pipeline_mode = #tpu.pipeline_mode<synchronous>, transform_indices = @transform_5, window_bounds = array<i64: 32, 32>}, {pipeline_mode = #tpu.pipeline_mode<synchronous>, transform_indices = @transform_6, window_bounds = array<i64: 1, 32>}, {pipeline_mode = #tpu.pipeline_mode<synchronous>, transform_indices = @transform_7, window_bounds = array<i64: 32, 33>}, {pipeline_mode = #tpu.pipeline_mode<synchronous>, transform_indices = @transform_8, window_bounds = array<i64: 1, 33>}, {pipeline_mode = #tpu.pipeline_mode<synchronous>, transform_indices = @transform_9, window_bounds = array<i64: 32, 32>}, {pipeline_mode = #tpu.pipeline_mode<synchronous>, transform_indices = @transform_10, window_bounds = array<i64: 42, 32>}, {pipeline_mode = #tpu.pipeline_mode<synchronous>, transform_indices = @transform_11, window_bounds = array<i64: 1, 32>}, {pipeline_mode = #tpu.pipeline_mode<synchronous>, transform_indices = @transform_12, window_bounds = array<i64: 32, 3>}, {pipeline_mode = #tpu.pipeline_mode<synchronous>, transform_indices = @transform_13, window_bounds = array<i64: 1, 3>}, {transform_indices = @transform_14, window_bounds = array<i64: 128, 4>}]} {
    %c0_i32 = arith.constant 0 : i32
    %c128_i32 = arith.constant 128 : i32
    %0 = arith.muli %c0_i32, %c128_i32 : i32
    %1 = tpu.assume_multiple %0, 128 : i32
    %2 = arith.index_cast %1 : i32 to index
    %c0 = arith.constant 0 : index
    %3 = vector.load %arg1[%2, %c0] : memref<128x8xf32, #tpu.memory_space<vmem>>, vector<128x8xf32>
    %4 = vector.extract_strided_slice %3 {offsets = [0, 0], sizes = [128, 6], strides = [1, 1]} : vector<128x8xf32> to vector<128x6xf32>
    %5 = vector.extract_strided_slice %4 {offsets = [0, 0], sizes = [128, 3], strides = [1, 1]} : vector<128x6xf32> to vector<128x3xf32>
    %6 = vector.extract_strided_slice %4 {offsets = [0, 3], sizes = [128, 3], strides = [1, 1]} : vector<128x6xf32> to vector<128x3xf32>
    %cst = arith.constant 3.14159274 : f32
    %7 = vector.broadcast %cst : f32 to vector<128x3xf32>
    %8 = arith.mulf %5, %7 : vector<128x3xf32>
    %cst_0 = arith.constant 6.28318548 : f32
    %9 = vector.broadcast %cst_0 : f32 to vector<128x3xf32>
    %10 = arith.mulf %5, %9 : vector<128x3xf32>
    %cst_1 = arith.constant 12.566371 : f32
    %11 = vector.broadcast %cst_1 : f32 to vector<128x3xf32>
    %12 = arith.mulf %5, %11 : vector<128x3xf32>
    %cst_2 = arith.constant 25.1327419 : f32
    %13 = vector.broadcast %cst_2 : f32 to vector<128x3xf32>
    %14 = arith.mulf %5, %13 : vector<128x3xf32>
    %cst_3 = arith.constant 3.14159274 : f32
    %15 = vector.broadcast %cst_3 : f32 to vector<128x3xf32>
    %16 = arith.mulf %6, %15 : vector<128x3xf32>
    %cst_4 = arith.constant 6.28318548 : f32
    %17 = vector.broadcast %cst_4 : f32 to vector<128x3xf32>
    %18 = arith.mulf %6, %17 : vector<128x3xf32>
    %19 = tpu.concatenate %8, %10, %12, %14, %16, %18 in 1 : vector<128x3xf32>, vector<128x3xf32>, vector<128x3xf32>, vector<128x3xf32>, vector<128x3xf32>, vector<128x3xf32> -> vector<128x18xf32>
    %20 = math.sin %19 : vector<128x18xf32>
    %21 = math.cos %19 : vector<128x18xf32>
    %22 = tpu.concatenate %4, %20, %21 in 1 : vector<128x6xf32>, vector<128x18xf32>, vector<128x18xf32> -> vector<128x42xf32>
    %23 = arith.truncf %22 : vector<128x42xf32> to vector<128x42xbf16>
    %c0_5 = arith.constant 0 : index
    %c0_6 = arith.constant 0 : index
    %24 = vector.load %arg2[%c0_5, %c0_6] : memref<42x64xbf16, #tpu.memory_space<vmem>>, vector<42x64xbf16>
    %cst_7 = arith.constant dense<0.000000e+00> : vector<128x64xf32>
    %25 = tpu.matmul %23, %24, %cst_7 {dimension_numbers = #tpu.dot_dimension_numbers<[1], [0], [0], [1], [0, 0, 1, 1], [], []>} : vector<128x42xbf16>, vector<42x64xbf16>, vector<128x64xf32> -> vector<128x64xf32>
    %26 = vector.extract_strided_slice %25 {offsets = [0, 0], sizes = [128, 32], strides = [1, 1]} : vector<128x64xf32> to vector<128x32xf32>
    %27 = arith.truncf %26 : vector<128x32xf32> to vector<128x32xbf16>
    %c0_8 = arith.constant 0 : index
    %c0_9 = arith.constant 0 : index
    %28 = vector.load %arg3[%c0_8, %c0_9] : memref<1x32xbf16, #tpu.memory_space<vmem>>, vector<1x32xbf16>
    %29 = vector.broadcast %28 : vector<1x32xbf16> to vector<128x32xbf16>
    %30 = arith.addf %27, %29 : vector<128x32xbf16>
    %cst_10 = arith.constant 0.000000e+00 : bf16
    %31 = vector.broadcast %cst_10 : bf16 to vector<128x32xbf16>
    %32 = arith.maximumf %30, %31 : vector<128x32xbf16>
    %33 = vector.extract_strided_slice %25 {offsets = [0, 32], sizes = [128, 32], strides = [1, 1]} : vector<128x64xf32> to vector<128x32xf32>
    %34 = arith.truncf %33 : vector<128x32xf32> to vector<128x32xbf16>
    %c0_11 = arith.constant 0 : index
    %c0_12 = arith.constant 0 : index
    %35 = vector.load %arg4[%c0_11, %c0_12] : memref<32x32xbf16, #tpu.memory_space<vmem>>, vector<32x32xbf16>
    %cst_13 = arith.constant dense<0.000000e+00> : vector<128x32xf32>
    %36 = tpu.matmul %32, %35, %cst_13 {dimension_numbers = #tpu.dot_dimension_numbers<[1], [0], [0], [1], [0, 0, 1, 1], [], []>} : vector<128x32xbf16>, vector<32x32xbf16>, vector<128x32xf32> -> vector<128x32xf32>
    %37 = arith.truncf %36 : vector<128x32xf32> to vector<128x32xbf16>
    %c0_14 = arith.constant 0 : index
    %c0_15 = arith.constant 0 : index
    %38 = vector.load %arg5[%c0_14, %c0_15] : memref<1x32xbf16, #tpu.memory_space<vmem>>, vector<1x32xbf16>
    %39 = vector.broadcast %38 : vector<1x32xbf16> to vector<128x32xbf16>
    %40 = arith.addf %37, %39 : vector<128x32xbf16>
    %cst_16 = arith.constant 0.000000e+00 : bf16
    %41 = vector.broadcast %cst_16 : bf16 to vector<128x32xbf16>
    %42 = arith.maximumf %40, %41 : vector<128x32xbf16>
    %c0_17 = arith.constant 0 : index
    %c0_18 = arith.constant 0 : index
    %43 = vector.load %arg6[%c0_17, %c0_18] : memref<32x32xbf16, #tpu.memory_space<vmem>>, vector<32x32xbf16>
    %cst_19 = arith.constant dense<0.000000e+00> : vector<128x32xf32>
    %44 = tpu.matmul %42, %43, %cst_19 {dimension_numbers = #tpu.dot_dimension_numbers<[1], [0], [0], [1], [0, 0, 1, 1], [], []>} : vector<128x32xbf16>, vector<32x32xbf16>, vector<128x32xf32> -> vector<128x32xf32>
    %45 = arith.truncf %44 : vector<128x32xf32> to vector<128x32xbf16>
    %46 = arith.addf %45, %34 : vector<128x32xbf16>
    %c0_20 = arith.constant 0 : index
    %c0_21 = arith.constant 0 : index
    %47 = vector.load %arg7[%c0_20, %c0_21] : memref<1x32xbf16, #tpu.memory_space<vmem>>, vector<1x32xbf16>
    %48 = vector.broadcast %47 : vector<1x32xbf16> to vector<128x32xbf16>
    %49 = arith.addf %46, %48 : vector<128x32xbf16>
    %cst_22 = arith.constant 0.000000e+00 : bf16
    %50 = vector.broadcast %cst_22 : bf16 to vector<128x32xbf16>
    %51 = arith.maximumf %49, %50 : vector<128x32xbf16>
    %c0_23 = arith.constant 0 : index
    %c0_24 = arith.constant 0 : index
    %52 = vector.load %arg8[%c0_23, %c0_24] : memref<32x33xbf16, #tpu.memory_space<vmem>>, vector<32x33xbf16>
    %cst_25 = arith.constant dense<0.000000e+00> : vector<128x33xf32>
    %53 = tpu.matmul %51, %52, %cst_25 {dimension_numbers = #tpu.dot_dimension_numbers<[1], [0], [0], [1], [0, 0, 1, 1], [], []>} : vector<128x32xbf16>, vector<32x33xbf16>, vector<128x33xf32> -> vector<128x33xf32>
    %c0_26 = arith.constant 0 : index
    %c0_27 = arith.constant 0 : index
    %54 = vector.load %arg9[%c0_26, %c0_27] : memref<1x33xf32, #tpu.memory_space<vmem>>, vector<1x33xf32>
    %55 = vector.broadcast %54 : vector<1x33xf32> to vector<128x33xf32>
    %56 = arith.addf %53, %55 : vector<128x33xf32>
    %57 = vector.extract_strided_slice %56 {offsets = [0, 32], sizes = [128, 1], strides = [1, 1]} : vector<128x33xf32> to vector<128x1xf32>
    %cst_28 = arith.constant 0.000000e+00 : f32
    %58 = vector.broadcast %cst_28 : f32 to vector<128x1xf32>
    %59 = arith.maximumf %57, %58 : vector<128x1xf32>
    %60 = vector.broadcast %cst_28 : f32 to vector<128x1xf32>
    %61 = arith.subf %57, %60 : vector<128x1xf32>
    %62 = arith.cmpf one, %61, %61 : vector<128x1xf32>
    %63 = vector.broadcast %cst_28 : f32 to vector<128x1xf32>
    %64 = arith.addf %57, %63 : vector<128x1xf32>
    %65 = math.absf %61 : vector<128x1xf32>
    %cst_29 = arith.constant 0.000000e+00 : f32
    %66 = vector.broadcast %cst_29 : f32 to vector<128x1xf32>
    %67 = arith.subf %66, %65 : vector<128x1xf32>
    %68 = math.exp %67 : vector<128x1xf32>
    %69 = math.log1p %68 : vector<128x1xf32>
    %70 = arith.addf %59, %69 : vector<128x1xf32>
    %71 = arith.select %62, %64, %70 : vector<128x1xi1>, vector<128x1xf32>
    %72 = vector.extract_strided_slice %56 {offsets = [0, 0], sizes = [128, 32], strides = [1, 1]} : vector<128x33xf32> to vector<128x32xf32>
    %73 = arith.truncf %72 : vector<128x32xf32> to vector<128x32xbf16>
    %cst_30 = arith.constant 0.000000e+00 : bf16
    %74 = vector.broadcast %cst_30 : bf16 to vector<128x32xbf16>
    %75 = arith.maximumf %73, %74 : vector<128x32xbf16>
    %c0_31 = arith.constant 0 : index
    %c0_32 = arith.constant 0 : index
    %76 = vector.load %arg10[%c0_31, %c0_32] : memref<32x32xbf16, #tpu.memory_space<vmem>>, vector<32x32xbf16>
    %cst_33 = arith.constant dense<0.000000e+00> : vector<128x32xf32>
    %77 = tpu.matmul %75, %76, %cst_33 {dimension_numbers = #tpu.dot_dimension_numbers<[1], [0], [0], [1], [0, 0, 1, 1], [], []>} : vector<128x32xbf16>, vector<32x32xbf16>, vector<128x32xf32> -> vector<128x32xf32>
    %c0_34 = arith.constant 0 : index
    %c0_35 = arith.constant 0 : index
    %78 = vector.load %arg11[%c0_34, %c0_35] : memref<42x32xbf16, #tpu.memory_space<vmem>>, vector<42x32xbf16>
    %cst_36 = arith.constant dense<0.000000e+00> : vector<128x32xf32>
    %79 = tpu.matmul %23, %78, %cst_36 {dimension_numbers = #tpu.dot_dimension_numbers<[1], [0], [0], [1], [0, 0, 1, 1], [], []>} : vector<128x42xbf16>, vector<42x32xbf16>, vector<128x32xf32> -> vector<128x32xf32>
    %80 = arith.addf %77, %79 : vector<128x32xf32>
    %81 = arith.truncf %80 : vector<128x32xf32> to vector<128x32xbf16>
    %c0_37 = arith.constant 0 : index
    %c0_38 = arith.constant 0 : index
    %82 = vector.load %arg12[%c0_37, %c0_38] : memref<1x32xbf16, #tpu.memory_space<vmem>>, vector<1x32xbf16>
    %83 = vector.broadcast %82 : vector<1x32xbf16> to vector<128x32xbf16>
    %84 = arith.addf %81, %83 : vector<128x32xbf16>
    %cst_39 = arith.constant 0.000000e+00 : bf16
    %85 = vector.broadcast %cst_39 : bf16 to vector<128x32xbf16>
    %86 = arith.maximumf %84, %85 : vector<128x32xbf16>
    %c0_40 = arith.constant 0 : index
    %c0_41 = arith.constant 0 : index
    %87 = vector.load %arg13[%c0_40, %c0_41] : memref<32x3xbf16, #tpu.memory_space<vmem>>, vector<32x3xbf16>
    %cst_42 = arith.constant dense<0.000000e+00> : vector<128x3xf32>
    %88 = tpu.matmul %86, %87, %cst_42 {dimension_numbers = #tpu.dot_dimension_numbers<[1], [0], [0], [1], [0, 0, 1, 1], [], []>} : vector<128x32xbf16>, vector<32x3xbf16>, vector<128x3xf32> -> vector<128x3xf32>
    %c0_43 = arith.constant 0 : index
    %c0_44 = arith.constant 0 : index
    %89 = vector.load %arg14[%c0_43, %c0_44] : memref<1x3xf32, #tpu.memory_space<vmem>>, vector<1x3xf32>
    %90 = vector.broadcast %89 : vector<1x3xf32> to vector<128x3xf32>
    %91 = arith.addf %88, %90 : vector<128x3xf32>
    %92 = arith.negf %91 : vector<128x3xf32>
    %93 = math.exp %92 : vector<128x3xf32>
    %cst_45 = arith.constant 1.000000e+00 : f32
    %94 = vector.broadcast %cst_45 : f32 to vector<128x3xf32>
    %95 = arith.addf %94, %93 : vector<128x3xf32>
    %96 = arith.divf %94, %95 : vector<128x3xf32>
    %97 = arith.index_cast %1 : i32 to index
    %c0_46 = arith.constant 0 : index
    %98 = vector.load %arg15[%97, %c0_46] : memref<128x4xf32, #tpu.memory_space<vmem>>, vector<128x3xf32>
    tpu.vector_store %arg15[%97, %c0_46], %96 {strides = array<i32>} : memref<128x4xf32, #tpu.memory_space<vmem>>, vector<128x3xf32>,
    %99 = arith.index_cast %1 : i32 to index
    %c3 = arith.constant 3 : index
    %100 = vector.load %arg15[%99, %c3] : memref<128x4xf32, #tpu.memory_space<vmem>>, vector<128x1xf32>
    tpu.vector_store %arg15[%99, %c3], %71 {strides = array<i32>} : memref<128x4xf32, #tpu.memory_space<vmem>>, vector<128x1xf32>,
    %c1_i32 = arith.constant 1 : i32
    return
  }
  func.func @transform_0(%arg0: i32) -> (i32, i32) {
    %c0_i32 = arith.constant 0 : i32
    %c0_i32_0 = arith.constant 0 : i32
    return %arg0, %c0_i32 : i32, i32
  }
  func.func @transform_1(%arg0: i32) -> (i32, i32) {
    %c0_i32 = arith.constant 0 : i32
    %c0_i32_0 = arith.constant 0 : i32
    %c0_i32_1 = arith.constant 0 : i32
    return %c0_i32, %c0_i32_0 : i32, i32
  }
  func.func @transform_2(%arg0: i32) -> (i32, i32) {
    %c0_i32 = arith.constant 0 : i32
    %c0_i32_0 = arith.constant 0 : i32
    %c0_i32_1 = arith.constant 0 : i32
    return %c0_i32, %c0_i32_0 : i32, i32
  }
  func.func @transform_3(%arg0: i32) -> (i32, i32) {
    %c0_i32 = arith.constant 0 : i32
    %c0_i32_0 = arith.constant 0 : i32
    %c0_i32_1 = arith.constant 0 : i32
    return %c0_i32, %c0_i32_0 : i32, i32
  }
  func.func @transform_4(%arg0: i32) -> (i32, i32) {
    %c0_i32 = arith.constant 0 : i32
    %c0_i32_0 = arith.constant 0 : i32
    %c0_i32_1 = arith.constant 0 : i32
    return %c0_i32, %c0_i32_0 : i32, i32
  }
  func.func @transform_5(%arg0: i32) -> (i32, i32) {
    %c0_i32 = arith.constant 0 : i32
    %c0_i32_0 = arith.constant 0 : i32
    %c0_i32_1 = arith.constant 0 : i32
    return %c0_i32, %c0_i32_0 : i32, i32
  }
  func.func @transform_6(%arg0: i32) -> (i32, i32) {
    %c0_i32 = arith.constant 0 : i32
    %c0_i32_0 = arith.constant 0 : i32
    %c0_i32_1 = arith.constant 0 : i32
    return %c0_i32, %c0_i32_0 : i32, i32
  }
  func.func @transform_7(%arg0: i32) -> (i32, i32) {
    %c0_i32 = arith.constant 0 : i32
    %c0_i32_0 = arith.constant 0 : i32
    %c0_i32_1 = arith.constant 0 : i32
    return %c0_i32, %c0_i32_0 : i32, i32
  }
  func.func @transform_8(%arg0: i32) -> (i32, i32) {
    %c0_i32 = arith.constant 0 : i32
    %c0_i32_0 = arith.constant 0 : i32
    %c0_i32_1 = arith.constant 0 : i32
    return %c0_i32, %c0_i32_0 : i32, i32
  }
  func.func @transform_9(%arg0: i32) -> (i32, i32) {
    %c0_i32 = arith.constant 0 : i32
    %c0_i32_0 = arith.constant 0 : i32
    %c0_i32_1 = arith.constant 0 : i32
    return %c0_i32, %c0_i32_0 : i32, i32
  }
  func.func @transform_10(%arg0: i32) -> (i32, i32) {
    %c0_i32 = arith.constant 0 : i32
    %c0_i32_0 = arith.constant 0 : i32
    %c0_i32_1 = arith.constant 0 : i32
    return %c0_i32, %c0_i32_0 : i32, i32
  }
  func.func @transform_11(%arg0: i32) -> (i32, i32) {
    %c0_i32 = arith.constant 0 : i32
    %c0_i32_0 = arith.constant 0 : i32
    %c0_i32_1 = arith.constant 0 : i32
    return %c0_i32, %c0_i32_0 : i32, i32
  }
  func.func @transform_12(%arg0: i32) -> (i32, i32) {
    %c0_i32 = arith.constant 0 : i32
    %c0_i32_0 = arith.constant 0 : i32
    %c0_i32_1 = arith.constant 0 : i32
    return %c0_i32, %c0_i32_0 : i32, i32
  }
  func.func @transform_13(%arg0: i32) -> (i32, i32) {
    %c0_i32 = arith.constant 0 : i32
    %c0_i32_0 = arith.constant 0 : i32
    %c0_i32_1 = arith.constant 0 : i32
    return %c0_i32, %c0_i32_0 : i32, i32
  }
  func.func @transform_14(%arg0: i32) -> (i32, i32) {
    %c0_i32 = arith.constant 0 : i32
    %c0_i32_0 = arith.constant 0 : i32
    return %arg0, %c0_i32 : i32, i32
  }
}

</mosaic_0001>

<bundles_post_ra>
// kernel: nerf_forward.1
= control target key start
LH: loop header
LB: loop body
LE: loop exit
PB: predicated region body
PF: predicated region fallthrough
CT: control target
= control target key end

     0   :  { %s7069_s29 = smov 0   ;;  %s9896_s0 = inlined_call_operand.vmem [shape: f32[256,8], index: 0, kind: input, shape index: {}]   ;;  %s9897_s1 = inlined_call_operand.vmem [shape: bf16[42,64], index: 1, kind: input, shape index: {}]   ;;  %s9898_s2 = inlined_call_operand.vmem [shape: bf16[1,32], index: 2, kind: input, shape index: {}]   ;;  %s9899_s3 = inlined_call_operand.vmem [shape: bf16[32,32], index: 3, kind: input, shape index: {}]   ;;  %s9900_s4 = inlined_call_operand.vmem [shape: bf16[1,32], index: 4, kind: input, shape index: {}]   ;;  %s9901_s5 = inlined_call_operand.vmem [shape: bf16[32,32], index: 5, kind: input, shape index: {}]   ;;  %s9902_s6 = inlined_call_operand.vmem [shape: bf16[1,32], index: 6, kind: input, shape index: {}]   ;;  %s9903_s7 = inlined_call_operand.vmem [shape: bf16[32,33], index: 7, kind: input, shape index: {}]   ;;  %s9904_s8 = inlined_call_operand.vmem [shape: f32[1,33], index: 8, kind: input, shape index: {}]   ;;  %s9905_s9 = inlined_call_operand.vmem [shape: bf16[32,32], index: 9, kind: input, shape index: {}]   ;;  %s9906_s10 = inlined_call_operand.vmem [shape: bf16[42,32], index: 10, kind: input, shape index: {}]   ;;  %s9907_s11 = inlined_call_operand.vmem [shape: bf16[1,32], index: 11, kind: input, shape index: {}]   ;;  %s9908_s12 = inlined_call_operand.vmem [shape: bf16[32,3], index: 12, kind: input, shape index: {}]   ;;  %s9909_s13 = inlined_call_operand.vmem [shape: f32[1,3], index: 13, kind: input, shape index: {}]   ;;  %s9910_s14 = inlined_call_operand.vmem [shape: f32[256,4], index: 14, kind: output, shape index: {}]  }
   0x1 LB: > { %s6115_s30 = sadd.s32 4294967295, %s6978_s29   ;;  %p6119_p0 = scmp.ge.s32.totalorder %s6978_s29, 1  ;;  %s6978_s29 = sphi %s7069_s29, %s24_s29  }
   0x2   : > { %p413_p1 = scmp.lt.s32.totalorder %s6978_s29, 3 }
   0x4   : > { %p414_p2 = pnand %p6119_p0, %p413_p1 }
   0x6   : > { %417 = sbr.rel (%p414_p2) target bundleno = 2113 (0x841), region = 76 }
   0xd   : > { %s6120_s15 = sshll.u32 %s6115_s30, 4  ;;  %s6980_s20 = smov 3   ;;  %vm856_vm0 = vcmask 23552   ;;  %vm873_vm1 = vcmask 48128   ;;  %vm9977_vm2 = vcmask 72704   ;;  %vm9976_vm3 = vcmask 97280  }
   0xe   : > { %p460_p3 = scmp.lt.s32.totalorder %s6120_s15, 31  ;;  %s6981_s21 = smov 6   ;;  %vm9973_vm4 = vcmask 121856  }
   0xf   : > { %s6982_s22 = smov 9   ;;  %s6983_s23 = smov 12  }
  0x10   : > { %s10149_s15 = smov (!%p460_p3, %s6120_s15), 31  ;;  %s6990_s24 = smov 24  }
  0x11   : > { %s6121_s16 = sshll.u32 %s10149_s15, 3 }
  0x12   : > { %s7085_s19 = scalar_lea.vmem %s9896_s0, %s6121_s16 }
  0x13   : > { %v474_v0 = vld [vmem:[%s7085_s19 + $0x10] sm:$0xff]  ;;  %v472_v1 = vld [vmem:[%s7085_s19] sm:$0xff]  ;;  %v475_v2 = vld [vmem:[%s7085_s19 + $0x18] sm:$0xff] }
  0x14   : > { %v506_v3 = vmul.f32 6.2831855, %v474_v0  ;;  %v504_v4 = vmul.f32 6.2831855, %v472_v1  ;;  %v473_v5 = vld [vmem:[%s7085_s19 + $0x8] sm:$0xff]  ;;  %v476_v21 = vld [vmem:[%s7085_s19 + $0x20] sm:$0xff] }
  0x15   : > { %v507_v6 = vmul.f32 6.2831855, %v475_v2  ;;  %v505_v7 = vmul.f32 6.2831855, %v473_v5  ;;  %v521_v8 = vmul.f32 12.566371, %v473_v5 }
  0x16   : > { %572 = vrot.lane.b32.xlu1 %v506_v3, %s6980_s20  ;;  %568 = vrot.lane.b32.xlu0 %v504_v4, %s6980_s20  ;;  %v520_v9 = vmul.f32 12.566371, %v472_v1  ;;  %v523_v10 = vmul.f32 12.566371, %v475_v2  ;;  %v522_v11 = vmul.f32 12.566371, %v474_v0 }
  0x17   : > { %v537_v12 = vmul.f32 25.132742, %v473_v5  ;;  %v536_v13 = vmul.f32 25.132742, %v472_v1  ;;  %v539_v14 = vmul.f32 25.132742, %v475_v2 }
  0x18   : > { %v538_v15 = vmul.f32 25.132742, %v474_v0  ;;  %v7103_v16 = vmul.f32 3.1415927, %v473_v5  ;;  %v7105_v17 = vmul.f32 3.1415927, %v472_v1 }
  0x19   : > { %v7107_v18 = vmul.f32 3.1415927, %v475_v2  ;;  %v7113_v19 = vmul.f32 3.1415927, %v474_v0  ;;  %v477_v20 = vld [vmem:[%s7085_s19 + $0x28] sm:$0xff]  ;;  %v479_v24 = vld [vmem:[%s7085_s19 + $0x38] sm:$0xff] }
  0x1a   : > { %574 = vrot.lane.b32.xlu1 %v507_v6, %s6980_s20  ;;  %570 = vrot.lane.b32.xlu0 %v505_v7, %s6980_s20  ;;  %v509_v22 = vmul.f32 6.2831855, %v477_v20  ;;  %v508_v23 = vmul.f32 6.2831855, %v476_v21  ;;  %v478_v25 = vld [vmem:[%s7085_s19 + $0x30] sm:$0xff]  ;;  %v481_v40 = vld [vmem:[%s7085_s19 + $0x48] sm:$0xff] }
  0x1b   : > { %v511_v26 = vmul.f32 6.2831855, %v479_v24  ;;  %v510_v27 = vmul.f32 6.2831855, %v478_v25  ;;  %v525_v28 = vmul.f32 12.566371, %v477_v20 }
  0x1c   : > { %v524_v29 = vmul.f32 12.566371, %v476_v21  ;;  %v527_v30 = vmul.f32 12.566371, %v479_v24  ;;  %v526_v31 = vmul.f32 12.566371, %v478_v25 }
  0x1d   : > { %v541_v32 = vmul.f32 25.132742, %v477_v20  ;;  %v540_v33 = vmul.f32 25.132742, %v476_v21  ;;  %v543_v34 = vmul.f32 25.132742, %v479_v24 }
  0x1e   : > { %634 = vrot.lane.b32.xlu1 %v521_v8, %s6981_s21  ;;  %632 = vrot.lane.b32.xlu0 %v520_v9, %s6981_s21  ;;  %v542_v35 = vmul.f32 25.132742, %v478_v25  ;;  %v7139_v36 = vmul.f32 3.1415927, %v477_v20  ;;  %v7141_v37 = vmul.f32 3.1415927, %v476_v21 }
  0x1f   : > { %v7147_v38 = vmul.f32 3.1415927, %v479_v24  ;;  %v7149_v39 = vmul.f32 3.1415927, %v478_v25  ;;  %v480_v41 = vld [vmem:[%s7085_s19 + $0x40] sm:$0xff]  ;;  %v483_v44 = vld [vmem:[%s7085_s19 + $0x58] sm:$0xff] }
  0x20   : > { %v513_v42 = vmul.f32 6.2831855, %v481_v40  ;;  %v512_v43 = vmul.f32 6.2831855, %v480_v41  ;;  %v482_v45 = vld [vmem:[%s7085_s19 + $0x50] sm:$0xff]  ;;  %v485_v60 = vld [vmem:[%s7085_s19 + $0x68] sm:$0xff] }
  0x21   : > { %v515_v46 = vmul.f32 6.2831855, %v483_v44  ;;  %v514_v47 = vmul.f32 6.2831855, %v482_v45  ;;  %v529_v48 = vmul.f32 12.566371, %v481_v40 }
  0x22   : > { %638 = vrot.lane.b32.xlu1 %v523_v10, %s6981_s21  ;;  %636 = vrot.lane.b32.xlu0 %v522_v11, %s6981_s21  ;;  %v528_v49 = vmul.f32 12.566371, %v480_v41  ;;  %v531_v50 = vmul.f32 12.566371, %v483_v44  ;;  %v530_v51 = vmul.f32 12.566371, %v482_v45 }
  0x23   : > { %v545_v52 = vmul.f32 25.132742, %v481_v40  ;;  %v544_v53 = vmul.f32 25.132742, %v480_v41  ;;  %v547_v54 = vmul.f32 25.132742, %v483_v44 }
  0x24   : > { %v546_v55 = vmul.f32 25.132742, %v482_v45  ;;  %v7175_v56 = vmul.f32 3.1415927, %v481_v40  ;;  %v7177_v57 = vmul.f32 3.1415927, %v480_v41 }
  0x25   : > { %v7183_v58 = vmul.f32 3.1415927, %v483_v44  ;;  %v7185_v59 = vmul.f32 3.1415927, %v482_v45  ;;  %v484_v61 = vld [vmem:[%s7085_s19 + $0x60] sm:$0xff]  ;;  %v487_v2 = vld [vmem:[%s7085_s19 + $0x78] sm:$0xff] }
  0x26   : > { %698 = vrot.lane.b32.xlu1 %v537_v12, %s6982_s22  ;;  %696 = vrot.lane.b32.xlu0 %v536_v13, %s6982_s22  ;;  %v7199_v0 = vmul.f32 6.2831855, %v485_v60  ;;  %v7201_v1 = vmul.f32 6.2831855, %v484_v61  ;;  %v533_v10 = vmul.f32 12.566371, %v485_v60 }
  0x27   : > { %v532_v11 = vmul.f32 12.566371, %v484_v61 }
  0x2a   : > { %702 = vrot.lane.b32.xlu1 %v539_v14, %s6982_s22  ;;  %700 = vrot.lane.b32.xlu0 %v538_v15, %s6982_s22  ;;  %v535_v14 = vmul.f32 12.566371, %v487_v2 }
  0x2e   : > { %762 = vrot.lane.b32.xlu1 %v7103_v16, %s6982_s22  ;;  %760 = vrot.lane.b32.xlu0 %v7105_v17, %s6982_s22 }
  0x32   : > { %766 = vrot.lane.b32.xlu1 %v7107_v18, %s6982_s22  ;;  %764 = vrot.lane.b32.xlu0 %v7113_v19, %s6982_s22 }
  0x36   : > { %810 = vrot.lane.b32.xlu1 %v505_v7, %s6983_s23  ;;  %808 = vrot.lane.b32.xlu0 %v504_v4, %s6983_s23 }
  0x3a   : > { %814 = vrot.lane.b32.xlu1 %v507_v6, %s6983_s23  ;;  %812 = vrot.lane.b32.xlu0 %v506_v3, %s6983_s23  ;;  %v486_v3 = vld [vmem:[%s7085_s19 + $0x70] sm:$0xff]  ;;  %v7209_v6 = vmul.f32 6.2831855, %v487_v2 }
  0x3b   : > { %v7211_v7 = vmul.f32 6.2831855, %v486_v3  ;;  %v534_v15 = vmul.f32 12.566371, %v486_v3 }
  0x3e   : > { %578 = vrot.lane.b32.xlu1 %v509_v22, %s6980_s20  ;;  %576 = vrot.lane.b32.xlu0 %v508_v23, %s6980_s20 }
  0x42   : > { %582 = vrot.lane.b32.xlu1 %v511_v26, %s6980_s20  ;;  %580 = vrot.lane.b32.xlu0 %v510_v27, %s6980_s20 }
  0x46   : > { %642 = vrot.lane.b32.xlu1 %v525_v28, %s6981_s21  ;;  %640 = vrot.lane.b32.xlu0 %v524_v29, %s6981_s21 }
  0x4a   : > { %646 = vrot.lane.b32.xlu1 %v527_v30, %s6981_s21  ;;  %644 = vrot.lane.b32.xlu0 %v526_v31, %s6981_s21  ;;  %v7229_v30 = vmul.f32 3.1415927, %v485_v60  ;;  %v7231_v31 = vmul.f32 3.1415927, %v484_v61 }
  0x4c   : > { %9989 = vst [vmem:[#allocation2_spill] sm:$0xff] %v7229_v30  ;;  %9990 = vst [vmem:[#allocation3_spill] sm:$0xff] %v7231_v31 }
  0x4e   : > { %706 = vrot.lane.b32.xlu1 %v541_v32, %s6982_s22  ;;  %704 = vrot.lane.b32.xlu0 %v540_v33, %s6982_s22 }
  0x52   : > { %710 = vrot.lane.b32.xlu1 %v543_v34, %s6982_s22  ;;  %708 = vrot.lane.b32.xlu0 %v542_v35, %s6982_s22 }
  0x56   : > { %770 = vrot.lane.b32.xlu1 %v7139_v36, %s6982_s22  ;;  %768 = vrot.lane.b32.xlu0 %v7141_v37, %s6982_s22 }
  0x5a   : > { %774 = vrot.lane.b32.xlu1 %v7147_v38, %s6982_s22  ;;  %772 = vrot.lane.b32.xlu0 %v7149_v39, %s6982_s22 }
  0x5e   : > { %818 = vrot.lane.b32.xlu1 %v509_v22, %s6983_s23  ;;  %816 = vrot.lane.b32.xlu0 %v508_v23, %s6983_s23  ;;  %v549_v22 = vmul.f32 25.132742, %v485_v60  ;;  %v548_v23 = vmul.f32 25.132742, %v484_v61 }
  0x62   : > { %822 = vrot.lane.b32.xlu1 %v511_v26, %s6983_s23  ;;  %820 = vrot.lane.b32.xlu0 %v510_v27, %s6983_s23  ;;  %v551_v26 = vmul.f32 25.132742, %v487_v2  ;;  %v550_v27 = vmul.f32 25.132742, %v486_v3 }
  0x66   : > { %586 = vrot.lane.b32.xlu1 %v513_v42, %s6980_s20  ;;  %584 = vrot.lane.b32.xlu0 %v512_v43, %s6980_s20 }
  0x6a   : > { %590 = vrot.lane.b32.xlu1 %v515_v46, %s6980_s20  ;;  %588 = vrot.lane.b32.xlu0 %v514_v47, %s6980_s20 }
  0x6e   : > { %650 = vrot.lane.b32.xlu1 %v529_v48, %s6981_s21  ;;  %648 = vrot.lane.b32.xlu0 %v528_v49, %s6981_s21 }
  0x72   : > { %654 = vrot.lane.b32.xlu1 %v531_v50, %s6981_s21  ;;  %652 = vrot.lane.b32.xlu0 %v530_v51, %s6981_s21 }
  0x76   : > { %714 = vrot.lane.b32.xlu1 %v545_v52, %s6982_s22  ;;  %712 = vrot.lane.b32.xlu0 %v544_v53, %s6982_s22 }
  0x7a   : > { %718 = vrot.lane.b32.xlu1 %v547_v54, %s6982_s22  ;;  %716 = vrot.lane.b32.xlu0 %v546_v55, %s6982_s22 }
  0x7e   : > { %778 = vrot.lane.b32.xlu1 %v7175_v56, %s6982_s22  ;;  %776 = vrot.lane.b32.xlu0 %v7177_v57, %s6982_s22 }
  0x82   : > { %782 = vrot.lane.b32.xlu1 %v7183_v58, %s6982_s22  ;;  %780 = vrot.lane.b32.xlu0 %v7185_v59, %s6982_s22 }
  0x86   : > { %826 = vrot.lane.b32.xlu1 %v513_v42, %s6983_s23  ;;  %824 = vrot.lane.b32.xlu0 %v512_v43, %s6983_s23  ;;  %v7245_v42 = vmul.f32 3.1415927, %v487_v2  ;;  %v7247_v43 = vmul.f32 3.1415927, %v486_v3 }
  0x88   : > { %v7195_v62 = vpop.permute.xlu1 %572  ;;  %v569_v63 = vpop.permute.xlu0 %568  ;;  %9991 = vst [vmem:[#allocation4_spill] sm:$0xff] %v7245_v42  ;;  %9992 = vst [vmem:[#allocation5_spill] sm:$0xff] %v7247_v43 }
  0x89   : > { %v857_v34 = vsel %vm856_vm0, %v7105_v17, %v569_v63 }
  0x8a   : > { %830 = vrot.lane.b32.xlu1 %v515_v46, %s6983_s23  ;;  %828 = vrot.lane.b32.xlu0 %v514_v47, %s6983_s23 }
  0x8c   : > { %v575_v4 = vpop.permute.xlu1 %574  ;;  %v571_v5 = vpop.permute.xlu0 %570 }
  0x8d   : > { %v858_v35 = vsel %vm856_vm0, %v7103_v16, %v571_v5  ;;  %v860_v48 = vsel %vm856_vm0, %v7107_v18, %v575_v4 }
  0x8e   : > { %594 = vrot.lane.b32.xlu1 %v7199_v0, %s6980_s20  ;;  %592 = vrot.lane.b32.xlu0 %v7201_v1, %s6980_s20 }
  0x90   : > { %v635_v8 = vpop.permute.xlu1 %634  ;;  %v633_v9 = vpop.permute.xlu0 %632 }
  0x91   : > { %v875_v40 = vsel %vm873_vm1, %v858_v35, %v635_v8  ;;  %v874_v41 = vsel %vm873_vm1, %v857_v34, %v633_v9  ;;  %v9921_v35 = vmov 2475754826  }
  0x92   : > { %598 = vrot.lane.b32.xlu1 %v7209_v6, %s6980_s20  ;;  %596 = vrot.lane.b32.xlu0 %v7211_v7, %s6980_s20 }
  0x94   : > { %v639_v12 = vpop.permute.xlu1 %638  ;;  %v7217_v13 = vpop.permute.xlu0 %636 }
  0x95   : > { %v877_v51 = vsel %vm873_vm1, %v860_v48, %v639_v12 }
  0x96   : > { %658 = vrot.lane.b32.xlu1 %v533_v10, %s6981_s21  ;;  %656 = vrot.lane.b32.xlu0 %v532_v11, %s6981_s21 }
  0x98   : > { %v699_v20 = vpop.permute.xlu1 %698  ;;  %v697_v21 = vpop.permute.xlu0 %696 }
  0x99   : > { %v892_v17 = vsel %vm9977_vm2, %v875_v40, %v699_v20  ;;  %v891_v16 = vsel %vm9977_vm2, %v874_v41, %v697_v21  ;;  %v9919_v41 = vmov 2131351028  }
  0x9a   : > { %662 = vrot.lane.b32.xlu1 %v535_v14, %s6981_s21  ;;  %660 = vrot.lane.b32.xlu0 %v534_v15, %s6981_s21 }
  0x9c   : > { %v703_v24 = vpop.permute.xlu1 %702  ;;  %v7223_v25 = vpop.permute.xlu0 %700 }
  0x9d   : > { %v894_v18 = vsel %vm9977_vm2, %v877_v51, %v703_v24  ;;  %v7291_v24 = vsel %vm856_vm0, %v7113_v19, %v7195_v62  ;;  %v9926_v62 = vmov 2102212464  }
  0x9e   : > { %722 = vrot.lane.b32.xlu1 %v549_v22, %s6982_s22  ;;  %720 = vrot.lane.b32.xlu0 %v548_v23, %s6982_s22 }
  0xa0   : > { %v763_v28 = vpop.permute.xlu1 %762  ;;  %v761_v29 = vpop.permute.xlu0 %760 }
  0xa1   : > { %v909_v44 = vsel %vm9976_vm3, %v892_v17, %v763_v28  ;;  %v908_v45 = vsel %vm9976_vm3, %v891_v16, %v761_v29  ;;  %v9916_v29 = vmov 683565275   ;;  %v9924_v16 = vmov 920167782  }
  0xa2   : > { %726 = vrot.lane.b32.xlu1 %v551_v26, %s6982_s22  ;;  %724 = vrot.lane.b32.xlu0 %v550_v27, %s6982_s22 }
  0xa4   : > { %v767_v32 = vpop.permute.xlu1 %766  ;;  %v7233_v33 = vpop.permute.xlu0 %764 }
  0xa5   : > { %v911_v60 = vsel %vm9976_vm3, %v894_v18, %v767_v32 }
  0xa6   : > { %786 = vrot.lane.b32.xlu1 %v7229_v30, %s6982_s22  ;;  %784 = vrot.lane.b32.xlu0 %v7231_v31, %s6982_s22 }
  0xa8   : > { %v811_v46 = vpop.permute.xlu1 %810  ;;  %v809_v47 = vpop.permute.xlu0 %808 }
  0xa9   : > { %v7256_v49 = vsel %vm9973_vm4, %v909_v44, %v811_v46  ;;  %v7259_v50 = vsel %vm9973_vm4, %v908_v45, %v809_v47 }
  0xaa   : > { %9993 = vst [vmem:[#allocation6_spill] sm:$0xff] %v7256_v49  ;;  %9994 = vst [vmem:[#allocation7_spill] sm:$0xff] %v7259_v50  ;;  %v1045_v52 = vand.u32 2147483647, %v7256_v49  ;;  %v1048_v53 = vand.u32 2139095040, %v7256_v49  ;;  %790 = vrot.lane.b32.xlu1 %v7245_v42, %s6982_s22  ;;  %788 = vrot.lane.b32.xlu0 %v7247_v43, %s6982_s22  ;;  %v944_v55 = vand.u32 2139095040, %v7259_v50  ;;  %s9815_s22 = scalar_lea.vmem %s9910_s14, %s6121_s16 }
  0xab   : > { %v941_v54 = vand.u32 2147483647, %v7259_v50  ;;  %v10000_v43 = vmov 1326507024  }
  0xac   : > { %v1049_v61 = vshrl.u32 %v1048_v53, 23  ;;  %v815_v63 = vpop.permute.xlu1 %814  ;;  %v1052_v2 = vand.u32 8388607, %v1045_v52  ;;  %v945_v3 = vshrl.u32 %v944_v55, 23  ;;  %v9913_v53 = vmov 1326507024  }
  0xad   : > { %v948_v4 = vand.u32 8388607, %v941_v54  ;;  %v7277_v5 = vsel %vm9973_vm4, %v911_v60, %v815_v63 }
  0xae   : > { %9995 = vst [vmem:[#allocation8_spill] sm:$0xff] %v7277_v5  ;;  %v6128_v8 = vadd.s32 4294967169, %v1049_v61  ;;  %834 = vrot.lane.b32.xlu1 %v7199_v0, %s6983_s23  ;;  %832 = vrot.lane.b32.xlu0 %v7201_v1, %s6983_s23  ;;  %v6124_v9 = vadd.s32 4294967169, %v945_v3  ;;  %v1256_v10 = vand.u32 2139095040, %v7277_v5  ;;  %v1053_v12 = vor.u32 8388608, %v1052_v2 }
  0xaf   : > { %v949_v14 = vor.u32 8388608, %v948_v4 }
  0xb0   : > { %v1055_v11 = vadd.s32 1, %v6128_v8  ;;  %v951_v15 = vadd.s32 1, %v6124_v9  ;;  %v1257_v20 = vshrl.u32 %v1256_v10, 23  ;;  %v7293_v26 = vshll.u32 %v1053_v12, 8 }
  0xb1   : > { %v7297_v28 = vshll.u32 %v949_v14, 8 }
  0xb2   : > { %vm1056_vm5 = vcmp.gt.s32.totalorder %v1055_v11, 0  ;;  %838 = vrot.lane.b32.xlu1 %v7209_v6, %s6983_s23  ;;  %836 = vrot.lane.b32.xlu0 %v7211_v7, %s6983_s23  ;;  %vm952_vm6 = vcmp.gt.s32.totalorder %v951_v15, 0  ;;  %v6136_v0 = vadd.s32 4294967169, %v1257_v20 }
  0xb3   : > { %v1057_v21 = vsel %vm1056_vm5, %v1055_v11, 0  ;;  %v953_v23 = vsel %vm952_vm6, %v951_v15, 0 }
  0xb4   : > { %v1058_v22 = vshrl.u32 %v1057_v21, 5  ;;  %v1059_v1 = vand.u32 31, %v1057_v21  ;;  %v7295_v27 = vshrl.u32 %v953_v23, 5  ;;  %v955_v32 = vand.u32 31, %v953_v23 }
  0xb5   : > { %v7300_v34 = vadd.s32 1, %v6136_v0 }
  0xb6   : > { %v1060_v6 = vsub.s32 32, %v1059_v1  ;;  %v1062_v7 = vshll.u32 %v9916_v29, %v1059_v1  ;;  %v1065_v40 = vshll.u32 %v9921_v35, %v1059_v1  ;;  %v1068_v19 = vshll.u32 %v9919_v41, %v1059_v1 }
  0xb7   : > { %v1071_v17 = vshll.u32 %v9926_v62, %v1059_v1  ;;  %v1074_v44 = vshll.u32 %v9924_v16, %v1059_v1  ;;  %vm1077_vm7 = vcmp.lt.s32.totalorder %v1058_v22, 1  ;;  %vm1078_vm8 = vcmp.lt.s32.totalorder %v1058_v22, 2 }
  0xb8   : > { %v1063_v45 = vshrl.u32 %v9921_v35, %v1060_v6  ;;  %v1066_v46 = vshrl.u32 %v9919_v41, %v1060_v6  ;;  %v1069_v47 = vshrl.u32 %v9926_v62, %v1060_v6  ;;  %v1061_v48 = vshrl.u32 %v9916_v29, %v1060_v6 }
  0xb9   : > { %v1072_v51 = vshrl.u32 %v9924_v16, %v1060_v6  ;;  %v1075_v18 = vshrl.u32 %v9913_v53, %v1060_v6  ;;  %v956_v63 = vsub.s32 32, %v955_v32  ;;  %vm1079_vm9 = vcmp.lt.s32.totalorder %v1058_v22, 3 }
  0xba   : > { %v1064_v55 = vor.u32 %v1063_v45, %v1062_v7  ;;  %v1067_v60 = vor.u32 %v1066_v46, %v1065_v40  ;;  %v1070_v61 = vor.u32 %v1069_v47, %v1068_v19  ;;  %vm1080_vm10 = vcmp.lt.s32.totalorder %v1058_v22, 4 }
  0xbb   : > { %v1073_v2 = vor.u32 %v1072_v51, %v1071_v17  ;;  %v1076_v3 = vor.u32 %v1075_v18, %v1074_v44  ;;  %v958_v15 = vshll.u32 %v9916_v29, %v955_v32  ;;  %v959_v0 = vshrl.u32 %v9921_v35, %v956_v63 }
  0xbc   : > { %v1081_v4 = vsel %vm1077_vm7, %v1061_v48, %v1064_v55  ;;  %v1082_v8 = vsel %vm1080_vm10, %v1070_v61, 2102212464  ;;  %v1085_v9 = vsel %vm1077_vm7, %v1064_v55, %v1067_v60  ;;  %v1089_v10 = vsel %vm1077_vm7, %v1067_v60, %v1070_v61 }
  0xbd   : > { %v1083_v11 = vsel %vm1079_vm9, %v1067_v60, %v1082_v8  ;;  %v1086_v12 = vsel %vm1080_vm10, %v1073_v2, 920167782  ;;  %v1090_v14 = vsel %vm1080_vm10, %v1076_v3, 1326507024  ;;  %v961_v1 = vshll.u32 %v9921_v35, %v955_v32 }
  0xbe   : > { %v1087_v20 = vsel %vm1079_vm9, %v1070_v61, %v1086_v12  ;;  %v1091_v21 = vsel %vm1079_vm9, %v1073_v2, %v1090_v14  ;;  %v1084_v23 = vsel %vm1078_vm8, %v1081_v4, %v1083_v11  ;;  %v962_v40 = vshrl.u32 %v9919_v41, %v956_v63 }
  0xbf   : > { %v1088_v6 = vsel %vm1078_vm8, %v1085_v9, %v1087_v20  ;;  %v1092_v7 = vsel %vm1078_vm8, %v1089_v10, %v1091_v21  ;;  %v960_v46 = vor.u32 %v959_v0, %v958_v15  ;;  %v964_v48 = vshll.u32 %v9919_v41, %v955_v32 }
  0xc0   : > { %v7323_v19 = vmul.u32.u64.low %v7293_v26, %v1092_v7  ;;  %v7324_v17 = vmul.u32.u64.high %v7293_v26, %v1092_v7, %v7323_v19  ;;  %v7327_v44 = vmul.u32.u64.low %v7293_v26, %v1088_v6  ;;  %v7328_v45 = vmul.u32.u64.high %v7293_v26, %v1088_v6, %v7327_v44 }
  0xc1   : > { %v963_v47 = vor.u32 %v962_v40, %v961_v1  ;;  %v965_v51 = vshrl.u32 %v9926_v62, %v956_v63  ;;  %v957_v22 = vshrl.u32 %v9916_v29, %v956_v63  ;;  %v967_v18 = vshll.u32 %v9926_v62, %v955_v32 }
  0xc2   : > { %v968_v55 = vshrl.u32 %v9924_v16, %v956_v63  ;;  %v971_v60 = vshrl.u32 %v9913_v53, %v956_v63  ;;  %v1100_v61 = vmul.u32 %v7293_v26, %v1084_v23  ;;  %v970_v3 = vshll.u32 %v9924_v16, %v955_v32  ;;  %v813_v26 = vpop.permute.xlu0 %812 }
  0xc3   : > { %v966_v2 = vor.u32 %v965_v51, %v964_v48  ;;  %vm973_vm11 = vcmp.lt.s32.totalorder %v7295_v27, 1  ;;  %vm1102_vm12 = vc.u32 %v7324_v17, %v7327_v44  ;;  %v1103_v4 = vadd.s32 1, %v7328_v45 }
  0xc4   : > { %v969_v8 = vor.u32 %v968_v55, %v967_v18  ;;  %vm974_vm13 = vcmp.lt.s32.totalorder %v7295_v27, 2  ;;  %v972_v9 = vor.u32 %v971_v60, %v970_v3  ;;  %vm975_vm14 = vcmp.lt.s32.totalorder %v7295_v27, 3 }
  0xc5   : > { %vm976_vm15 = vcmp.lt.s32.totalorder %v7295_v27, 4  ;;  %v981_v63 = vsel %vm973_vm11, %v960_v46, %v963_v47  ;;  %v1104_v10 = vsel %vm1102_vm12, %v1103_v4, %v7328_v45  ;;  %v985_v12 = vsel %vm973_vm11, %v963_v47, %v966_v2  ;;  %v7357_v45 = vpop.permute.xlu1 %578 }
  0xc6   : > { %v978_v32 = vsel %vm976_vm15, %v966_v2, 2102212464  ;;  %v982_v11 = vsel %vm976_vm15, %v969_v8, 920167782  ;;  %v1105_v14 = vadd.s32 %v1104_v10, %v1100_v61  ;;  %v977_v15 = vsel %vm973_vm11, %v957_v22, %v960_v46  ;;  %v7373_v61 = vpop.permute.xlu0 %576 }
  0xc7   : > { %v983_v20 = vsel %vm975_vm14, %v966_v2, %v982_v11  ;;  %v986_v21 = vsel %vm976_vm15, %v972_v9, 1326507024  ;;  %v979_v0 = vsel %vm975_vm14, %v963_v47, %v978_v32  ;;  %vm1264_vm5 = vcmp.gt.s32.totalorder %v7300_v34, 0 }
  0xc8   : > { %v984_v1 = vsel %vm974_vm13, %v981_v63, %v983_v20  ;;  %v987_v23 = vsel %vm975_vm14, %v969_v8, %v986_v21  ;;  %v1106_v6 = vadd.s32 536870912, %v1105_v14  ;;  %v876_v46 = vsel %vm873_vm1, %v7291_v24, %v7217_v13 }
  0xc9   : > { %v988_v7 = vsel %vm974_vm13, %v985_v12, %v987_v23  ;;  %v7353_v40 = vmul.u32.u64.low %v7297_v28, %v984_v1  ;;  %v7354_v19 = vmul.u32.u64.high %v7297_v28, %v984_v1, %v7353_v40  ;;  %v1265_v51 = vsel %vm1264_vm5, %v7300_v34, 0 }
  0xca   : > { %v7363_v47 = vmul.u32.u64.low %v7297_v28, %v988_v7  ;;  %v7364_v48 = vmul.u32.u64.high %v7297_v28, %v988_v7, %v7363_v47  ;;  %v893_v22 = vsel %vm9977_vm2, %v876_v46, %v7223_v25  ;;  %v7369_v18 = vshrl.u32 %v1106_v6, 30  ;;  %v7399_v12 = vpop.permute.xlu0 %580 }
  0xcb   : > { %v980_v55 = vsel %vm974_vm13, %v977_v15, %v979_v0  ;;  %v1267_v60 = vand.u32 31, %v1265_v51  ;;  %v910_v13 = vsel %vm9976_vm3, %v893_v22, %v7233_v33  ;;  %v999_v2 = vadd.s32 1, %v7354_v19  ;;  %v7389_v33 = vpop.permute.xlu1 %582 }
  0xcc   : > { %v1108_v24 = vshll.u32 %v7369_v18, 30  ;;  %v9911_v34 = vand.u32 2147483647, %v7277_v5  ;;  %v996_v25 = vmul.u32 %v7297_v28, %v980_v55  ;;  %vm998_vm6 = vc.u32 %v7364_v48, %v7353_v40 }
  0xcd   : > { %v1268_v3 = vsub.s32 32, %v1267_v60  ;;  %v7384_v27 = vsel %vm9973_vm4, %v910_v13, %v813_v26  ;;  %v1000_v8 = vsel %vm998_vm6, %v999_v2, %v7354_v19  ;;  %v7396_v11 = vshrl.u32 %v1265_v51, 5 }
  0xce   : > { %v7386_v4 = vsub.s32 %v1105_v14, %v1108_v24  ;;  %v1001_v9 = vadd.s32 %v1000_v8, %v996_v25  ;;  %v1260_v28 = vand.u32 8388607, %v9911_v34  ;;  %v1152_v26 = vand.u32 2139095040, %v7384_v27 }
  0xcf   : > { %v1271_v63 = vshrl.u32 %v9921_v35, %v1268_v3  ;;  %v1274_v10 = vshrl.u32 %v9919_v41, %v1268_v3  ;;  %v1270_v15 = vshll.u32 %v9916_v29, %v1267_v60  ;;  %v1273_v20 = vshll.u32 %v9921_v35, %v1267_v60  ;;  %v7411_v13 = vpop.permute.xlu1 %642 }
  0xd0   : > { %v1111_v32 = vsub.s32 0, %v7386_v4  ;;  %v1002_v14 = vadd.s32 536870912, %v1001_v9  ;;  %v1277_v21 = vshrl.u32 %v9926_v62, %v1268_v3  ;;  %v1276_v1 = vshll.u32 %v9919_v41, %v1267_v60 }
  0xd1   : > { %v1279_v23 = vshll.u32 %v9926_v62, %v1267_v60  ;;  %v1280_v6 = vshrl.u32 %v9924_v16, %v1268_v3  ;;  %v1272_v19 = vor.u32 %v1271_v63, %v1270_v15  ;;  %v1275_v46 = vor.u32 %v1274_v10, %v1273_v20 }
  0xd2   : > { %v6129_v0 = vmin.u32 %v1111_v32, %v7386_v4  ;;  %v7408_v7 = vshrl.u32 %v1002_v14, 30  ;;  %v1278_v51 = vor.u32 %v1277_v21, %v1276_v1  ;;  %v1283_v55 = vshrl.u32 %v9913_v53, %v1268_v3  ;;  %v7416_v14 = vpop.permute.xlu0 %640 }
  0xd3   : > { %v1281_v22 = vor.u32 %v1280_v6, %v1279_v23  ;;  %v1261_v2 = vor.u32 8388608, %v1260_v28  ;;  %v1282_v8 = vshll.u32 %v9924_v16, %v1267_v60  ;;  %vm1288_vm7 = vcmp.lt.s32.totalorder %v7396_v11, 4  ;;  %v7433_v6 = vpop.permute.xlu1 %646 }
  0xd4   : > { %v1113_v47 = vclz %v6129_v0  ;;  %v1004_v24 = vshll.u32 %v7408_v7, 30  ;;  %v1153_v32 = vshrl.u32 %v1152_v26, 23  ;;  %vm1285_vm8 = vcmp.lt.s32.totalorder %v7396_v11, 1 }
  0xd5   : > { %vm1287_vm9 = vcmp.lt.s32.totalorder %v7396_v11, 3  ;;  %v1294_v10 = vsel %vm1288_vm7, %v1281_v22, 920167782  ;;  %v1284_v15 = vor.u32 %v1283_v55, %v1282_v8  ;;  %v1293_v28 = vsel %vm1285_vm8, %v1272_v19, %v1275_v46 }
  0xd6   : > { %v6130_v25 = vadd.s32 4294967294, %v1113_v47  ;;  %v7418_v63 = vsub.s32 %v1001_v9, %v1004_v24  ;;  %v1295_v60 = vsel %vm1287_vm9, %v1278_v51, %v1294_v10  ;;  %v1269_v9 = vshrl.u32 %v9916_v29, %v1268_v3 }
  0xd7   : > { %v1290_v21 = vsel %vm1288_vm7, %v1278_v51, 2102212464  ;;  %vm1286_vm11 = vcmp.lt.s32.totalorder %v7396_v11, 2  ;;  %v1301_v1 = vshll.u32 %v1261_v2, 8  ;;  %v6132_v23 = vadd.s32 4294967169, %v1153_v32  ;;  %v7446_v32 = vpop.permute.xlu0 %644 }
  0xd8   : > { %vm6131_vm10 = vcmp.lt.s32.totalorder %v6130_v25, 0  ;;  %v1007_v20 = vsub.s32 0, %v7418_v63  ;;  %v1289_v55 = vsel %vm1285_vm8, %v1269_v9, %v1272_v19  ;;  %v1296_v24 = vsel %vm1286_vm11, %v1293_v28, %v1295_v60 }
  0xd9   : > { %v1116_v26 = vsel %vm6131_vm10, 0, %v6130_v25  ;;  %v1297_v3 = vsel %vm1285_vm8, %v1275_v46, %v1278_v51  ;;  %v1291_v10 = vsel %vm1287_vm9, %v1275_v46, %v1290_v21  ;;  %v1298_v2 = vsel %vm1288_vm7, %v1284_v15, 1326507024 }
  0xda   : > { %v1121_v0 = vsub.s32 4294967266, %v1116_v26  ;;  %v6125_v47 = vmin.u32 %v1007_v20, %v7418_v63  ;;  %v1117_v25 = vsub.s32 32, %v1116_v26  ;;  %v1299_v19 = vsel %vm1287_vm9, %v1281_v22, %v1298_v2 }
  0xdb   : > { %v7450_v9 = vmul.u32.u64.low %v1301_v1, %v1296_v24  ;;  %v7451_v34 = vmul.u32.u64.high %v1301_v1, %v1296_v24, %v7450_v9  ;;  %v1101_v51 = vadd.s32 %v7327_v44, %v7324_v17  ;;  %v1300_v46 = vsel %vm1286_vm11, %v1297_v3, %v1299_v19  ;;  %v7464_v24 = vpop.permute.xlu1 %706 }
  0xdc   : > { %v1122_v8 = vadd.s32 127, %v1121_v0  ;;  %v1009_v20 = vclz %v6125_v47  ;;  %v7458_v21 = vmul.u32.u64.low %v1301_v1, %v1300_v46  ;;  %v7459_v15 = vmul.u32.u64.high %v1301_v1, %v1300_v46, %v7458_v21 }
  0xdd   : > { %v1159_v0 = vadd.s32 1, %v6132_v23  ;;  %v1131_v47 = vsub.s32 4, %v7369_v18  ;;  %v1292_v22 = vsel %vm1286_vm11, %v1289_v55, %v1291_v10  ;;  %v1119_v2 = vshrl.u32 %v1101_v51, %v1117_v25 }
  0xde   : > { %v1123_v28 = vshll.u32 %v1122_v8, 23  ;;  %v6126_v60 = vadd.s32 4294967294, %v1009_v20  ;;  %v1311_v17 = vadd.s32 1, %v7451_v34  ;;  %v9912_v44 = vand.u32 2147483647, %v7384_v27  ;;  %v7468_v8 = vpop.permute.xlu0 %704 }
  0xdf   : > { %vm1160_vm13 = vcmp.gt.s32.totalorder %v1159_v0, 0  ;;  %vm1047_vm14 = vcmp.lt.s32.totalorder %v7256_v49, 0  ;;  %v1118_v23 = vshll.u32 %v7386_v4, %v1116_v26  ;;  %vm943_vm15 = vcmp.lt.s32.totalorder %v7259_v50, 0 }
  0xe0   : > { %vm6127_vm12 = vcmp.lt.s32.totalorder %v6126_v60, 0  ;;  %v1161_v3 = vsel %vm1160_vm13, %v1159_v0, 0  ;;  %v1124_v20 = vor.u32 4788187, %v1123_v28  ;;  %v1308_v55 = vmul.u32 %v1301_v1, %v1292_v22 }
  0xe1   : > { %v1012_v11 = vsel %vm6127_vm12, 0, %v6126_v60  ;;  %vm1310_vm5 = vc.u32 %v7459_v15, %v7450_v9  ;;  %v1163_v25 = vand.u32 31, %v1161_v3  ;;  %v1120_v10 = vor.u32 %v1119_v2, %v1118_v23  ;;  %v7488_v60 = vpop.permute.xlu1 %710 }
  0xe2   : > { %v1132_v19 = vsel %vm1047_vm14, %v1131_v47, %v7369_v18  ;;  %v1027_v51 = vsub.s32 4, %v7408_v7  ;;  %v1312_v46 = vsel %vm1310_vm5, %v1311_v17, %v7451_v34  ;;  %vm7482_vm6 = vcmp.le.f32.partialorder %v1045_v52, 0.7853982 }
  0xe3   : > { %v1313_v26 = vadd.s32 %v1312_v46, %v1308_v55  ;;  %v1156_v1 = vand.u32 8388607, %v9912_v44  ;;  %v1164_v28 = vsub.s32 32, %v1163_v25  ;;  %v1125_v21 = vand.u32 2147483647, %v1124_v20 }
  0xe4   : > { %vm7492_vm7 = vcmp.le.f32.partialorder %v941_v54, 0.7853982  ;;  %v1017_v34 = vsub.s32 4294967266, %v1012_v11  ;;  %v7499_v52 = vsel %vm856_vm0, %v7139_v36, %v7357_v45  ;;  %v7504_v0 = vsel %vm856_vm0, %v7141_v37, %v7373_v61  ;;  %v7517_v36 = vpop.permute.xlu0 %708 }
  0xe5   : > { %v7508_v47 = vsel %vm7482_vm6, 0, %v1132_v19  ;;  %v997_v54 = vadd.s32 %v7353_v40, %v7364_v48  ;;  %v1314_v22 = vadd.s32 536870912, %v1313_v26  ;;  %v7515_v2 = vsel %vm856_vm0, %v7147_v38, %v7389_v33 }
  0xe6   : > { %v1127_v45 = vcvt.s32.f32 %v1120_v10  ;;  %v1013_v17 = vsub.s32 32, %v1012_v11  ;;  %v1028_v37 = vsel %vm943_vm15, %v1027_v51, %v7408_v7  ;;  %v1167_v61 = vshrl.u32 %v9921_v35, %v1164_v28 }
  0xe7   : > { %v7523_v23 = vshrl.u32 %v1314_v22, 30  ;;  %v1157_v20 = vor.u32 8388608, %v1156_v1  ;;  %v1170_v40 = vshrl.u32 %v9919_v41, %v1164_v28  ;;  %v1173_v48 = vshrl.u32 %v9926_v62, %v1164_v28  ;;  %v7532_v22 = vpop.permute.xlu1 %770 }
  0xe8   : > { %v1128_v55 = vmul.f32 %v1127_v45, %v1125_v21  ;;  %v1018_v38 = vadd.s32 127, %v1017_v34  ;;  %v1162_v33 = vshrl.u32 %v1161_v3, 5  ;;  %v1166_v19 = vshll.u32 %v9916_v29, %v1163_v25  ;;  %v7539_v42 = vpop.permute.xlu0 %768 }
  0xe9   : > { %v1316_v10 = vshll.u32 %v7523_v23, 30  ;;  %v1169_v46 = vshll.u32 %v9921_v35, %v1163_v25  ;;  %v1172_v7 = vshll.u32 %v9919_v41, %v1163_v25  ;;  %v1176_v51 = vshrl.u32 %v9924_v16, %v1164_v28 }
  0xea   : > { %v1015_v1 = vshrl.u32 %v997_v54, %v1013_v17  ;;  %v1168_v44 = vor.u32 %v1167_v61, %v1166_v19  ;;  %v1175_v53 = vshll.u32 %v9926_v62, %v1163_v25  ;;  %v1179_v21 = vshrl.u32 %v10000_v43, %v1164_v28 }
  0xeb   : > { %v7536_v34 = vsub.s32 %v1313_v26, %v1316_v10  ;;  %v1171_v3 = vor.u32 %v1170_v40, %v1169_v46  ;;  %v1174_v45 = vor.u32 %v1173_v48, %v1172_v7  ;;  %v1178_v29 = vshll.u32 %v9924_v16, %v1163_v25 }
  0xec   : > { %v7542_v41 = vadd.s32 3, %v7508_v47  ;;  %v1014_v35 = vshll.u32 %v7418_v63, %v1012_v11  ;;  %v1019_v31 = vshll.u32 %v1018_v38, 23  ;;  %v1177_v54 = vor.u32 %v1176_v51, %v1175_v53  ;;  %v7555_v11 = vpop.permute.xlu1 %774  ;;  %v7558_v51 = vpop.permute.xlu0 %772 }
  0xed   : > { %v7547_v17 = vsel %vm7492_vm7, 0, %v1028_v37  ;;  %v1319_v26 = vsub.s32 0, %v7536_v34  ;;  %v1180_v61 = vor.u32 %v1179_v21, %v1178_v29  ;;  %v1197_v40 = vshll.u32 %v1157_v20, 8 }
  0xee   : > { %v1129_v48 = vxor.u32 2147483648, %v1128_v55  ;;  %v7550_v19 = vor.u32 %v1015_v1, %v1014_v35  ;;  %vm1181_vm8 = vcmp.lt.s32.totalorder %v1162_v33, 1  ;;  %vm1184_vm9 = vcmp.lt.s32.totalorder %v1162_v33, 4 }
  0xef   : > { %v6137_v25 = vmin.u32 %v1319_v26, %v7536_v34  ;;  %v10001_v10 = vmov 683565275   ;;  %v1186_v63 = vsel %vm1184_vm9, %v1174_v45, 2102212464  ;;  %v1189_v53 = vsel %vm1181_vm8, %v1168_v44, %v1171_v3 }
  0xf0   : > { %v1165_v46 = vshrl.u32 %v10001_v10, %v1164_v28  ;;  %v1020_v37 = vor.u32 4788187, %v1019_v31  ;;  %vm1183_vm10 = vcmp.lt.s32.totalorder %v1162_v33, 3  ;;  %v1190_v38 = vsel %vm1184_vm9, %v1177_v54, 920167782 }
  0xf1   : > { %v1193_v29 = vsel %vm1181_vm8, %v1171_v3, %v1174_v45  ;;  %v1321_v20 = vclz %v6137_v25  ;;  %vm1182_vm11 = vcmp.lt.s32.totalorder %v1162_v33, 2  ;;  %v1191_v35 = vsel %vm1183_vm10, %v1174_v45, %v1190_v38 }
  0xf2   : > { %v1194_v7 = vsel %vm1184_vm9, %v1180_v61, 1326507024  ;;  %v1185_v1 = vsel %vm1181_vm8, %v1165_v46, %v1168_v44  ;;  %v1187_v21 = vsel %vm1183_vm10, %v1171_v3, %v1186_v63  ;;  %v1192_v28 = vsel %vm1182_vm11, %v1189_v53, %v1191_v35 }
  0xf3   : > { %v1195_v26 = vsel %vm1183_vm10, %v1177_v54, %v1194_v7  ;;  %v6138_v16 = vadd.s32 4294967294, %v1321_v20  ;;  %v7563_v31 = vmul.u32.u64.low %v1197_v40, %v1192_v28  ;;  %v7564_v30 = vmul.u32.u64.high %v1197_v40, %v1192_v28, %v7563_v31 }
  0xf4   : > { %v1196_v62 = vsel %vm1182_vm11, %v1193_v29, %v1195_v26  ;;  %v7568_v25 = vand.u32 3, %v7508_v47  ;;  %v1034_v45 = vadd.s32 3, %v7547_v17  ;;  %vm1255_vm12 = vcmp.lt.s32.totalorder %v7277_v5, 0  ;;  %v819_v47 = vpop.permute.xlu1 %818 }
  0xf5   : > { %v7572_v61 = vmul.u32.u64.low %v1197_v40, %v1196_v62  ;;  %v7573_v44 = vmul.u32.u64.high %v1197_v40, %v1196_v62, %v7572_v61  ;;  %vm6139_vm13 = vcmp.lt.s32.totalorder %v6138_v16, 0  ;;  %v1188_v3 = vsel %vm1182_vm11, %v1185_v1, %v1187_v21 }
  0xf6   : > { %10002 = vst [vmem:[#allocation9_spill] sm:$0xff] %v7568_v25  ;;  %v879_v54 = vsel %vm873_vm1, %v7499_v52, %v7411_v13  ;;  %v878_v46 = vsel %vm873_vm1, %v7504_v0, %v7416_v14  ;;  %v1130_v63 = vsel %vm1047_vm14, %v1129_v48, %v1128_v55  ;;  %v1023_v53 = vcvt.s32.f32 %v7550_v19  ;;  %v817_v0 = vpop.permute.xlu0 %816 }
  0xf7   : > { %v1324_v38 = vsel %vm6139_vm13, 0, %v6138_v16  ;;  %v896_v62 = vsel %vm9977_vm2, %v879_v54, %v7464_v24  ;;  %v1021_v33 = vand.u32 2147483647, %v1020_v37  ;;  %v10003_v29 = vand.u32 2147483647, %v7277_v5 }
  0xf8   : > { %v1329_v13 = vsub.s32 4294967266, %v1324_v38  ;;  %v1207_v14 = vadd.s32 1, %v7564_v30  ;;  %v913_v52 = vsel %vm9976_vm3, %v896_v62, %v7532_v22  ;;  %v1204_v55 = vmul.u32 %v1197_v40, %v1188_v3 }
  0xf9   : > { %vm7589_vm5 = vcmp.le.f32.partialorder %v10003_v29, 0.7853982  ;;  %vm1206_vm14 = vc.u32 %v7573_v44, %v7563_v31  ;;  %v895_v16 = vsel %vm9977_vm2, %v878_v46, %v7468_v8  ;;  %v7601_v24 = vsel %vm9973_vm4, %v913_v52, %v819_v47 }
  0xfa   : > { %10006 = vst [vmem:[#allocation10_spill] sm:$0xff] %v7601_v24  ;;  %v1325_v48 = vsub.s32 32, %v1324_v38  ;;  %v1339_v19 = vsub.s32 4, %v7523_v23  ;;  %v1208_v37 = vsel %vm1206_vm14, %v1207_v14, %v7564_v30  ;;  %v912_v35 = vsel %vm9976_vm3, %v895_v16, %v7539_v42 }
  0xfb   : > { %v1330_v22 = vadd.s32 127, %v1329_v13  ;;  %v1209_v7 = vadd.s32 %v1208_v37, %v1204_v55  ;;  %v1464_v40 = vand.u32 2139095040, %v7601_v24  ;;  %v7609_v1 = vsel %vm9973_vm4, %v912_v35, %v817_v0 }
  0xfc   : > { %10007 = vst [vmem:[#allocation11_spill] sm:$0xff] %v7609_v1  ;;  %v7612_v8 = vand.u32 3, %v7542_v41  ;;  %v7615_v21 = vand.u32 3, %v7547_v17  ;;  %v1309_v28 = vadd.s32 %v7450_v9, %v7459_v15  ;;  %v9930_v30 = vand.u32 2147483647, %v7601_v24 }
  0xfd   : > { %v1133_v42 = vsel %vm7482_vm6, %v7256_v49, %v1130_v63  ;;  %v1024_v26 = vmul.f32 %v1023_v53, %v1021_v33  ;;  %v1210_v61 = vadd.s32 536870912, %v1209_v7  ;;  %v1465_v3 = vshrl.u32 %v1464_v40, 23 }
  0xfe   : > { %10008 = vst [vmem:[#allocation12_spill] sm:$0xff] %v7612_v8  ;;  %10009 = vst [vmem:[#allocation13_spill] sm:$0xff] %v7615_v21  ;;  %v7623_v54 = vand.u32 3, %v1034_v45  ;;  %v1327_v46 = vshrl.u32 %v1309_v28, %v1325_v48  ;;  %v1340_v41 = vsel %vm1255_vm12, %v1339_v19, %v7523_v23  ;;  %v1360_v17 = vand.u32 2139095040, %v7609_v1  ;;  %v823_v48 = vpop.permute.xlu1 %822 }
  0xff   : > { %v1331_v47 = vshll.u32 %v1330_v22, 23  ;;  %v7629_v9 = vshrl.u32 %v1210_v61, 30  ;;  %v7634_v15 = vsel %vm856_vm0, %v7149_v39, %v7399_v12  ;;  %v6144_v4 = vadd.s32 4294967169, %v1465_v3 }
 0x100   : > { %6764 = vcosq.f32 %v1133_v42  ;;  %v1326_v45 = vshll.u32 %v7536_v34, %v1324_v38  ;;  %v1468_v63 = vand.u32 8388607, %v9930_v30  ;;  %v1361_v53 = vshrl.u32 %v1360_v17, 23 }
 0x101   : > { %v1025_v62 = vxor.u32 2147483648, %v1024_v26  ;;  %v1342_v23 = vsel %vm7589_vm5, 0, %v1340_v41  ;;  %v1212_v33 = vshll.u32 %v7629_v9, 30  ;;  %v1471_v29 = vadd.s32 1, %v6144_v4 }
 0x102   : > { %6766 = vsinq.f32 %v1133_v42  ;;  %v7642_v13 = vor.u32 %v1327_v46, %v1326_v45  ;;  %v881_v39 = vsel %vm873_vm1, %v7515_v2, %v7433_v6  ;;  %v6140_v12 = vadd.s32 4294967169, %v1361_v53 }
 0x103   : > { %v7647_v34 = vor.u32 4788187, %v1331_v47  ;;  %v7649_v38 = vsub.s32 %v1209_v7, %v1212_v33  ;;  %vm1472_vm6 = vcmp.gt.s32.totalorder %v1471_v29, 0  ;;  %v9929_v14 = vand.u32 2147483647, %v7609_v1 }
 0x104   : > { %v7652_v52 = vadd.s32 3, %v1342_v23  ;;  %v1469_v0 = vor.u32 8388608, %v1468_v63  ;;  %v1473_v55 = vsel %vm1472_vm6, %v1471_v29, 0  ;;  %v1367_v16 = vadd.s32 1, %v6140_v12 }
 0x105   : > { %v7656_v19 = vsel %vm943_vm15, %v1025_v62, %v1024_v26  ;;  %v7658_v37 = vand.u32 3, %v1342_v23  ;;  %v1215_v6 = vsub.s32 0, %v7649_v38  ;;  %v898_v2 = vsel %vm9977_vm2, %v881_v39, %v7488_v60 }
 0x106   : > { %v1205_v22 = vadd.s32 %v7563_v31, %v7573_v44  ;;  %v915_v7 = vsel %vm9976_vm3, %v898_v2, %v7555_v11  ;;  %v1475_v40 = vand.u32 31, %v1473_v55  ;;  %v1333_v28 = vand.u32 2147483647, %v7647_v34 }
 0x107   : > { %10010 = vst [vmem:[#allocation14_spill] sm:$0xff] %v7658_v37  ;;  %v6133_v42 = vmin.u32 %v1215_v6, %v7649_v38  ;;  %v7672_v26 = vand.u32 8388607, %v9929_v14  ;;  %v7675_v61 = vsel %vm9973_vm4, %v915_v7, %v823_v48  ;;  %v1474_v60 = vshrl.u32 %v1473_v55, 5 }
 0x108   : > { %10011 = vst [vmem:[#allocation15_spill] sm:$0xff] %v7675_v61  ;;  %v1476_v3 = vsub.s32 32, %v1475_v40  ;;  %v7677_v46 = vshll.u32 %v1469_v0, 8  ;;  %vm1368_vm15 = vcmp.gt.s32.totalorder %v1367_v16, 0  ;;  %v1478_v11 = vshll.u32 %v10001_v10, %v1475_v40 }
 0x109   : > { %v1217_v31 = vclz %v6133_v42  ;;  %v10012_v44 = vmov 2475754826   ;;  %v10013_v17 = vmov 2131351028   ;;  %v10015_v53 = vmov 2102212464  }
 0x10a   : > { %v1481_v41 = vshll.u32 %v10012_v44, %v1475_v40  ;;  %v1484_v47 = vshll.u32 %v10013_v17, %v1475_v40  ;;  %v7682_v4 = vpop.eup %6764  ;;  %v1479_v45 = vshrl.u32 %v10012_v44, %v1476_v3  ;;  %v1482_v63 = vshrl.u32 %v10013_v17, %v1476_v3 }
 0x10b   : > { %10014 = vst [vmem:[#allocation16_spill] sm:$0xff] %v7682_v4  ;;  %v1485_v62 = vshrl.u32 %v10015_v53, %v1476_v3  ;;  %v1487_v23 = vshll.u32 %v10015_v53, %v1475_v40  ;;  %v6134_v33 = vadd.s32 4294967294, %v1217_v31  ;;  %v10016_v29 = vmov 920167782  }
 0x10c   : > { %v1488_v39 = vshrl.u32 %v10016_v29, %v1476_v3  ;;  %v1490_v12 = vshll.u32 %v10016_v29, %v1475_v40  ;;  %v1491_v34 = vshrl.u32 %v10000_v43, %v1476_v3  ;;  %v7691_v0 = vpop.eup %6766  ;;  %v1477_v55 = vshrl.u32 %v10001_v10, %v1476_v3 }
 0x10d   : > { %10017 = vst [vmem:[#allocation17_spill] sm:$0xff] %v7691_v0  ;;  %v1480_v48 = vor.u32 %v1479_v45, %v1478_v11  ;;  %v1483_v6 = vor.u32 %v1482_v63, %v1481_v41  ;;  %v1486_v2 = vor.u32 %v1485_v62, %v1484_v47  ;;  %vm1151_vm8 = vcmp.lt.s32.totalorder %v7384_v27, 0 }
 0x10e   : > { %vm6135_vm9 = vcmp.lt.s32.totalorder %v6134_v33, 0  ;;  %v1489_v7 = vor.u32 %v1488_v39, %v1487_v23  ;;  %v1492_v42 = vor.u32 %v1491_v34, %v1490_v12  ;;  %vm1493_vm10 = vcmp.lt.s32.totalorder %v1474_v60, 1 }
 0x10f   : > { %v1220_v31 = vsel %vm6135_vm9, 0, %v6134_v33  ;;  %vm1495_vm11 = vcmp.lt.s32.totalorder %v1474_v60, 3  ;;  %vm1496_vm13 = vcmp.lt.s32.totalorder %v1474_v60, 4  ;;  %v1497_v14 = vsel %vm1493_vm10, %v1477_v55, %v1480_v48 }
 0x110   : > { %v1221_v40 = vsub.s32 32, %v1220_v31  ;;  %v1225_v30 = vsub.s32 4294967266, %v1220_v31  ;;  %v1498_v35 = vsel %vm1496_vm13, %v1486_v2, 2102212464  ;;  %v1501_v37 = vsel %vm1493_vm10, %v1480_v48, %v1483_v6 }
 0x111   : > { %v1499_v25 = vsel %vm1495_vm11, %v1483_v6, %v1498_v35  ;;  %v1502_v3 = vsel %vm1496_vm13, %v1489_v7, 920167782  ;;  %v1505_v11 = vsel %vm1493_vm10, %v1483_v6, %v1486_v2  ;;  %v1506_v41 = vsel %vm1496_vm13, %v1492_v42, 1326507024 }
 0x112   : > { %v1226_v47 = vadd.s32 127, %v1225_v30  ;;  %v1235_v45 = vsub.s32 4, %v7629_v9  ;;  %vm1494_vm14 = vcmp.lt.s32.totalorder %v1474_v60, 2  ;;  %v1503_v63 = vsel %vm1495_vm11, %v1486_v2, %v1502_v3 }
 0x113   : > { %v1223_v62 = vshrl.u32 %v1205_v22, %v1221_v40  ;;  %v1504_v23 = vsel %vm1494_vm14, %v1501_v37, %v1503_v63  ;;  %v1507_v33 = vsel %vm1495_vm11, %v1489_v7, %v1506_v41  ;;  %v1369_v39 = vsel %vm1368_vm15, %v1367_v16, 0 }
 0x114   : > { %v1227_v12 = vshll.u32 %v1226_v47, 23  ;;  %v1500_v34 = vsel %vm1494_vm14, %v1497_v14, %v1499_v25  ;;  %v1508_v55 = vsel %vm1494_vm14, %v1505_v11, %v1507_v33  ;;  %v7700_v48 = vshrl.u32 %v1369_v39, 5 }
 0x115   : > { %v7703_v35 = vmul.u32.u64.low %v7677_v46, %v1508_v55  ;;  %v7704_v6 = vmul.u32.u64.high %v7677_v46, %v1508_v55, %v7703_v35  ;;  %v7707_v30 = vmul.u32.u64.low %v7677_v46, %v1504_v23  ;;  %v7708_v42 = vmul.u32.u64.high %v7677_v46, %v1504_v23, %v7707_v30 }
 0x116   : > { %v7715_v37 = vsel %vm7492_vm7, %v7259_v50, %v7656_v19  ;;  %v1222_v25 = vshll.u32 %v7649_v38, %v1220_v31  ;;  %v1371_v14 = vand.u32 31, %v1369_v39  ;;  %v9933_v16 = vand.u32 2147483647, %v7675_v61 }
 0x117   : > { %v10018_v22 = vcvt.s32.f32 %v7642_v13  ;;  %v7726_v2 = vsel %vm1151_vm8, %v1235_v45, %v7629_v9  ;;  %v1365_v7 = vor.u32 8388608, %v7672_v26  ;;  %v1672_v18 = vand.u32 2139095040, %v7675_v61 }
 0x118   : > { %v1224_v19 = vor.u32 %v1223_v62, %v1222_v25  ;;  %v1228_v40 = vor.u32 4788187, %v1227_v12  ;;  %v1516_v38 = vmul.u32 %v7677_v46, %v1500_v34  ;;  %v1372_v31 = vsub.s32 32, %v1371_v14 }
 0x119   : > { %v7721_v60 = vmul.f32 %v10018_v22, %v1333_v28  ;;  %vm1518_vm7 = vc.u32 %v7704_v6, %v7707_v30  ;;  %v1519_v13 = vadd.s32 1, %v7708_v42  ;;  %v1374_v28 = vshll.u32 %v10001_v10, %v1371_v14 }
 0x11a   : > { %vm1389_vm6 = vcmp.lt.s32.totalorder %v7700_v48, 1  ;;  %v1375_v9 = vshrl.u32 %v10012_v44, %v1372_v31  ;;  %v1377_v26 = vshll.u32 %v10012_v44, %v1371_v14  ;;  %v1378_v3 = vshrl.u32 %v10013_v17, %v1372_v31 }
 0x11b   : > { %v1380_v11 = vshll.u32 %v10013_v17, %v1371_v14  ;;  %v1520_v46 = vsel %vm1518_vm7, %v1519_v13, %v7708_v42  ;;  %v1381_v41 = vshrl.u32 %v10015_v53, %v1372_v31  ;;  %v1383_v47 = vshll.u32 %v10015_v53, %v1371_v14 }
 0x11c   : > { %v1384_v45 = vshrl.u32 %v10016_v29, %v1372_v31  ;;  %v1521_v63 = vadd.s32 %v1520_v46, %v1516_v38  ;;  %v1376_v62 = vor.u32 %v1375_v9, %v1374_v28  ;;  %v1379_v23 = vor.u32 %v1378_v3, %v1377_v26 }
 0x11d   : > { %vm1390_vm15 = vcmp.lt.s32.totalorder %v7700_v48, 2  ;;  %v1382_v33 = vor.u32 %v1381_v41, %v1380_v11  ;;  %v1386_v12 = vshll.u32 %v10016_v29, %v1371_v14  ;;  %v1387_v34 = vshrl.u32 %v10000_v43, %v1372_v31 }
 0x11e   : > { %v1385_v39 = vor.u32 %v1384_v45, %v1383_v47  ;;  %v10019_v55 = vand.u32 2147483647, %v7384_v27  ;;  %v1522_v42 = vadd.s32 536870912, %v1521_v63  ;;  %vm1391_vm10 = vcmp.lt.s32.totalorder %v7700_v48, 3 }
 0x11f   : > { %vm1392_vm11 = vcmp.lt.s32.totalorder %v7700_v48, 4  ;;  %v1397_v25 = vsel %vm1389_vm6, %v1376_v62, %v1379_v23  ;;  %v1388_v22 = vor.u32 %v1387_v34, %v1386_v12  ;;  %v1673_v13 = vshrl.u32 %v1672_v18, 23 }
 0x120   : > { %vm7749_vm9 = vcmp.le.f32.partialorder %v10019_v55, 0.7853982  ;;  %v1394_v14 = vsel %vm1392_vm11, %v1382_v33, 2102212464  ;;  %v1398_v38 = vsel %vm1392_vm11, %v1385_v39, 920167782  ;;  %v1373_v26 = vshrl.u32 %v10001_v10, %v1372_v31 }
 0x121   : > { %v1229_v28 = vand.u32 2147483647, %v1228_v40  ;;  %v7761_v9 = vshrl.u32 %v1522_v42, 30  ;;  %v1399_v3 = vsel %vm1391_vm10, %v1382_v33, %v1398_v38  ;;  %v1231_v11 = vcvt.s32.f32 %v1224_v19 }
 0x122   : > { %v1400_v46 = vsel %vm1390_vm15, %v1397_v25, %v1399_v3  ;;  %v1401_v41 = vsel %vm1389_vm6, %v1379_v23, %v1382_v33  ;;  %v1405_v47 = vshll.u32 %v1365_v7, 8  ;;  %v1393_v18 = vsel %vm1389_vm6, %v1373_v26, %v1376_v62  ;;  %v821_v7 = vpop.permute.xlu0 %820 }
 0x123   : > { %v1524_v45 = vshll.u32 %v7761_v9, 30  ;;  %v1395_v40 = vsel %vm1391_vm10, %v1379_v23, %v1394_v14  ;;  %v1402_v31 = vsel %vm1392_vm11, %v1388_v22, 1326507024  ;;  %v6152_v33 = vadd.s32 4294967169, %v1673_v13  ;;  %v7788_v23 = vpop.permute.xlu1 %586 }
 0x124   : > { %v1403_v19 = vsel %vm1391_vm10, %v1385_v39, %v1402_v31  ;;  %v7779_v12 = vmul.u32.u64.low %v1405_v47, %v1400_v46  ;;  %v7780_v34 = vmul.u32.u64.high %v1405_v47, %v1400_v46, %v7779_v12  ;;  %v1337_v55 = vxor.u32 2147483648, %v7721_v60 }
 0x125   : > { %v1232_v42 = vmul.f32 %v1231_v11, %v1229_v28  ;;  %v7784_v25 = vsub.s32 %v1521_v63, %v1524_v45  ;;  %v1404_v62 = vsel %vm1390_vm15, %v1401_v41, %v1403_v19  ;;  %v1676_v39 = vand.u32 8388607, %v9933_v16 }
 0x126   : > { %v7790_v22 = vmul.u32.u64.low %v1405_v47, %v1404_v62  ;;  %v7791_v14 = vmul.u32.u64.high %v1405_v47, %v1404_v62, %v7790_v22  ;;  %v1679_v38 = vadd.s32 1, %v6152_v33  ;;  %6768 = vcosq.f32 %v7715_v37 }
 0x127   : > { %v7797_v13 = vand.u32 3, %v7652_v52  ;;  %v1527_v63 = vsub.s32 0, %v7784_v25  ;;  %v1396_v28 = vsel %vm1390_vm15, %v1393_v18, %v1395_v40  ;;  %v7805_v26 = vsel %vm7749_vm9, 0, %v7726_v2  ;;  %v7817_v40 = vpop.permute.xlu0 %584  ;;  %v7823_v31 = vpop.permute.xlu1 %590 }
 0x128   : > { %v880_v3 = vsel %vm873_vm1, %v7634_v15, %v7446_v32  ;;  %v1415_v11 = vadd.s32 1, %v7780_v34  ;;  %vm1680_vm13 = vcmp.gt.s32.totalorder %v1679_v38, 0  ;;  %v1338_v52 = vsel %vm1255_vm12, %v1337_v55, %v7721_v60 }
 0x129   : > { %10022 = vst [vmem:[#allocation18_spill] sm:$0xff] %v7797_v13  ;;  %v1233_v46 = vxor.u32 2147483648, %v1232_v42  ;;  %v6145_v48 = vmin.u32 %v1527_v63, %v7784_v25  ;;  %v1681_v41 = vsel %vm1680_vm13, %v1679_v38, 0  ;;  %v1412_v45 = vmul.u32 %v1405_v47, %v1396_v28 }
 0x12a   : > { %vm1414_vm14 = vc.u32 %v7791_v14, %v7779_v12  ;;  %v1677_v2 = vor.u32 8388608, %v1676_v39  ;;  %v1683_v18 = vand.u32 31, %v1681_v41  ;;  %6770 = vsinq.f32 %v7715_v37 }
 0x12b   : > { %v897_v32 = vsel %vm9977_vm2, %v880_v3, %v7517_v36  ;;  %v1529_v15 = vclz %v6145_v48  ;;  %v1416_v60 = vsel %vm1414_vm14, %v1415_v11, %v7780_v34  ;;  %v7826_v19 = vadd.s32 3, %v7805_v26  ;;  %v7854_v11 = vpop.permute.xlu0 %588 }
 0x12c   : > { %v914_v47 = vsel %vm9976_vm3, %v897_v32, %v7558_v51  ;;  %v1417_v33 = vadd.s32 %v1416_v60, %v1412_v45  ;;  %v1684_v55 = vsub.s32 32, %v1683_v18  ;;  %v7833_v37 = vsel %vm7589_vm5, %v7277_v5, %v1338_v52 }
 0x12d   : > { %v7837_v36 = vsel %vm1151_vm8, %v1233_v46, %v1232_v42  ;;  %v1517_v34 = vadd.s32 %v7707_v30, %v7704_v6  ;;  %v6146_v62 = vadd.s32 4294967294, %v1529_v15  ;;  %v7842_v38 = vshll.u32 %v1677_v2, 8  ;;  %v7860_v2 = vpop.permute.xlu1 %650 }
 0x12e   : > { %v1418_v39 = vadd.s32 536870912, %v1417_v33  ;;  %v7845_v51 = vsel %vm9973_vm4, %v914_v47, %v821_v7  ;;  %v1686_v20 = vshll.u32 %v10001_v10, %v1683_v18  ;;  %v1687_v63 = vshrl.u32 %v10012_v44, %v1684_v55 }
 0x12f   : > { %10023 = vst [vmem:[#allocation19_spill] sm:$0xff] %v7845_v51  ;;  %vm6147_vm12 = vcmp.lt.s32.totalorder %v6146_v62, 0  ;;  %v1690_v42 = vshrl.u32 %v10013_v17, %v1684_v55  ;;  %v1693_v6 = vshrl.u32 %v10015_v53, %v1684_v55  ;;  %v1696_v30 = vshrl.u32 %v10016_v29, %v1684_v55 }
 0x130   : > { %v1532_v28 = vsel %vm6147_vm12, 0, %v6146_v62  ;;  %v7850_v3 = vshrl.u32 %v1418_v39, 30  ;;  %v7856_v52 = vpop.eup %6768  ;;  %v1689_v48 = vshll.u32 %v10012_v44, %v1683_v18  ;;  %v1699_v45 = vshrl.u32 %v10000_v43, %v1684_v55 }
 0x131   : > { %v1533_v7 = vsub.s32 32, %v1532_v28  ;;  %v1537_v46 = vsub.s32 4294967266, %v1532_v28  ;;  %v1682_v15 = vshrl.u32 %v1681_v41, 5  ;;  %v1692_v60 = vshll.u32 %v10013_v17, %v1683_v18 }
 0x132   : > { %v1420_v32 = vshll.u32 %v7850_v3, 30  ;;  %v1695_v47 = vshll.u32 %v10015_v53, %v1683_v18  ;;  %v1688_v39 = vor.u32 %v1687_v63, %v1686_v20  ;;  %v1691_v16 = vor.u32 %v1690_v42, %v1689_v48 }
 0x133   : > { %v1538_v62 = vadd.s32 127, %v1537_v46  ;;  %v1698_v22 = vshll.u32 %v10016_v29, %v1683_v18  ;;  %vm1463_vm5 = vcmp.lt.s32.totalorder %v7601_v24, 0  ;;  %v1535_v21 = vshrl.u32 %v1517_v34, %v1533_v7 }
 0x134   : > { %v7867_v5 = vsub.s32 %v1417_v33, %v1420_v32  ;;  %v1694_v13 = vor.u32 %v1693_v6, %v1692_v60  ;;  %v1697_v4 = vor.u32 %v1696_v30, %v1695_v47  ;;  %v7869_v49 = vpop.eup %6770  ;;  %v1534_v41 = vshll.u32 %v7784_v25, %v1532_v28  ;;  %v7876_v33 = vpop.permute.xlu0 %648 }
 0x135   : > { %v1539_v8 = vshll.u32 %v1538_v62, 23  ;;  %vm1359_vm8 = vcmp.lt.s32.totalorder %v7609_v1, 0  ;;  %v1685_v46 = vshrl.u32 %v10001_v10, %v1684_v55  ;;  %v1700_v20 = vor.u32 %v1699_v45, %v1698_v22  ;;  %v7885_v22 = vpop.permute.xlu1 %654 }
 0x136   : > { %v1423_v63 = vsub.s32 0, %v7867_v5  ;;  %v1443_v18 = vsub.s32 4, %v7850_v3  ;;  %vm1701_vm7 = vcmp.lt.s32.totalorder %v1682_v15, 1  ;;  %vm1702_vm6 = vcmp.lt.s32.totalorder %v1682_v15, 2 }
 0x137   : > { %v10024_v34 = vand.u32 2147483647, %v7601_v24  ;;  %v1540_v25 = vor.u32 4788187, %v1539_v8  ;;  %vm1703_vm10 = vcmp.lt.s32.totalorder %v1682_v15, 3  ;;  %vm1704_vm11 = vcmp.lt.s32.totalorder %v1682_v15, 4 }
 0x138   : > { %v1709_v55 = vsel %vm1701_vm7, %v1688_v39, %v1691_v16  ;;  %v1536_v28 = vor.u32 %v1535_v21, %v1534_v41  ;;  %v10027_v6 = vand.u32 2147483647, %v7609_v1  ;;  %v6141_v7 = vmin.u32 %v1423_v63, %v7867_v5 }
 0x139   : > { %vm7880_vm15 = vcmp.le.f32.partialorder %v10024_v34, 0.7853982  ;;  %v1706_v48 = vsel %vm1704_vm11, %v1694_v13, 2102212464  ;;  %v1710_v45 = vsel %vm1704_vm11, %v1697_v4, 920167782  ;;  %v1705_v32 = vsel %vm1701_vm7, %v1685_v46, %v1688_v39 }
 0x13a   : > { %vm7889_vm13 = vcmp.le.f32.partialorder %v10027_v6, 0.7853982  ;;  %v1711_v8 = vsel %vm1703_vm10, %v1694_v13, %v1710_v45  ;;  %v1713_v60 = vsel %vm1701_vm7, %v1691_v16, %v1694_v13  ;;  %v1714_v47 = vsel %vm1704_vm11, %v1700_v20, 1326507024 }
 0x13b   : > { %v1541_v62 = vand.u32 2147483647, %v1540_v25  ;;  %v1425_v34 = vclz %v6141_v7  ;;  %v1712_v21 = vsel %vm1702_vm6, %v1709_v55, %v1711_v8  ;;  %v1715_v41 = vsel %vm1703_vm10, %v1697_v4, %v1714_v47  ;;  %v7910_v25 = vpop.permute.xlu0 %652  ;;  %v7923_v7 = vpop.permute.xlu1 %714 }
 0x13c   : > { %v1707_v6 = vsel %vm1703_vm10, %v1691_v16, %v1706_v48  ;;  %v1716_v50 = vsel %vm1702_vm6, %v1713_v60, %v1715_v41  ;;  %v7902_v63 = vmul.u32.u64.low %v7842_v38, %v1712_v21  ;;  %v7903_v0 = vmul.u32.u64.high %v7842_v38, %v1712_v21, %v7902_v63 }
 0x13d   : > { %v1543_v39 = vcvt.s32.f32 %v1536_v28  ;;  %v6142_v46 = vadd.s32 4294967294, %v1425_v34  ;;  %v7907_v13 = vmul.u32.u64.low %v7842_v38, %v1716_v50  ;;  %v7908_v20 = vmul.u32.u64.high %v7842_v38, %v1716_v50, %v7907_v13 }
 0x13e   : > { %6772 = vcosq.f32 %v7833_v37  ;;  %v1237_v4 = vsel %vm7749_vm9, %v7384_v27, %v7837_v36  ;;  %v10030_v16 = vsub.s32 4, %v7761_v9  ;;  %v1568_v28 = vand.u32 2139095040, %v7845_v51 }
 0x13f   : > { %v1544_v50 = vmul.f32 %v1543_v39, %v1541_v62  ;;  %vm6143_vm14 = vcmp.lt.s32.totalorder %v6142_v46, 0  ;;  %v1444_v48 = vsel %vm1359_vm8, %v1443_v18, %v7850_v3  ;;  %v1708_v45 = vsel %vm1702_vm6, %v1705_v32, %v1707_v6 }
 0x140   : > { %v1548_v55 = vsel %vm1463_vm5, %v10030_v16, %v7761_v9  ;;  %v1428_v35 = vsel %vm6143_vm14, 0, %v6142_v46  ;;  %v1727_v36 = vadd.s32 1, %v7903_v0  ;;  %v9945_v8 = vand.u32 2147483647, %v7845_v51  ;;  %v7947_v46 = vpop.permute.xlu1 %718 }
 0x141   : > { %v1569_v60 = vshrl.u32 %v1568_v28, 23  ;;  %6774 = vsinq.f32 %v7833_v37  ;;  %v7933_v9 = vand.u32 3, %v7805_v26  ;;  %v1550_v47 = vsel %vm7880_vm15, 0, %v1548_v55  ;;  %v7943_v26 = vpop.permute.xlu0 %712 }
 0x142   : > { %v1433_v62 = vsub.s32 4294967266, %v1428_v35  ;;  %v1446_v3 = vsel %vm7889_vm13, 0, %v1444_v48  ;;  %v1724_v15 = vmul.u32 %v7842_v38, %v1708_v45  ;;  %vm1726_vm9 = vc.u32 %v7908_v20, %v7902_v63 }
 0x143   : > { %v6148_v18 = vadd.s32 4294967169, %v1569_v60  ;;  %6776 = vcosq.f32 %v1237_v4  ;;  %v1545_v32 = vxor.u32 2147483648, %v1544_v50  ;;  %v1728_v37 = vsel %vm1726_vm9, %v1727_v36, %v7903_v0 }
 0x144   : > { %v1434_v34 = vadd.s32 127, %v1433_v62  ;;  %v1429_v21 = vsub.s32 32, %v1428_v35  ;;  %v1729_v41 = vadd.s32 %v1728_v37, %v1724_v15  ;;  %v1572_v6 = vand.u32 8388607, %v9945_v8 }
 0x145   : > { %v1575_v39 = vadd.s32 1, %v6148_v18  ;;  %6778 = vsinq.f32 %v1237_v4  ;;  %v7950_v38 = vand.u32 3, %v7826_v19  ;;  %v1554_v13 = vadd.s32 3, %v1550_v47 }
 0x146   : > { %v1450_v16 = vadd.s32 3, %v1446_v3  ;;  %v1413_v55 = vadd.s32 %v7779_v12, %v7791_v14  ;;  %v1435_v0 = vshll.u32 %v1434_v34, 23  ;;  %v1730_v28 = vadd.s32 536870912, %v1729_v41 }
 0x147   : > { %vm1576_vm12 = vcmp.gt.s32.totalorder %v1575_v39, 0  ;;  %v1546_v48 = vsel %vm1463_vm5, %v1545_v32, %v1544_v50  ;;  %v7956_v45 = vand.u32 3, %v1550_v47  ;;  %v866_v4 = vsel %vm856_vm0, %v7175_v56, %v7788_v23  ;;  %v7976_v47 = vpop.permute.xlu0 %716 }
 0x148   : > { %v1577_v36 = vsel %vm1576_vm12, %v1575_v39, 0  ;;  %v7961_v19 = vpop.eup %6772  ;;  %v1431_v60 = vshrl.u32 %v1413_v55, %v1429_v21  ;;  %v7963_v62 = vshrl.u32 %v1730_v28, 30  ;;  %v1573_v15 = vor.u32 8388608, %v1572_v6  ;;  %v779_v21 = vpop.permute.xlu1 %778 }
 0x149   : > { %10031 = vst [vmem:[#allocation20_spill] sm:$0xff] %v7956_v45  ;;  %v1579_v12 = vand.u32 31, %v1577_v36  ;;  %v7965_v14 = vand.u32 3, %v1554_v13  ;;  %v7967_v18 = vand.u32 3, %v1450_v16  ;;  %v7969_v34 = vand.u32 3, %v1446_v3 }
 0x14a   : > { %v7974_v50 = vsel %vm856_vm0, %v7177_v57, %v7817_v40  ;;  %v1430_v56 = vshll.u32 %v7867_v5, %v1428_v35  ;;  %v1436_v23 = vor.u32 4788187, %v1435_v0  ;;  %v1732_v32 = vshll.u32 %v7963_v62, 30 }
 0x14b   : > { %10032 = vst [vmem:[#allocation21_spill] sm:$0xff] %v7965_v14  ;;  %10033 = vst [vmem:[#allocation22_spill] sm:$0xff] %v7969_v34  ;;  %v1580_v37 = vsub.s32 32, %v1579_v12  ;;  %v7980_v6 = vpop.eup %6774  ;;  %v7985_v3 = vsel %vm7880_vm15, %v7601_v24, %v1546_v48  ;;  %v7989_v57 = vadd.s32 %v7902_v63, %v7908_v20  ;;  %v7994_v5 = vsel %vm856_vm0, %v7183_v58, %v7823_v31 }
 0x14c   : > { %v883_v40 = vsel %vm873_vm1, %v866_v4, %v7860_v2  ;;  %v1432_v35 = vor.u32 %v1431_v60, %v1430_v56  ;;  %v7998_v39 = vsub.s32 %v1729_v41, %v1732_v32  ;;  %v8001_v42 = vshll.u32 %v1573_v15, 8  ;;  %v777_v56 = vpop.permute.xlu0 %776  ;;  %v8018_v34 = vpop.permute.xlu1 %782 }
 0x14d   : > { %v1583_v13 = vshrl.u32 %v10012_v44, %v1580_v37  ;;  %v8003_v16 = vpop.eup %6776  ;;  %v1582_v63 = vshll.u32 %v10001_v10, %v1579_v12  ;;  %v1585_v20 = vshll.u32 %v10012_v44, %v1579_v12  ;;  %v1586_v55 = vshrl.u32 %v10013_v17, %v1580_v37 }
 0x14e   : > { %v1589_v58 = vshrl.u32 %v10015_v53, %v1580_v37  ;;  %v1437_v31 = vand.u32 2147483647, %v1436_v23  ;;  %v1735_v2 = vsub.s32 0, %v7998_v39  ;;  %v1578_v0 = vshrl.u32 %v1577_v36, 5 }
 0x14f   : > { %v1588_v41 = vshll.u32 %v10013_v17, %v1579_v12  ;;  %v8011_v28 = vpop.eup %6778  ;;  %v1584_v48 = vor.u32 %v1583_v13, %v1582_v63  ;;  %v1587_v4 = vor.u32 %v1586_v55, %v1585_v20  ;;  %v1591_v60 = vshll.u32 %v10015_v53, %v1579_v12 }
 0x150   : > { %v1592_v15 = vshrl.u32 %v10016_v29, %v1580_v37  ;;  %v1439_v32 = vcvt.s32.f32 %v1432_v35  ;;  %v6153_v8 = vmin.u32 %v1735_v2, %v7998_v39  ;;  %v900_v23 = vsel %vm9977_vm2, %v883_v40, %v7923_v7 }
 0x151   : > { %v1590_v45 = vor.u32 %v1589_v58, %v1588_v41  ;;  %v1594_v24 = vshll.u32 %v10016_v29, %v1579_v12  ;;  %v1595_v13 = vshrl.u32 %v10000_v43, %v1580_v37  ;;  %v917_v63 = vsel %vm9976_vm3, %v900_v23, %v779_v21  ;;  %v827_v23 = vpop.permute.xlu1 %826 }
 0x152   : > { %v1593_v36 = vor.u32 %v1592_v15, %v1591_v60  ;;  %v1440_v20 = vmul.f32 %v1439_v32, %v1437_v31  ;;  %v1737_v55 = vclz %v6153_v8  ;;  %v1581_v14 = vshrl.u32 %v10001_v10, %v1580_v37  ;;  %v8026_v31 = vpop.permute.xlu0 %780 }
 0x153   : > { %vm1597_vm5 = vcmp.lt.s32.totalorder %v1578_v0, 1  ;;  %vm1671_vm7 = vcmp.lt.s32.totalorder %v7675_v61, 0  ;;  %v1596_v35 = vor.u32 %v1595_v13, %v1594_v24  ;;  %vm1599_vm6 = vcmp.lt.s32.totalorder %v1578_v0, 3 }
 0x154   : > { %vm1600_vm15 = vcmp.lt.s32.totalorder %v1578_v0, 4  ;;  %v1605_v7 = vsel %vm1597_vm5, %v1584_v48, %v1587_v4  ;;  %v6154_v40 = vadd.s32 4294967294, %v1737_v55  ;;  %v1609_v41 = vsel %vm1597_vm5, %v1587_v4, %v1590_v45 }
 0x155   : > { %v1602_v58 = vsel %vm1600_vm15, %v1590_v45, 2102212464  ;;  %v1606_v2 = vsel %vm1600_vm15, %v1593_v36, 920167782  ;;  %vm1598_vm10 = vcmp.lt.s32.totalorder %v1578_v0, 2  ;;  %v1601_v12 = vsel %vm1597_vm5, %v1581_v14, %v1584_v48 }
 0x156   : > { %v1607_v60 = vsel %vm1599_vm6, %v1590_v45, %v1606_v2  ;;  %v1610_v21 = vsel %vm1600_vm15, %v1596_v35, 1326507024  ;;  %v10034_v8 = vand.u32 2147483647, %v7675_v61  ;;  %vm6155_vm14 = vcmp.lt.s32.totalorder %v6154_v40, 0 }
 0x157   : > { %v1603_v24 = vsel %vm1599_vm6, %v1587_v4, %v1602_v58  ;;  %v1608_v15 = vsel %vm1598_vm10, %v1605_v7, %v1607_v60  ;;  %v1611_v32 = vsel %vm1599_vm6, %v1593_v36, %v1610_v21  ;;  %v1740_v14 = vsel %vm6155_vm14, 0, %v6154_v40 }
 0x158   : > { %vm8030_vm11 = vcmp.le.f32.partialorder %v10034_v8, 0.7853982  ;;  %v1612_v45 = vsel %vm1598_vm10, %v1609_v41, %v1611_v32  ;;  %v8039_v48 = vmul.u32.u64.low %v8001_v42, %v1608_v15  ;;  %v8040_v13 = vmul.u32.u64.high %v8001_v42, %v1608_v15, %v8039_v48 }
 0x159   : > { %v1441_v55 = vxor.u32 2147483648, %v1440_v20  ;;  %v1741_v35 = vsub.s32 32, %v1740_v14  ;;  %v1745_v2 = vsub.s32 4294967266, %v1740_v14  ;;  %v1755_v8 = vsub.s32 4, %v7963_v62 }
 0x15a   : > { %v8045_v4 = vmul.u32.u64.low %v8001_v42, %v1612_v45  ;;  %v8046_v58 = vmul.u32.u64.high %v8001_v42, %v1612_v45, %v8045_v4  ;;  %v882_v36 = vsel %vm873_vm1, %v7974_v50, %v7876_v33  ;;  %v8052_v7 = vsel %vm9973_vm4, %v917_v63, %v827_v23  ;;  %v825_v33 = vpop.permute.xlu0 %824 }
 0x15b   : > { %10037 = vst [vmem:[#allocation23_spill] sm:$0xff] %v8052_v7  ;;  %v1743_v40 = vshrl.u32 %v7989_v57, %v1741_v35  ;;  %v1746_v41 = vadd.s32 127, %v1745_v2  ;;  %v1604_v60 = vsel %vm1598_vm10, %v1601_v12, %v1603_v24  ;;  %v899_v21 = vsel %vm9977_vm2, %v882_v36, %v7943_v26 }
 0x15c   : > { %v1742_v15 = vshll.u32 %v7998_v39, %v1740_v14  ;;  %v1623_v32 = vadd.s32 1, %v8040_v13  ;;  %v916_v45 = vsel %vm9976_vm3, %v899_v21, %v777_v56  ;;  %v1880_v4 = vand.u32 2139095040, %v8052_v7 }
 0x15d   : > { %v1442_v50 = vsel %vm1359_vm8, %v1441_v55, %v1440_v20  ;;  %v1747_v63 = vshll.u32 %v1746_v41, 23  ;;  %v1756_v57 = vsel %vm1671_vm7, %v1755_v8, %v7963_v62  ;;  %v9952_v0 = vand.u32 2147483647, %v8052_v7 }
 0x15e   : > { %v1744_v26 = vor.u32 %v1743_v40, %v1742_v15  ;;  %v1620_v39 = vmul.u32 %v8001_v42, %v1604_v60  ;;  %vm1622_vm9 = vc.u32 %v8046_v58, %v8039_v48  ;;  %v1881_v56 = vshrl.u32 %v1880_v4, 23  ;;  %v831_v60 = vpop.permute.xlu1 %830 }
 0x15f   : > { %v1748_v12 = vor.u32 4788187, %v1747_v63  ;;  %v1624_v24 = vsel %vm1622_vm9, %v1623_v32, %v8040_v13  ;;  %v867_v20 = vsel %vm856_vm0, %v7185_v59, %v7854_v11  ;;  %v8076_v23 = vsel %vm9973_vm4, %v916_v45, %v825_v33 }
 0x160   : > { %6780 = vcosq.f32 %v7985_v3  ;;  %v1758_v62 = vsel %vm8030_vm11, 0, %v1756_v57  ;;  %v1625_v42 = vadd.s32 %v1624_v24, %v1620_v39  ;;  %v6160_v14 = vadd.s32 4294967169, %v1881_v56 }
 0x161   : > { %v1445_v55 = vsel %vm7889_vm13, %v7609_v1, %v1442_v50  ;;  %v1749_v35 = vand.u32 2147483647, %v1748_v12  ;;  %v885_v13 = vsel %vm873_vm1, %v7994_v5, %v7885_v22  ;;  %v1884_v59 = vand.u32 8388607, %v9952_v0 }
 0x162   : > { %v1751_v11 = vcvt.s32.f32 %v1744_v26  ;;  %v1626_v2 = vadd.s32 536870912, %v1625_v42  ;;  %v1887_v8 = vadd.s32 1, %v6160_v14  ;;  %v1776_v36 = vand.u32 2139095040, %v8076_v23 }
 0x163   : > { %6782 = vsinq.f32 %v7985_v3  ;;  %v1762_v40 = vadd.s32 3, %v1758_v62  ;;  %v884_v30 = vsel %vm873_vm1, %v867_v20, %v7910_v25  ;;  %v902_v41 = vsel %vm9977_vm2, %v885_v13, %v7947_v46 }
 0x164   : > { %6784 = vcosq.f32 %v1445_v55  ;;  %v1752_v22 = vmul.f32 %v1751_v11, %v1749_v35  ;;  %v8095_v5 = vshrl.u32 %v1626_v2, 30  ;;  %vm1888_vm8 = vcmp.gt.s32.totalorder %v1887_v8, 0 }
 0x165   : > { %v919_v21 = vsel %vm9976_vm3, %v902_v41, %v8018_v34  ;;  %v1885_v15 = vor.u32 8388608, %v1884_v59  ;;  %v1889_v32 = vsel %vm1888_vm8, %v1887_v8, 0  ;;  %v9951_v3 = vand.u32 2147483647, %v8076_v23 }
 0x166   : > { %v1628_v45 = vshll.u32 %v8095_v5, 30  ;;  %v1891_v4 = vand.u32 31, %v1889_v32  ;;  %v1777_v25 = vshrl.u32 %v1776_v36, 23  ;;  %v8102_v33 = vsel %vm9973_vm4, %v919_v21, %v831_v60 }
 0x167   : > { %6786 = vsinq.f32 %v1445_v55  ;;  %v8104_v46 = vand.u32 3, %v1762_v40  ;;  %v8106_v50 = vand.u32 3, %v1758_v62  ;;  %v901_v63 = vsel %vm9977_vm2, %v884_v30, %v7976_v47 }
 0x168   : > { %v1753_v34 = vxor.u32 2147483648, %v1752_v22  ;;  %v8112_v57 = vadd.s32 %v8039_v48, %v8046_v58  ;;  %v8114_v26 = vsub.s32 %v1625_v42, %v1628_v45  ;;  %v1892_v39 = vsub.s32 32, %v1891_v4 }
 0x169   : > { %10038 = vst [vmem:[#allocation24_spill] sm:$0xff] %v8104_v46  ;;  %10039 = vst [vmem:[#allocation25_spill] sm:$0xff] %v8106_v50  ;;  %v8116_v56 = vshll.u32 %v1885_v15, 8  ;;  %v8120_v12 = vand.u32 8388607, %v9951_v3  ;;  %v2088_v20 = vand.u32 2139095040, %v8102_v33  ;;  %v1894_v14 = vshll.u32 %v10001_v10, %v1891_v4 }
 0x16a   : > { %v8124_v62 = vpop.eup %6780  ;;  %v1631_v47 = vsub.s32 0, %v8114_v26  ;;  %v1890_v58 = vshrl.u32 %v1889_v32, 5  ;;  %v6156_v42 = vadd.s32 4294967169, %v1777_v25  ;;  %v1895_v55 = vshrl.u32 %v10012_v44, %v1892_v39 }
 0x16b   : > { %10040 = vst [vmem:[#allocation26_spill] sm:$0xff] %v8124_v62  ;;  %v1897_v35 = vshll.u32 %v10012_v44, %v1891_v4  ;;  %v1898_v13 = vshrl.u32 %v10013_v17, %v1892_v39  ;;  %v1754_v59 = vsel %vm1671_vm7, %v1753_v34, %v1752_v22  ;;  %v1900_v2 = vshll.u32 %v10013_v17, %v1891_v4 }
 0x16c   : > { %v6149_v11 = vmin.u32 %v1631_v47, %v8114_v26  ;;  %v1901_v8 = vshrl.u32 %v10015_v53, %v1892_v39  ;;  %v1896_v40 = vor.u32 %v1895_v55, %v1894_v14  ;;  %v1903_v41 = vshll.u32 %v10015_v53, %v1891_v4 }
 0x16d   : > { %v8137_v36 = vpop.eup %6782  ;;  %v1899_v30 = vor.u32 %v1898_v13, %v1897_v35  ;;  %v1904_v60 = vshrl.u32 %v10016_v29, %v1892_v39  ;;  %v1906_v22 = vshll.u32 %v10016_v29, %v1891_v4  ;;  %v1907_v45 = vshrl.u32 %v10000_v43, %v1892_v39 }
 0x16e   : > { %10041 = vst [vmem:[#allocation27_spill] sm:$0xff] %v8137_v36  ;;  %v8141_v21 = vpop.eup %6784  ;;  %v1633_v15 = vclz %v6149_v11  ;;  %v1902_v32 = vor.u32 %v1901_v8, %v1900_v2  ;;  %v1893_v25 = vshrl.u32 %v10001_v10, %v1892_v39  ;;  %vm1909_vm13 = vcmp.lt.s32.totalorder %v1890_v58, 1 }
 0x16f   : > { %10042 = vst [vmem:[#allocation28_spill] sm:$0xff] %v8141_v21  ;;  %v1905_v34 = vor.u32 %v1904_v60, %v1903_v41  ;;  %v1783_v47 = vadd.s32 1, %v6156_v42  ;;  %vm1567_vm12 = vcmp.lt.s32.totalorder %v7845_v51, 0  ;;  %v1908_v55 = vor.u32 %v1907_v45, %v1906_v22 }
 0x170   : > { %v6150_v14 = vadd.s32 4294967294, %v1633_v15  ;;  %vm1911_vm5 = vcmp.lt.s32.totalorder %v1890_v58, 3  ;;  %vm1912_vm7 = vcmp.lt.s32.totalorder %v1890_v58, 4  ;;  %v1917_v11 = vsel %vm1909_vm13, %v1896_v40, %v1899_v30 }
 0x171   : > { %v8147_v35 = vpop.eup %6786  ;;  %v1914_v13 = vsel %vm1912_vm7, %v1902_v32, 2102212464  ;;  %v1918_v2 = vsel %vm1912_vm7, %v1905_v34, 920167782  ;;  %v1921_v4 = vsel %vm1909_vm13, %v1899_v30, %v1902_v32  ;;  %vm1910_vm15 = vcmp.lt.s32.totalorder %v1890_v58, 2 }
 0x172   : > { %vm6151_vm6 = vcmp.lt.s32.totalorder %v6150_v14, 0  ;;  %v1919_v39 = vsel %vm1911_vm5, %v1902_v32, %v1918_v2  ;;  %v1922_v8 = vsel %vm1912_vm7, %v1908_v55, 1326507024  ;;  %v1913_v41 = vsel %vm1909_vm13, %v1893_v25, %v1896_v40 }
 0x173   : > { %v1636_v42 = vsel %vm6151_vm6, 0, %v6150_v14  ;;  %v1920_v60 = vsel %vm1910_vm15, %v1917_v11, %v1919_v39  ;;  %v1923_v15 = vsel %vm1911_vm5, %v1905_v34, %v1922_v8  ;;  %v1915_v3 = vsel %vm1911_vm5, %v1899_v30, %v1914_v13 }
 0x174   : > { %v1637_v22 = vsub.s32 32, %v1636_v42  ;;  %v1641_v45 = vsub.s32 4294967266, %v1636_v42  ;;  %v1924_v0 = vsel %vm1910_vm15, %v1921_v4, %v1923_v15  ;;  %v8168_v25 = vsel %vm9976_vm3, %v901_v63, %v8026_v31 }
 0x175   : > { %v8158_v48 = vmul.u32.u64.low %v8116_v56, %v1924_v0  ;;  %v8159_v24 = vmul.u32.u64.high %v8116_v56, %v1924_v0, %v8158_v48  ;;  %v8162_v32 = vmul.u32.u64.low %v8116_v56, %v1920_v60  ;;  %v8163_v55 = vmul.u32.u64.high %v8116_v56, %v1920_v60, %v8162_v32 }
 0x176   : > { %v1642_v40 = vadd.s32 127, %v1641_v45  ;;  %vm1784_vm10 = vcmp.gt.s32.totalorder %v1783_v47, 0  ;;  %v2089_v34 = vshrl.u32 %v2088_v20, 23  ;;  %v1757_v30 = vsel %vm8030_vm11, %v7675_v61, %v1754_v59 }
 0x177   : > { %v10043_v14 = vand.u32 2147483647, %v7845_v51  ;;  %v1639_v48 = vshrl.u32 %v8112_v57, %v1637_v22  ;;  %v1916_v13 = vsel %vm1910_vm15, %v1913_v41, %v1915_v3  ;;  %v1785_v11 = vsel %vm1784_vm10, %v1783_v47, 0 }
 0x178   : > { %v1643_v2 = vshll.u32 %v1642_v40, 23  ;;  %v1781_v31 = vor.u32 8388608, %v8120_v12  ;;  %v1787_v63 = vand.u32 31, %v1785_v11  ;;  %v10046_v20 = vand.u32 2147483647, %v8102_v33 }
 0x179   : > { %vm8175_vm14 = vcmp.le.f32.partialorder %v10043_v14, 0.7853982  ;;  %v1638_v37 = vshll.u32 %v8114_v26, %v1636_v42  ;;  %v10047_v59 = vsub.s32 4, %v8095_v5  ;;  %vm1934_vm11 = vc.u32 %v8159_v24, %v8162_v32 }
 0x17a   : > { %v8184_v4 = vand.u32 8388607, %v10046_v20  ;;  %v1935_v3 = vadd.s32 1, %v8163_v55  ;;  %6788 = vcosq.f32 %v1757_v30  ;;  %v1644_v57 = vor.u32 4788187, %v1643_v2 }
 0x17b   : > { %v1652_v39 = vsel %vm1567_vm12, %v10047_v59, %v8095_v5  ;;  %v1932_v12 = vmul.u32 %v8116_v56, %v1916_v13  ;;  %v1788_v58 = vsub.s32 32, %v1787_v63  ;;  %v1640_v47 = vor.u32 %v1639_v48, %v1638_v37 }
 0x17c   : > { %v1936_v8 = vsel %vm1934_vm11, %v1935_v3, %v8163_v55  ;;  %v8197_v26 = vshrl.u32 %v1785_v11, 5  ;;  %v6168_v42 = vadd.s32 4294967169, %v2089_v34  ;;  %v1790_v60 = vshll.u32 %v10001_v10, %v1787_v63 }
 0x17d   : > { %v1937_v41 = vadd.s32 %v1936_v8, %v1932_v12  ;;  %v1791_v5 = vshrl.u32 %v10012_v44, %v1788_v58  ;;  %v1793_v15 = vshll.u32 %v10012_v44, %v1787_v63  ;;  %v1794_v22 = vshrl.u32 %v10013_v17, %v1788_v58 }
 0x17e   : > { %v1797_v45 = vshrl.u32 %v10015_v53, %v1788_v58  ;;  %v1799_v56 = vshll.u32 %v10015_v53, %v1787_v63  ;;  %v1800_v40 = vshrl.u32 %v10016_v29, %v1788_v58  ;;  %v1645_v14 = vand.u32 2147483647, %v1644_v57 }
 0x17f   : > { %v1938_v55 = vadd.s32 536870912, %v1937_v41  ;;  %v1796_v48 = vshll.u32 %v10013_v17, %v1787_v63  ;;  %v1803_v34 = vshrl.u32 %v10000_v43, %v1788_v58  ;;  %v1792_v13 = vor.u32 %v1791_v5, %v1790_v60 }
 0x180   : > { %v1795_v11 = vor.u32 %v1794_v22, %v1793_v15  ;;  %v1801_v2 = vor.u32 %v1800_v40, %v1799_v56  ;;  %v1802_v20 = vshll.u32 %v10016_v29, %v1787_v63  ;;  %v1647_v37 = vcvt.s32.f32 %v1640_v47 }
 0x181   : > { %v1654_v59 = vsel %vm8175_vm14, 0, %v1652_v39  ;;  %v1939_v3 = vshrl.u32 %v1938_v55, 30  ;;  %v1798_v12 = vor.u32 %v1797_v45, %v1796_v48  ;;  %6790 = vsinq.f32 %v1757_v30 }
 0x182   : > { %v1804_v8 = vor.u32 %v1803_v34, %v1802_v20  ;;  %v1821_v50 = vshll.u32 %v1781_v31, 8  ;;  %v2093_v57 = vor.u32 8388608, %v8184_v4  ;;  %v1648_v46 = vmul.f32 %v1647_v37, %v1645_v14  ;;  %v829_v37 = vpop.permute.xlu0 %828 }
 0x183   : > { %v1940_v61 = vshll.u32 %v1939_v3, 30  ;;  %vm1805_vm9 = vcmp.lt.s32.totalorder %v8197_v26, 1  ;;  %vm1808_vm8 = vcmp.lt.s32.totalorder %v8197_v26, 4  ;;  %v1658_v60 = vadd.s32 3, %v1654_v59 }
 0x184   : > { %vm1879_vm13 = vcmp.lt.s32.totalorder %v8052_v7, 0  ;;  %v1813_v63 = vsel %vm1805_vm9, %v1792_v13, %v1795_v11  ;;  %v1814_v39 = vsel %vm1808_vm8, %v1801_v2, 920167782  ;;  %v2095_v47 = vadd.s32 1, %v6168_v42  ;;  %v8217_v5 = vpop.eup %6788 }
 0x185   : > { %10048 = vst [vmem:[#allocation29_spill] sm:$0xff] %v8217_v5  ;;  %v8219_v30 = vsub.s32 %v1937_v41, %v1940_v61  ;;  %v1789_v31 = vshrl.u32 %v10001_v10, %v1788_v58  ;;  %vm1807_vm5 = vcmp.lt.s32.totalorder %v8197_v26, 3  ;;  %v1810_v4 = vsel %vm1808_vm8, %v1798_v12, 2102212464 }
 0x186   : > { %vm1806_vm7 = vcmp.lt.s32.totalorder %v8197_v26, 2  ;;  %v1815_v15 = vsel %vm1807_vm5, %v1798_v12, %v1814_v39  ;;  %v1817_v22 = vsel %vm1805_vm9, %v1795_v11, %v1798_v12  ;;  %v1818_v45 = vsel %vm1808_vm8, %v1804_v8, 1326507024 }
 0x187   : > { %v1649_v56 = vxor.u32 2147483648, %v1648_v46  ;;  %v1943_v40 = vsub.s32 0, %v8219_v30  ;;  %v1809_v42 = vsel %vm1805_vm9, %v1789_v31, %v1792_v13  ;;  %v1816_v61 = vsel %vm1806_vm7, %v1813_v63, %v1815_v15 }
 0x188   : > { %v1811_v58 = vsel %vm1807_vm5, %v1795_v11, %v1810_v4  ;;  %v1819_v41 = vsel %vm1807_vm5, %v1801_v2, %v1818_v45  ;;  %v8231_v14 = vmul.u32.u64.low %v1821_v50, %v1816_v61  ;;  %v8232_v55 = vmul.u32.u64.high %v1821_v50, %v1816_v61, %v8231_v14 }
 0x189   : > { %v6161_v48 = vmin.u32 %v1943_v40, %v8219_v30  ;;  %v1963_v34 = vsub.s32 4, %v1939_v3  ;;  %v1820_v20 = vsel %vm1806_vm7, %v1817_v22, %v1819_v41  ;;  %vm2096_vm6 = vcmp.gt.s32.totalorder %v2095_v47, 0 }
 0x18a   : > { %v8238_v12 = vand.u32 3, %v1654_v59  ;;  %v8240_v13 = vmul.u32.u64.low %v1821_v50, %v1820_v20  ;;  %v8241_v8 = vmul.u32.u64.high %v1821_v50, %v1820_v20, %v8240_v13  ;;  %v2097_v63 = vsel %vm2096_vm6, %v2095_v47, 0 }
 0x18b   : > { %v8243_v11 = vand.u32 3, %v1658_v60  ;;  %v10051_v2 = vand.u32 2147483647, %v8052_v7  ;;  %v1945_v31 = vclz %v6161_v48  ;;  %v1812_v4 = vsel %vm1806_vm7, %v1809_v42, %v1811_v58  ;;  %v8253_v22 = vpop.eup %6790 }
 0x18c   : > { %10049 = vst [vmem:[#allocation30_spill] sm:$0xff] %v8238_v12  ;;  %v2099_v15 = vand.u32 31, %v2097_v63  ;;  %10054 = vst [vmem:[#allocation32_spill] sm:$0xff] %v8253_v22  ;;  %v1933_v59 = vadd.s32 %v8162_v32, %v8159_v24  ;;  %v1831_v47 = vadd.s32 1, %v8232_v55  ;;  %v8258_v60 = vshll.u32 %v2093_v57, 8 }
 0x18d   : > { %10050 = vst [vmem:[#allocation31_spill] sm:$0xff] %v8243_v11  ;;  %vm8247_vm15 = vcmp.le.f32.partialorder %v10051_v2, 0.7853982  ;;  %v8262_v45 = vsel %vm9973_vm4, %v8168_v25, %v829_v37  ;;  %v1650_v40 = vsel %vm1567_vm12, %v1649_v56, %v1648_v46  ;;  %v6162_v61 = vadd.s32 4294967294, %v1945_v31 }
 0x18e   : > { %v1964_v26 = vsel %vm1879_vm13, %v1963_v34, %v1939_v3  ;;  %v2100_v42 = vsub.s32 32, %v2099_v15  ;;  %v1828_v58 = vmul.u32 %v1821_v50, %v1812_v4  ;;  %vm1830_vm10 = vc.u32 %v8241_v8, %v8231_v14 }
 0x18f   : > { %v8270_v24 = vshrl.u32 %v2097_v63, 5  ;;  %v2102_v32 = vshll.u32 %v10001_v10, %v2099_v15  ;;  %vm6163_vm11 = vcmp.lt.s32.totalorder %v6162_v61, 0  ;;  %v1832_v25 = vsel %vm1830_vm10, %v1831_v47, %v8232_v55 }
 0x190   : > { %v2103_v57 = vshrl.u32 %v10012_v44, %v2100_v42  ;;  %v2105_v46 = vshll.u32 %v10012_v44, %v2099_v15  ;;  %v1948_v56 = vsel %vm6163_vm11, 0, %v6162_v61  ;;  %v1833_v41 = vadd.s32 %v1832_v25, %v1828_v58 }
 0x191   : > { %v2106_v3 = vshrl.u32 %v10013_v17, %v2100_v42  ;;  %v2108_v50 = vshll.u32 %v10013_v17, %v2099_v15  ;;  %v1949_v48 = vsub.s32 32, %v1948_v56  ;;  %v1953_v34 = vsub.s32 4294967266, %v1948_v56 }
 0x192   : > { %v2109_v20 = vshrl.u32 %v10015_v53, %v2100_v42  ;;  %v2111_v37 = vshll.u32 %v10015_v53, %v2099_v15  ;;  %v1950_v13 = vshll.u32 %v8219_v30, %v1948_v56  ;;  %v1834_v63 = vadd.s32 536870912, %v1833_v41 }
 0x193   : > { %v2104_v55 = vor.u32 %v2103_v57, %v2102_v32  ;;  %v2112_v2 = vshrl.u32 %v10016_v29, %v2100_v42  ;;  %v1951_v31 = vshrl.u32 %v1933_v59, %v1949_v48  ;;  %v1954_v4 = vadd.s32 127, %v1953_v34 }
 0x194   : > { %v2107_v47 = vor.u32 %v2106_v3, %v2105_v46  ;;  %v2115_v61 = vshrl.u32 %v10000_v43, %v2100_v42  ;;  %v1653_v58 = vsel %vm8175_vm14, %v7845_v51, %v1650_v40  ;;  %v1966_v25 = vsel %vm8247_vm15, 0, %v1964_v26 }
 0x195   : > { %v1835_v12 = vshrl.u32 %v1834_v63, 30  ;;  %v2113_v5 = vor.u32 %v2112_v2, %v2111_v37  ;;  %v1952_v22 = vor.u32 %v1951_v31, %v1950_v13  ;;  %v1955_v30 = vshll.u32 %v1954_v4, 23 }
 0x196   : > { %v2110_v56 = vor.u32 %v2109_v20, %v2108_v50  ;;  %v2114_v32 = vshll.u32 %v10016_v29, %v2099_v15  ;;  %vm1775_vm12 = vcmp.lt.s32.totalorder %v8076_v23, 0  ;;  %v2101_v57 = vshrl.u32 %v10001_v10, %v2100_v42 }
 0x197   : > { %v1836_v59 = vshll.u32 %v1835_v12, 30  ;;  %vm2117_vm9 = vcmp.lt.s32.totalorder %v8270_v24, 1  ;;  %v1984_v0 = vand.u32 2139095040, %v8262_v45  ;;  %v1956_v40 = vor.u32 4788187, %v1955_v30 }
 0x198   : > { %v2116_v46 = vor.u32 %v2115_v61, %v2114_v32  ;;  %vm2120_vm14 = vcmp.lt.s32.totalorder %v8270_v24, 4  ;;  %v2125_v26 = vsel %vm2117_vm9, %v2104_v55, %v2107_v47  ;;  %vm2118_vm8 = vcmp.lt.s32.totalorder %v8270_v24, 2 }
 0x199   : > { %v8296_v3 = vsub.s32 %v1833_v41, %v1836_v59  ;;  %vm2119_vm5 = vcmp.lt.s32.totalorder %v8270_v24, 3  ;;  %v2126_v15 = vsel %vm2120_vm14, %v2113_v5, 920167782  ;;  %v1957_v42 = vand.u32 2147483647, %v1956_v40 }
 0x19a   : > { %v1959_v50 = vcvt.s32.f32 %v1952_v22  ;;  %v10055_v48 = vand.u32 2147483647, %v8076_v23  ;;  %v2122_v20 = vsel %vm2120_vm14, %v2110_v56, 2102212464  ;;  %v2127_v41 = vsel %vm2119_vm5, %v2110_v56, %v2126_v15 }
 0x19b   : > { %v1839_v37 = vsub.s32 0, %v8296_v3  ;;  %v1859_v13 = vsub.s32 4, %v1835_v12  ;;  %v2128_v63 = vsel %vm2118_vm8, %v2125_v26, %v2127_v41  ;;  %v9960_v22 = vand.u32 2147483647, %v8262_v45 }
 0x19c   : > { %vm8304_vm7 = vcmp.le.f32.partialorder %v10055_v48, 0.7853982  ;;  %v1960_v2 = vmul.f32 %v1959_v50, %v1957_v42  ;;  %v2121_v31 = vsel %vm2117_vm9, %v2101_v57, %v2104_v55  ;;  %v2129_v4 = vsel %vm2117_vm9, %v2107_v47, %v2110_v56  ;;  %v8343_v48 = vpop.permute.xlu1 %594 }
 0x19d   : > { %v2130_v61 = vsel %vm2120_vm14, %v2116_v46, 1326507024  ;;  %v6157_v30 = vmin.u32 %v1839_v37, %v8296_v3  ;;  %v2123_v32 = vsel %vm2119_vm5, %v2107_v47, %v2122_v20  ;;  %v1985_v40 = vshrl.u32 %v1984_v0, 23 }
 0x19e   : > { %v2131_v59 = vsel %vm2119_vm5, %v2113_v5, %v2130_v61  ;;  %v1961_v26 = vxor.u32 2147483648, %v1960_v2  ;;  %v8330_v55 = vmul.u32.u64.low %v8258_v60, %v2128_v63  ;;  %v8331_v57 = vmul.u32.u64.high %v8258_v60, %v2128_v63, %v8330_v55 }
 0x19f   : > { %v2132_v15 = vsel %vm2118_vm8, %v2129_v4, %v2131_v59  ;;  %v1841_v56 = vclz %v6157_v30  ;;  %v6164_v50 = vadd.s32 4294967169, %v1985_v40  ;;  %6792 = vcosq.f32 %v1653_v58 }
 0x1a0   : > { %v8334_v46 = vmul.u32.u64.low %v8258_v60, %v2132_v15  ;;  %v8335_v42 = vmul.u32.u64.high %v8258_v60, %v2132_v15, %v8334_v46  ;;  %v1860_v47 = vsel %vm1775_vm12, %v1859_v13, %v1835_v12  ;;  %v2124_v5 = vsel %vm2118_vm8, %v2121_v31, %v2123_v32  ;;  %v8370_v15 = vpop.permute.xlu1 %598 }
 0x1a1   : > { %v1988_v0 = vand.u32 8388607, %v9960_v22  ;;  %6794 = vsinq.f32 %v1653_v58  ;;  %v1970_v20 = vadd.s32 3, %v1966_v25  ;;  %v6158_v41 = vadd.s32 4294967294, %v1841_v56  ;;  %v8356_v58 = vpop.permute.xlu0 %592 }
 0x1a2   : > { %v1991_v37 = vadd.s32 1, %v6164_v50  ;;  %v1962_v63 = vsel %vm1879_vm13, %v1961_v26, %v1960_v2  ;;  %v8347_v4 = vand.u32 3, %v1966_v25  ;;  %v1829_v12 = vadd.s32 %v8231_v14, %v8241_v8 }
 0x1a3   : > { %v2143_v24 = vadd.s32 1, %v8331_v57  ;;  %vm6159_vm6 = vcmp.lt.s32.totalorder %v6158_v41, 0  ;;  %v1862_v13 = vsel %vm8304_vm7, 0, %v1860_v47  ;;  %v2140_v31 = vmul.u32 %v8258_v60, %v2124_v5 }
 0x1a4   : > { %10058 = vst [vmem:[#allocation33_spill] sm:$0xff] %v8347_v4  ;;  %vm2142_vm10 = vc.u32 %v8335_v42, %v8330_v55  ;;  %v1844_v61 = vsel %vm6159_vm6, 0, %v6158_v41  ;;  %v1989_v25 = vor.u32 8388608, %v1988_v0  ;;  %vm1992_vm13 = vcmp.gt.s32.totalorder %v1991_v37, 0 }
 0x1a5   : > { %v2144_v2 = vsel %vm2142_vm10, %v2143_v24, %v8331_v57  ;;  %v8362_v14 = vsel %vm8247_vm15, %v8052_v7, %v1962_v63  ;;  %v1845_v8 = vsub.s32 32, %v1844_v61  ;;  %v1849_v30 = vsub.s32 4294967266, %v1844_v61  ;;  %v8380_v41 = vpop.permute.xlu0 %596 }
 0x1a6   : > { %v2145_v32 = vadd.s32 %v2144_v2, %v2140_v31  ;;  %v8364_v59 = vand.u32 3, %v1970_v20  ;;  %v8366_v60 = vadd.s32 3, %v1862_v13  ;;  %v8368_v40 = vand.u32 3, %v1862_v13 }
 0x1a7   : > { %v1993_v26 = vsel %vm1992_vm13, %v1991_v37, 0  ;;  %v1847_v57 = vshrl.u32 %v1829_v12, %v1845_v8  ;;  %v1850_v56 = vadd.s32 127, %v1849_v30  ;;  %v9961_v50 = vxor.u32 2147483648, %v7869_v49 }
 0x1a8   : > { %10059 = vst [vmem:[#allocation34_spill] sm:$0xff] %v8364_v59  ;;  %10060 = vst [vmem:[#allocation35_spill] sm:$0xff] %v8368_v40  ;;  %v2146_v46 = vadd.s32 536870912, %v2145_v32  ;;  %6796 = vcosq.f32 %v8362_v14  ;;  %v1846_v39 = vshll.u32 %v8296_v3, %v1844_v61  ;;  %v1995_v47 = vand.u32 31, %v1993_v26 }
 0x1a9   : > { %vm1037_vm15 = vcmp.eq.s32.totalorder %v7623_v54, 0  ;;  %v1851_v5 = vshll.u32 %v1850_v56, 23  ;;  %vm2087_vm11 = vcmp.lt.s32.totalorder %v8102_v33, 0  ;;  %v8377_v20 = vshll.u32 %v1989_v25, 8  ;;  %v8382_v37 = vpop.eup %6792 }
 0x1aa   : > { %v2147_v0 = vshrl.u32 %v2146_v46, 30  ;;  %vm1040_vm9 = vcmp.eq.s32.totalorder %v7623_v54, 2  ;;  %10061 = vst [vmem:[#allocation36_spill] sm:$0xff] %v8382_v37  ;;  %v1848_v63 = vor.u32 %v1847_v57, %v1846_v39  ;;  %v8385_v12 = vadd.s32 %v8330_v55, %v8335_v42  ;;  %v8403_v57 = vpop.permute.xlu1 %658  ;;  %v10090_v46 = vld [vmem:[#allocation4_spill] sm:$0xff] }
 0x1ab   : > { %v1996_v3 = vsub.s32 32, %v1995_v47  ;;  %v8388_v13 = vpop.eup %6794  ;;  %v1852_v31 = vor.u32 4788187, %v1851_v5  ;;  %v8390_v2 = vshrl.u32 %v1993_v26, 5  ;;  %v8397_v25 = vsel %vm1037_vm15, %v7856_v52, %v9961_v50 }
 0x1ac   : > { %10062 = vst [vmem:[#allocation37_spill] sm:$0xff] %v8388_v13  ;;  %v2148_v61 = vshll.u32 %v2147_v0, 30  ;;  %v1998_v8 = vshll.u32 %v10001_v10, %v1995_v47  ;;  %v10063_v26 = vand.u32 2147483647, %v8102_v33  ;;  %v2001_v5 = vshll.u32 %v10012_v44, %v1995_v47 }
 0x1ad   : > { %v1999_v55 = vshrl.u32 %v10012_v44, %v1996_v3  ;;  %v2002_v42 = vshrl.u32 %v10013_v17, %v1996_v3  ;;  %v2005_v30 = vshrl.u32 %v10015_v53, %v1996_v3  ;;  %v1853_v56 = vand.u32 2147483647, %v1852_v31 }
 0x1ae   : > { %vm8407_vm14 = vcmp.le.f32.partialorder %v10063_v26, 0.7853982  ;;  %v8411_v39 = vsub.s32 %v2145_v32, %v2148_v61  ;;  %v2004_v22 = vshll.u32 %v10013_v17, %v1995_v47  ;;  %v1855_v50 = vcvt.s32.f32 %v1848_v63  ;;  %v8422_v61 = vpop.permute.xlu0 %656 }
 0x1af   : > { %v2171_v24 = vsub.s32 4, %v2147_v0  ;;  %v2007_v4 = vshll.u32 %v10015_v53, %v1995_v47  ;;  %v10066_v40 = vxor.u32 2147483648, %v7856_v52  ;;  %v2000_v59 = vor.u32 %v1999_v55, %v1998_v8  ;;  %v10067_v8 = vld [vmem:[#allocation17_spill] sm:$0xff] }
 0x1b0   : > { %v2151_v26 = vsub.s32 0, %v8411_v39  ;;  %v2003_v7 = vor.u32 %v2002_v42, %v2001_v5  ;;  %v2006_v32 = vor.u32 %v2005_v30, %v2004_v22  ;;  %v1856_v37 = vmul.f32 %v1855_v50, %v1853_v56 }
 0x1b1   : > { %v1042_v31 = vsel %vm1040_vm9, %v10066_v40, %v7869_v49  ;;  %v2008_v13 = vshrl.u32 %v10016_v29, %v1996_v3  ;;  %v2010_v63 = vshll.u32 %v10016_v29, %v1995_v47  ;;  %v2011_v11 = vshrl.u32 %v10000_v43, %v1996_v3  ;;  %v8437_v47 = vpop.permute.xlu1 %662 }
 0x1b2   : > { %vm1036_vm8 = vcmp.lt.s32.totalorder %v7623_v54, 2  ;;  %v6169_v51 = vmin.u32 %v2151_v26, %v8411_v39  ;;  %v1997_v40 = vshrl.u32 %v10001_v10, %v1996_v3  ;;  %vm2013_vm5 = vcmp.lt.s32.totalorder %v8390_v2, 1  ;;  %v8432_v22 = vpop.eup %6796  ;;  %v10069_v26 = vld [vmem:[#allocation7_spill] sm:$0xff]  ;;  %v8454_v62 = vpop.permute.xlu0 %660 }
 0x1b3   : > { %10068 = vst [vmem:[#allocation17_spill] sm:$0xff] %v8432_v22  ;;  %v2172_v50 = vsel %vm2087_vm11, %v2171_v24, %v2147_v0  ;;  %v2009_v42 = vor.u32 %v2008_v13, %v2007_v4  ;;  %v2012_v30 = vor.u32 %v2011_v11, %v2010_v63  ;;  %vm2016_vm6 = vcmp.lt.s32.totalorder %v8390_v2, 4  ;;  %v10071_v22 = vld [vmem:[#allocation6_spill] sm:$0xff] }
 0x1b4   : > { %v2153_v56 = vclz %v6169_v51  ;;  %vm2014_vm10 = vcmp.lt.s32.totalorder %v8390_v2, 2  ;;  %v2018_v3 = vsel %vm2016_vm6, %v2006_v32, 2102212464  ;;  %v2021_v5 = vsel %vm2013_vm5, %v2000_v59, %v2003_v7  ;;  %v10070_v51 = vld [vmem:[#allocation12_spill] sm:$0xff] }
 0x1b5   : > { %vm1033_vm13 = vweird.f32 %v10069_v26  ;;  %v1857_v55 = vxor.u32 2147483648, %v1856_v37  ;;  %vm2015_vm15 = vcmp.lt.s32.totalorder %v8390_v2, 3  ;;  %v2017_v11 = vsel %vm2013_vm5, %v1997_v40, %v2000_v59 }
 0x1b6   : > { %v2022_v4 = vsel %vm2016_vm6, %v2009_v42, 920167782  ;;  %vm1140_vm9 = vcmp.lt.s32.totalorder %v10070_v51, 2  ;;  %v6170_v0 = vadd.s32 4294967294, %v2153_v56  ;;  %v2019_v24 = vsel %vm2015_vm15, %v2003_v7, %v2018_v3  ;;  %v8493_v54 = vpop.permute.xlu0 %720 }
 0x1b7   : > { %v2023_v13 = vsel %vm2015_vm15, %v2006_v32, %v2022_v4  ;;  %v2025_v63 = vsel %vm2013_vm5, %v2003_v7, %v2006_v32  ;;  %vm1137_vm4 = vweird.f32 %v10071_v22  ;;  %v8458_v36 = vsel %vm8407_vm14, 0, %v2172_v50 }
 0x1b8   : > { %v2024_v59 = vsel %vm2014_vm10, %v2021_v5, %v2023_v13  ;;  %v2026_v40 = vsel %vm2016_vm6, %v2012_v30, 1326507024  ;;  %vm1141_vm3 = vcmp.eq.s32.totalorder %v10070_v51, 0  ;;  %vm6171_vm2 = vcmp.lt.s32.totalorder %v6170_v0, 0  ;;  %v8476_v30 = vpop.permute.xlu1 %722 }
 0x1b9   : > { %v2027_v56 = vsel %vm2015_vm15, %v2009_v42, %v2026_v40  ;;  %v8466_v7 = vmul.u32.u64.low %v8377_v20, %v2024_v59  ;;  %v8467_v32 = vmul.u32.u64.high %v8377_v20, %v2024_v59, %v8466_v7  ;;  %v1858_v3 = vsel %vm1775_vm12, %v1857_v55, %v1856_v37  ;;  %v10073_v40 = vld [vmem:[#allocation16_spill] sm:$0xff] }
 0x1ba   : > { %v2156_v50 = vsel %vm6171_vm2, 0, %v6170_v0  ;;  %v2020_v4 = vsel %vm2014_vm10, %v2017_v11, %v2019_v24  ;;  %v2028_v5 = vsel %vm2014_vm10, %v2025_v63, %v2027_v56  ;;  %v1043_v42 = vsel %vm1036_vm8, %v8397_v25, %v1042_v31 }
 0x1bb   : > { %v2157_v13 = vsub.s32 32, %v2156_v50  ;;  %v2161_v21 = vsub.s32 4294967266, %v2156_v50  ;;  %v10072_v59 = vxor.u32 2147483648, %v10067_v8  ;;  %v2158_v37 = vshll.u32 %v8411_v39, %v2156_v50 }
 0x1bc   : > { %v8486_v55 = vmul.u32.u64.low %v8377_v20, %v2028_v5  ;;  %v8487_v11 = vmul.u32.u64.high %v8377_v20, %v2028_v5, %v8486_v55  ;;  %v1145_v2 = vxor.u32 2147483648, %v10073_v40  ;;  %v2039_v63 = vadd.s32 1, %v8467_v32 }
 0x1bd   : > { %v1143_v1 = vsel %vm1141_vm3, %v10073_v40, %v10072_v59  ;;  %v2159_v0 = vshrl.u32 %v8385_v12, %v2157_v13  ;;  %v2162_v24 = vadd.s32 127, %v2161_v21  ;;  %vm1144_vm2 = vcmp.eq.s32.totalorder %v10070_v51, 2 }
 0x1be   : > { %v1861_v25 = vsel %vm8304_vm7, %v8076_v23, %v1858_v3  ;;  %v2178_v39 = vadd.s32 3, %v8458_v36  ;;  %v1044_v31 = vsel %vm1033_vm13, nan, %v1043_v42  ;;  %v1146_v12 = vsel %vm1144_vm2, %v1145_v2, %v10067_v8  ;;  %v8513_v3 = vpop.permute.xlu1 %726 }
 0x1bf   : > { %v2160_v21 = vor.u32 %v2159_v0, %v2158_v37  ;;  %v2163_v56 = vshll.u32 %v2162_v24, 23  ;;  %v1147_v50 = vsel %vm1140_vm9, %v1143_v1, %v1146_v12  ;;  %v1246_v5 = vxor.u32 2147483648, %v8011_v28  ;;  %v8525_v0 = vpop.permute.xlu0 %724 }
 0x1c0   : > { %v2036_v13 = vmul.u32 %v8377_v20, %v2020_v4  ;;  %vm2038_vm3 = vc.u32 %v8487_v11, %v8466_v7  ;;  %v1148_v34 = vsel %vm1137_vm4, nan, %v1147_v50  ;;  %vm1241_vm12 = vweird.f32 %v7384_v27 }
 0x1c1   : > { %v2164_v42 = vor.u32 4788187, %v2163_v56  ;;  %v2040_v59 = vsel %vm2038_vm3, %v2039_v63, %v8467_v32  ;;  %v6668_v37 = vpack.i.bf16 %v1148_v34, %v1044_v31  ;;  %vm1245_vm7 = vcmp.eq.s32.totalorder %v7950_v38, 0  ;;  %v10074_v31 = vld [vmem:[#allocation18_spill] sm:$0xff] }
 0x1c2   : > { %v2041_v1 = vadd.s32 %v2040_v59, %v2036_v13  ;;  %vm1244_vm8 = vcmp.lt.s32.totalorder %v7950_v38, 2  ;;  %v1247_v20 = vsel %vm1245_vm7, %v8003_v16, %v1246_v5  ;;  %v9983_v51 = vxor.u32 2147483648, %v8003_v16 }
 0x1c3   : > { %v2165_v4 = vand.u32 2147483647, %v2164_v42  ;;  %v2167_v55 = vcvt.s32.f32 %v2160_v21  ;;  %6669 = vrot.lane.b32.xlu0 %v6668_v37, %s6981_s21  ;;  %vm1248_vm5 = vcmp.eq.s32.totalorder %v7950_v38, 2  ;;  %v9982_v32 = vxor.u32 2147483648, %v7980_v6  ;;  %v8543_v42 = vpop.permute.xlu1 %786  ;;  %v10075_v37 = vld [vmem:[#allocation8_spill] sm:$0xff] }
 0x1c4   : > { %vm1983_vm6 = vcmp.lt.s32.totalorder %v8262_v45, 0  ;;  %v2042_v24 = vadd.s32 536870912, %v2041_v1  ;;  %v1250_v63 = vsel %vm1248_vm5, %v9983_v51, %v8011_v28  ;;  %vm1349_vm10 = vcmp.eq.s32.totalorder %v10074_v31, 0 }
 0x1c5   : > { %v9981_v12 = vxor.u32 2147483648, %v7961_v19  ;;  %v2168_v21 = vmul.f32 %v2167_v55, %v2165_v4  ;;  %v1251_v56 = vsel %vm1244_vm8, %v1247_v20, %v1250_v63  ;;  %v1351_v38 = vsel %vm1349_vm10, %v7961_v19, %v9982_v32  ;;  %v10076_v4 = vld [vmem:[#allocation13_spill] sm:$0xff] }
 0x1c6   : > { %vm1352_vm15 = vcmp.eq.s32.totalorder %v10074_v31, 2  ;;  %v2043_v50 = vshrl.u32 %v2042_v24, 30  ;;  %v1252_v13 = vsel %vm1241_vm12, nan, %v1251_v56  ;;  %vm1348_vm9 = vcmp.lt.s32.totalorder %v10074_v31, 2 }
 0x1c7   : > { %v1354_v34 = vsel %vm1352_vm15, %v9981_v12, %v7980_v6  ;;  %v2169_v59 = vxor.u32 2147483648, %v2168_v21  ;;  %vm1345_vm2 = vweird.f32 %v10075_v37  ;;  %vm2700_vm3 = vcmp.eq.s32.totalorder %v10076_v4, 0 }
 0x1c8   : > { %v1355_v20 = vsel %vm1348_vm9, %v1351_v38, %v1354_v34  ;;  %v2044_v55 = vshll.u32 %v2043_v50, 30  ;;  %v10077_v63 = vxor.u32 2147483648, %v7869_v49  ;;  %vm2703_vm7 = vcmp.eq.s32.totalorder %v10076_v4, 2  ;;  %v8557_v34 = vpop.permute.xlu0 %784 }
 0x1c9   : > { %v1356_v24 = vsel %vm1345_vm2, nan, %v1355_v20  ;;  %6798 = vsinq.f32 %v8362_v14  ;;  %v2067_v56 = vsub.s32 4, %v2043_v50  ;;  %v10078_v32 = vxor.u32 2147483648, %v7856_v52 }
 0x1ca   : > { %v2702_v31 = vsel %vm2700_vm3, %v7856_v52, %v10077_v63  ;;  %v6673_v12 = vpack.i.bf16 %v1356_v24, %v1252_v13  ;;  %6800 = vcosq.f32 %v1861_v25  ;;  %v8560_v51 = vand.u32 3, %v8366_v60 }
 0x1cb   : > { %v2705_v38 = vsel %vm2703_vm7, %v10078_v32, %v7869_v49  ;;  %v8562_v20 = vsub.s32 %v2041_v1, %v2044_v55  ;;  %vm2699_vm8 = vcmp.lt.s32.totalorder %v10076_v4, 2  ;;  %6802 = vsinq.f32 %v1861_v25  ;;  %v10082_v25 = vld [vmem:[#allocation2_spill] sm:$0xff]  ;;  %v8584_v32 = vpop.permute.xlu1 %790 }
 0x1cc   : > { %v8565_v63 = vand.u32 3, %v2178_v39  ;;  %v8568_v14 = vand.u32 3, %v8458_v36  ;;  %v10079_v13 = vand.u32 2147483647, %v8262_v45  ;;  %6674 = vrot.lane.b32.xlu1 %v6673_v12, %s6981_s21  ;;  %v2706_v52 = vsel %vm2699_vm8, %v2702_v31, %v2705_v38  ;;  %v10083_v36 = vld [vmem:[#allocation9_spill] sm:$0xff]  ;;  %v8605_v31 = vpop.permute.xlu0 %788 }
 0x1cd   : > { %v2170_v60 = vsel %vm2087_vm11, %v2169_v59, %v2168_v21  ;;  %v2047_v1 = vsub.s32 0, %v8562_v20  ;;  %v870_v39 = vsel %vm856_vm0, %v10082_v25, %v8343_v48  ;;  %vm2803_vm10 = vcmp.eq.s32.totalorder %v10083_v36, 0 }
 0x1ce   : > { %vm8572_vm5 = vcmp.le.f32.partialorder %v10079_v13, 0.7853982  ;;  %v2068_v4 = vsel %vm1983_vm6, %v2067_v56, %v2043_v50  ;;  %vm2802_vm15 = vcmp.lt.s32.totalorder %v10083_v36, 2  ;;  %v10084_v12 = vxor.u32 2147483648, %v10067_v8 }
 0x1cf   : > { %vm2806_vm11 = vcmp.eq.s32.totalorder %v10083_v36, 2  ;;  %v6165_v21 = vmin.u32 %v2047_v1, %v8562_v20  ;;  %v2707_v48 = vsel %vm1033_vm13, nan, %v2706_v52  ;;  %vm2906_vm9 = vcmp.eq.s32.totalorder %v7933_v9, 0  ;;  %v835_v22 = vpop.permute.xlu1 %834 }
 0x1d0   : > { %v2805_v55 = vsel %vm2803_vm10, %v10073_v40, %v10084_v12  ;;  %v2808_v59 = vsel %vm2806_vm11, %v1145_v2, %v10067_v8  ;;  %vm2905_vm3 = vcmp.lt.s32.totalorder %v7933_v9, 2  ;;  %v2908_v24 = vsel %vm2906_vm9, %v8003_v16, %v1246_v5  ;;  %v10086_v2 = vld [vmem:[#allocation14_spill] sm:$0xff] }
 0x1d1   : > { %v2809_v50 = vsel %vm2802_vm15, %v2805_v55, %v2808_v59  ;;  %vm2909_vm7 = vcmp.eq.s32.totalorder %v7933_v9, 2  ;;  %v2049_v56 = vclz %v6165_v21  ;;  %v10085_v8 = vxor.u32 2147483648, %v8003_v16  ;;  %v10089_v55 = vld [vmem:[#allocation3_spill] sm:$0xff] }
 0x1d2   : > { %v2810_v26 = vsel %vm1137_vm4, nan, %v2809_v50  ;;  %vm3009_vm13 = vcmp.eq.s32.totalorder %v10086_v2, 0  ;;  %v10087_v52 = vxor.u32 2147483648, %v7980_v6  ;;  %vm3012_vm8 = vcmp.eq.s32.totalorder %v10086_v2, 2 }
 0x1d3   : > { %v2911_v40 = vsel %vm2909_vm7, %v10085_v8, %v8011_v28  ;;  %v6678_v38 = vpack.i.bf16 %v2810_v26, %v2707_v48  ;;  %v6166_v9 = vadd.s32 4294967294, %v2049_v56  ;;  %vm3008_vm4 = vcmp.lt.s32.totalorder %v10086_v2, 2  ;;  %v8623_v25 = vpop.eup %6798 }
 0x1d4   : > { %v2912_v13 = vsel %vm2905_vm3, %v2908_v24, %v2911_v40  ;;  %v3011_v5 = vsel %vm3009_vm13, %v7961_v19, %v10087_v52  ;;  %v10088_v16 = vxor.u32 2147483648, %v7961_v19  ;;  %v2173_v36 = vsel %vm8407_vm14, %v8102_v33, %v2170_v60  ;;  %v8634_v19 = vpop.eup %6800  ;;  %v833_v24 = vpop.permute.xlu0 %832 }
 0x1d5   : > { %v2913_v1 = vsel %vm1241_vm12, nan, %v2912_v13  ;;  %v2037_v12 = vadd.s32 %v8466_v7, %v8487_v11  ;;  %v869_v27 = vsel %vm856_vm0, %v10089_v55, %v8356_v58  ;;  %6679 = vrot.lane.b32.xlu0 %v6678_v38, %s6990_s24  ;;  %vm6167_vm12 = vcmp.lt.s32.totalorder %v6166_v9, 0  ;;  %v8643_v11 = vpop.eup %6802 }
 0x1d6   : > { %v3014_v28 = vsel %vm3012_vm8, %v10088_v16, %v7980_v6  ;;  %v2070_v6 = vsel %vm8572_vm5, 0, %v2068_v4  ;;  %v872_v60 = vsel %vm856_vm0, %v10090_v46, %v8370_v15  ;;  %v2052_v58 = vsel %vm6167_vm12, 0, %v6166_v9 }
 0x1d7   : > { %v3015_v21 = vsel %vm3008_vm4, %v3011_v5, %v3014_v28  ;;  %v887_v59 = vsel %vm873_vm1, %v870_v39, %v8403_v57  ;;  %v886_v50 = vsel %vm873_vm1, %v869_v27, %v8422_v61  ;;  %v2053_v56 = vsub.s32 32, %v2052_v58 }
 0x1d8   : > { %v3016_v7 = vsel %vm1345_vm2, nan, %v3015_v21  ;;  %v2057_v4 = vsub.s32 4294967266, %v2052_v58  ;;  %vm10091_vm14 = vcmask 72704   ;;  %v2054_v37 = vshll.u32 %v8562_v20, %v2052_v58  ;;  %v839_v20 = vpop.permute.xlu1 %838 }
 0x1d9   : > { %v6683_v48 = vpack.i.bf16 %v3016_v7, %v2913_v1  ;;  %v904_v26 = vsel %vm10091_vm14, %v887_v59, %v8476_v30  ;;  %vm10092_vm10 = vmmov %vm10091_vm14  ;;  %v889_v8 = vsel %vm873_vm1, %v872_v60, %v8437_v47  ;;  %vm10093_vm2 = vcmask 97280  }
 0x1da   : > { %v903_v15 = vsel %vm10092_vm10, %v886_v50, %v8493_v54  ;;  %v921_v57 = vsel %vm10093_vm2, %v904_v26, %v8543_v42  ;;  %vm10094_vm15 = vmmov %vm10093_vm2  ;;  %v2055_v39 = vshrl.u32 %v2037_v12, %v2053_v56  ;;  %v2058_v40 = vadd.s32 127, %v2057_v4  ;;  %v10100_v12 = vld [vmem:[#allocation5_spill] sm:$0xff] }
 0x1db   : > { %6684 = vrot.lane.b32.xlu1 %v6683_v48, %s6990_s24  ;;  %v920_v61 = vsel %vm10094_vm15, %v903_v15, %v8557_v34  ;;  %vm10095_vm11 = vcmask 121856   ;;  %vm10097_vm3 = vmmov %vm10092_vm10  ;;  %6804 = vcosq.f32 %v2173_v36  ;;  %v2074_v28 = vadd.s32 3, %v2070_v6 }
 0x1dc   : > { %v8662_v30 = vsel %vm10095_vm11, %v921_v57, %v835_v22  ;;  %vm10096_vm9 = vmmov %vm10095_vm11  ;;  %v906_v2 = vsel %vm10097_vm3, %v889_v8, %v8513_v3  ;;  %v2056_v13 = vor.u32 %v2055_v39, %v2054_v37  ;;  %v2059_v34 = vshll.u32 %v2058_v40, 23 }
 0x1dd   : > { %v8665_v54 = vsel %vm10096_vm9, %v920_v61, %v833_v24  ;;  %v2293_v47 = vand.u32 2147483647, %v8662_v30  ;;  %v2296_v38 = vand.u32 2139095040, %v8662_v30  ;;  %vm10098_vm7 = vmmov %vm10093_vm2  ;;  %6806 = vsinq.f32 %v2173_v36  ;;  %v6748_v36 = vld [vmem:[%s9897_s1] sm:$0xff]   ;;  %v6749_v24 = vld [vmem:[%s9897_s1 + $0x8] sm:$0xff]  }
 0x1de   : > { %v2189_v42 = vand.u32 2147483647, %v8665_v54  ;;  %v923_v52 = vsel %vm10098_vm7, %v906_v2, %v8584_v32  ;;  %v2192_v5 = vand.u32 2139095040, %v8665_v54  ;;  %vm10099_vm13 = vmmov %vm10096_vm9  ;;  %v2060_v16 = vor.u32 4788187, %v2059_v34  ;;  %6416 = vmatprep.subr.bf16.mxu0 %v6748_v36 }
 0x1df   : > { %v2297_v9 = vshrl.u32 %v2296_v38, 23  ;;  %v2300_v1 = vand.u32 8388607, %v2293_v47  ;;  %v8678_v3 = vsel %vm10099_vm13, %v923_v52, %v839_v20  ;;  %v871_v55 = vsel %vm856_vm0, %v10100_v12, %v8380_v41  ;;  %vm10101_vm8 = vmmov %vm10097_vm3  ;;  %6417 = vmatpush3.bf16.msra.mxu0 %v6748_v36 }
 0x1e0   : > { %v2193_v22 = vshrl.u32 %v2192_v5, 23  ;;  %v2196_v32 = vand.u32 8388607, %v2189_v42  ;;  %v2501_v21 = vand.u32 2147483647, %v8678_v3  ;;  %v2063_v60 = vcvt.s32.f32 %v2056_v13  ;;  %6418 = vmatprep.subr.bf16.mxu0 %v6749_v24  ;;  %vm10102_vm14 = vmmov %vm10093_vm2 }
 0x1e1   : > { %v6176_v27 = vadd.s32 4294967169, %v2297_v9  ;;  %v2061_v46 = vand.u32 2147483647, %v2060_v16  ;;  %v2504_v58 = vand.u32 2139095040, %v8678_v3  ;;  %v888_v48 = vsel %vm873_vm1, %v871_v55, %v8454_v62 }
 0x1e2   : > { %v6172_v7 = vadd.s32 4294967169, %v2193_v22  ;;  %v2301_v59 = vor.u32 8388608, %v2300_v1  ;;  %v2197_v50 = vor.u32 8388608, %v2196_v32  ;;  %v8697_v15 = vand.u32 8388607, %v2501_v21 }
 0x1e3   : > { %v2303_v41 = vadd.s32 1, %v6176_v27  ;;  %v2064_v56 = vmul.f32 %v2063_v60, %v2061_v46  ;;  %v2505_v26 = vshrl.u32 %v2504_v58, 23  ;;  %v8699_v37 = vand.u32 3, %v2074_v28  ;;  %6419 = vmatpush3.bf16.msra.mxu0 %v6749_v24 }
 0x1e4   : > { %v2199_v4 = vadd.s32 1, %v6172_v7  ;;  %v8701_v8 = vand.u32 3, %v2070_v6  ;;  %v905_v62 = vsel %vm10101_vm8, %v888_v48, %v8525_v0  ;;  %v8709_v2 = vshll.u32 %v2301_v59, 8 }
 0x1e5   : > { %vm2304_vm4 = vcmp.gt.s32.totalorder %v2303_v41, 0  ;;  %v2065_v57 = vxor.u32 2147483648, %v2064_v56  ;;  %v6184_v39 = vadd.s32 4294967169, %v2505_v26  ;;  %v8707_v40 = vsel %vm10102_vm14, %v905_v62, %v8605_v31  ;;  %v8716_v52 = vpop.eup %6804 }
 0x1e6   : > { %v2305_v61 = vsel %vm2304_vm4, %v2303_v41, 0  ;;  %vm2200_vm12 = vcmp.gt.s32.totalorder %v2199_v4, 0  ;;  %v8713_v0 = vshll.u32 %v2197_v50, 8  ;;  %v2509_v34 = vor.u32 8388608, %v8697_v15 }
 0x1e7   : > { %v2307_v20 = vand.u32 31, %v2305_v61  ;;  %v2201_v38 = vsel %vm2200_vm12, %v2199_v4, 0  ;;  %v2066_v6 = vsel %vm1983_vm6, %v2065_v57, %v2064_v56  ;;  %v2306_v13 = vshrl.u32 %v2305_v61, 5  ;;  %v8722_v16 = vpop.eup %6806 }
 0x1e8   : > { %v8718_v9 = vshrl.u32 %v2201_v38, 5  ;;  %v2203_v1 = vand.u32 31, %v2201_v38  ;;  %v8720_v31 = vadd.s32 1, %v6184_v39  ;;  %v8727_v28 = vsel %vm8572_vm5, %v8262_v45, %v2066_v6 }
 0x1e9   : > { %v2308_v5 = vsub.s32 32, %v2307_v20  ;;  %v2310_v22 = vshll.u32 %v10001_v10, %v2307_v20  ;;  %v2313_v12 = vshll.u32 %v10012_v44, %v2307_v20  ;;  %v2316_v55 = vshll.u32 %v10013_v17, %v2307_v20 }
 0x1ea   : > { %v2319_v46 = vshll.u32 %v10015_v53, %v2307_v20  ;;  %v2322_v60 = vshll.u32 %v10016_v29, %v2307_v20  ;;  %vm2325_vm6 = vcmp.lt.s32.totalorder %v2306_v13, 1  ;;  %vm2326_vm5 = vcmp.lt.s32.totalorder %v2306_v13, 2 }
 0x1eb   : > { %v2311_v27 = vshrl.u32 %v10012_v44, %v2308_v5  ;;  %v2314_v32 = vshrl.u32 %v10013_v17, %v2308_v5  ;;  %v2309_v7 = vshrl.u32 %v10001_v10, %v2308_v5  ;;  %v2317_v49 = vshrl.u32 %v10015_v53, %v2308_v5 }
 0x1ec   : > { %v2320_v58 = vshrl.u32 %v10016_v29, %v2308_v5  ;;  %v2323_v36 = vshrl.u32 %v10000_v43, %v2308_v5  ;;  %vm2327_vm10 = vcmp.lt.s32.totalorder %v2306_v13, 3  ;;  %vm2328_vm2 = vcmp.lt.s32.totalorder %v2306_v13, 4 }
 0x1ed   : > { %v2312_v48 = vor.u32 %v2311_v27, %v2310_v22  ;;  %v2315_v59 = vor.u32 %v2314_v32, %v2313_v12  ;;  %v2318_v41 = vor.u32 %v2317_v49, %v2316_v55  ;;  %v2204_v26 = vsub.s32 32, %v2203_v1 }
 0x1ee   : > { %v2321_v50 = vor.u32 %v2320_v58, %v2319_v46  ;;  %v2324_v24 = vor.u32 %v2323_v36, %v2322_v60  ;;  %v2206_v5 = vshll.u32 %v10001_v10, %v2203_v1  ;;  %v2209_v36 = vshll.u32 %v10012_v44, %v2203_v1 }
 0x1ef   : > { %v2329_v56 = vsel %vm2325_vm6, %v2309_v7, %v2312_v48  ;;  %v2333_v4 = vsel %vm2325_vm6, %v2312_v48, %v2315_v59  ;;  %v2330_v62 = vsel %vm2328_vm2, %v2318_v41, 2102212464  ;;  %v2337_v61 = vsel %vm2325_vm6, %v2315_v59, %v2318_v41 }
 0x1f0   : > { %v2334_v57 = vsel %vm2328_vm2, %v2321_v50, 920167782  ;;  %v2338_v39 = vsel %vm2328_vm2, %v2324_v24, 1326507024  ;;  %v2331_v20 = vsel %vm2327_vm10, %v2315_v59, %v2330_v62  ;;  %v2207_v27 = vshrl.u32 %v10012_v44, %v2204_v26 }
 0x1f1   : > { %v2335_v38 = vsel %vm2327_vm10, %v2318_v41, %v2334_v57  ;;  %v2339_v6 = vsel %vm2327_vm10, %v2321_v50, %v2338_v39  ;;  %v2332_v22 = vsel %vm2326_vm5, %v2329_v56, %v2331_v20  ;;  %v2205_v58 = vshrl.u32 %v10001_v10, %v2204_v26 }
 0x1f2   : > { %v2336_v12 = vsel %vm2326_vm5, %v2333_v4, %v2335_v38  ;;  %v2340_v55 = vsel %vm2326_vm5, %v2337_v61, %v2339_v6  ;;  %v2348_v49 = vmul.u32 %v8709_v2, %v2332_v22  ;;  %v2210_v48 = vshrl.u32 %v10013_v17, %v2204_v26 }
 0x1f3   : > { %v8746_v32 = vmul.u32.u64.low %v8709_v2, %v2340_v55  ;;  %v8747_v46 = vmul.u32.u64.high %v8709_v2, %v2340_v55, %v8746_v32  ;;  %v8750_v60 = vmul.u32.u64.low %v8709_v2, %v2336_v12  ;;  %v8751_v7 = vmul.u32.u64.high %v8709_v2, %v2336_v12, %v8750_v60 }
 0x1f4   : > { %v2208_v13 = vor.u32 %v2207_v27, %v2206_v5  ;;  %v2212_v59 = vshll.u32 %v10013_v17, %v2203_v1  ;;  %v2213_v41 = vshrl.u32 %v10015_v53, %v2204_v26  ;;  %v2216_v50 = vshrl.u32 %v10016_v29, %v2204_v26 }
 0x1f5   : > { %v2211_v24 = vor.u32 %v2210_v48, %v2209_v36  ;;  %v2215_v56 = vshll.u32 %v10015_v53, %v2203_v1  ;;  %v2218_v4 = vshll.u32 %v10016_v29, %v2203_v1  ;;  %v2219_v2 = vshrl.u32 %v10000_v43, %v2204_v26 }
 0x1f6   : > { %vm2350_vm15 = vc.u32 %v8747_v46, %v8750_v60  ;;  %v2351_v62 = vadd.s32 1, %v8751_v7  ;;  %v2214_v57 = vor.u32 %v2213_v41, %v2212_v59  ;;  %vm2221_vm11 = vcmp.lt.s32.totalorder %v8718_v9, 1 }
 0x1f7   : > { %v2217_v61 = vor.u32 %v2216_v50, %v2215_v56  ;;  %v2220_v39 = vor.u32 %v2219_v2, %v2218_v4  ;;  %vm2222_vm9 = vcmp.lt.s32.totalorder %v8718_v9, 2  ;;  %vm2223_vm3 = vcmp.lt.s32.totalorder %v8718_v9, 3 }
 0x1f8   : > { %vm2295_vm7 = vcmp.lt.s32.totalorder %v8662_v30, 0  ;;  %v2352_v20 = vsel %vm2350_vm15, %v2351_v62, %v8751_v7  ;;  %vm2224_vm13 = vcmp.lt.s32.totalorder %v8718_v9, 4  ;;  %v2225_v1 = vsel %vm2221_vm11, %v2205_v58, %v2208_v13  ;;  %v837_v58 = vpop.permute.xlu0 %836 }
 0x1f9   : > { %v2229_v26 = vsel %vm2221_vm11, %v2208_v13, %v2211_v24  ;;  %v2353_v38 = vadd.s32 %v2352_v20, %v2348_v49  ;;  %v2226_v6 = vsel %vm2224_vm13, %v2214_v57, 2102212464  ;;  %v2230_v5 = vsel %vm2224_vm13, %v2217_v61, 920167782 }
 0x1fa   : > { %v2233_v22 = vsel %vm2221_vm11, %v2211_v24, %v2214_v57  ;;  %v2227_v12 = vsel %vm2223_vm3, %v2211_v24, %v2226_v6  ;;  %v2231_v55 = vsel %vm2223_vm3, %v2214_v57, %v2230_v5  ;;  %v2234_v27 = vsel %vm2224_vm13, %v2220_v39, 1326507024 }
 0x1fb   : > { %vm2512_vm8 = vcmp.gt.s32.totalorder %v8720_v31, 0  ;;  %6808 = vcosq.f32 %v8727_v28  ;;  %v2354_v32 = vadd.s32 536870912, %v2353_v38  ;;  %v2232_v7 = vsel %vm2222_vm9, %v2229_v26, %v2231_v55 }
 0x1fc   : > { %v2235_v49 = vsel %vm2223_vm3, %v2217_v61, %v2234_v27  ;;  %v2228_v36 = vsel %vm2222_vm9, %v2225_v1, %v2227_v12  ;;  %v8786_v13 = vmul.u32.u64.low %v8713_v0, %v2232_v7  ;;  %v8787_v59 = vmul.u32.u64.high %v8713_v0, %v2232_v7, %v8786_v13 }
 0x1fd   : > { %v2236_v48 = vsel %vm2222_vm9, %v2233_v22, %v2235_v49  ;;  %v2355_v41 = vshrl.u32 %v2354_v32, 30  ;;  %v2513_v56 = vsel %vm2512_vm8, %v8720_v31, 0  ;;  %6810 = vsinq.f32 %v8727_v28 }
 0x1fe   : > { %v8790_v50 = vmul.u32.u64.low %v8713_v0, %v2236_v48  ;;  %v8791_v24 = vmul.u32.u64.high %v8713_v0, %v2236_v48, %v8790_v50  ;;  %vm8797_vm4 = vcmp.le.f32.partialorder %v2293_v47, 0.7853982  ;;  %v2515_v9 = vand.u32 31, %v2513_v56 }
 0x1ff   : > { %vm10105_vm12 = vcmask 121856   ;;  %v8806_v62 = vadd.s32 %v8750_v60, %v8747_v46  ;;  %v2356_v57 = vshll.u32 %v2355_v41, 30  ;;  %v2379_v61 = vsub.s32 4, %v2355_v41 }
 0x200   : > { %v8803_v2 = vsel %vm10105_vm12, %v8707_v40, %v837_v58  ;;  %v2244_v31 = vmul.u32 %v8713_v0, %v2228_v36  ;;  %v2247_v28 = vadd.s32 1, %v8787_v59  ;;  %v8810_v39 = vshrl.u32 %v2513_v56, 5 }
 0x201   : > { %v2516_v47 = vsub.s32 32, %v2515_v9  ;;  %v8814_v20 = vshll.u32 %v2509_v34, 8  ;;  %v8816_v1 = vsub.s32 %v2353_v38, %v2356_v57  ;;  %v2380_v40 = vsel %vm2295_vm7, %v2379_v61, %v2355_v41 }
 0x202   : > { %vm2246_vm14 = vc.u32 %v8791_v24, %v8786_v13  ;;  %v2397_v46 = vand.u32 2147483647, %v8803_v2  ;;  %vm2191_vm6 = vcmp.lt.s32.totalorder %v8665_v54, 0  ;;  %v2518_v60 = vshll.u32 %v10001_v10, %v2515_v9 }
 0x203   : > { %v2248_v0 = vsel %vm2246_vm14, %v2247_v28, %v8787_v59  ;;  %v2519_v26 = vshrl.u32 %v10012_v44, %v2516_v47  ;;  %v2400_v15 = vand.u32 2139095040, %v8803_v2  ;;  %v2359_v34 = vsub.s32 0, %v8816_v1 }
 0x204   : > { %v8829_v38 = vadd.s32 %v8786_v13, %v8791_v24  ;;  %v2249_v6 = vadd.s32 %v2248_v0, %v2244_v31  ;;  %v2521_v5 = vshll.u32 %v10012_v44, %v2515_v9  ;;  %v2382_v22 = vsel %vm8797_vm4, 0, %v2380_v40 }
 0x205   : > { %vm8836_vm5 = vcmp.le.f32.partialorder %v2189_v42, 0.7853982  ;;  %v2522_v55 = vshrl.u32 %v10013_v17, %v2516_v47  ;;  %v2524_v27 = vshll.u32 %v10013_v17, %v2515_v9  ;;  %v2525_v32 = vshrl.u32 %v10015_v53, %v2516_v47  ;;  %v8843_v7 = vpop.eup %6808 }
 0x206   : > { %v6177_v49 = vmin.u32 %v2359_v34, %v8816_v1  ;;  %v2250_v58 = vadd.s32 536870912, %v2249_v6  ;;  %v2517_v36 = vshrl.u32 %v10001_v10, %v2516_v47  ;;  %v2520_v48 = vor.u32 %v2519_v26, %v2518_v60 }
 0x207   : > { %v2523_v13 = vor.u32 %v2522_v55, %v2521_v5  ;;  %v2526_v59 = vor.u32 %v2525_v32, %v2524_v27  ;;  %v2527_v42 = vshll.u32 %v10015_v53, %v2515_v9  ;;  %v2528_v41 = vshrl.u32 %v10016_v29, %v2516_v47  ;;  %v8851_v61 = vpop.eup %6810 }
 0x208   : > { %v2361_v50 = vclz %v6177_v49  ;;  %v2251_v24 = vshrl.u32 %v2250_v58, 30  ;;  %v2530_v56 = vshll.u32 %v10016_v29, %v2515_v9  ;;  %v2531_v57 = vshrl.u32 %v10000_v43, %v2516_v47 }
 0x209   : > { %v2529_v31 = vor.u32 %v2528_v41, %v2527_v42  ;;  %vm2533_vm10 = vcmp.lt.s32.totalorder %v8810_v39, 1  ;;  %vm2535_vm2 = vcmp.lt.s32.totalorder %v8810_v39, 3  ;;  %vm2536_vm15 = vcmp.lt.s32.totalorder %v8810_v39, 4 }
 0x20a   : > { %v6178_v28 = vadd.s32 4294967294, %v2361_v50  ;;  %v2252_v40 = vshll.u32 %v2251_v24, 30  ;;  %v2275_v0 = vsub.s32 4, %v2251_v24  ;;  %v2532_v60 = vor.u32 %v2531_v57, %v2530_v56 }
 0x20b   : > { %v2537_v26 = vsel %vm2533_vm10, %v2517_v36, %v2520_v48  ;;  %v2538_v9 = vsel %vm2536_vm15, %v2526_v59, 2102212464  ;;  %v2541_v47 = vsel %vm2533_vm10, %v2520_v48, %v2523_v13  ;;  %v2542_v34 = vsel %vm2536_vm15, %v2529_v31, 920167782 }
 0x20c   : > { %vm6179_vm11 = vcmp.lt.s32.totalorder %v6178_v28, 0  ;;  %v8864_v5 = vsub.s32 %v2249_v6, %v2252_v40  ;;  %v2276_v55 = vsel %vm2191_vm6, %v2275_v0, %v2251_v24  ;;  %v2539_v27 = vsel %vm2535_vm2, %v2523_v13, %v2538_v9 }
 0x20d   : > { %v2364_v32 = vsel %vm6179_vm11, 0, %v6178_v28  ;;  %v2386_v49 = vadd.s32 3, %v2382_v22  ;;  %vm2534_vm9 = vcmp.lt.s32.totalorder %v8810_v39, 2  ;;  %v2543_v58 = vsel %vm2535_vm2, %v2526_v59, %v2542_v34 }
 0x20e   : > { %v2365_v36 = vsub.s32 32, %v2364_v32  ;;  %v2369_v48 = vsub.s32 4294967266, %v2364_v32  ;;  %v2255_v42 = vsub.s32 0, %v8864_v5  ;;  %v2278_v6 = vsel %vm8836_vm5, 0, %v2276_v55 }
 0x20f   : > { %v2366_v41 = vshll.u32 %v8816_v1, %v2364_v32  ;;  %v2540_v50 = vsel %vm2534_vm9, %v2537_v26, %v2539_v27  ;;  %v2544_v24 = vsel %vm2534_vm9, %v2541_v47, %v2543_v58  ;;  %v2545_v56 = vsel %vm2533_vm10, %v2523_v13, %v2526_v59 }
 0x210   : > { %v2367_v57 = vshrl.u32 %v8806_v62, %v2365_v36  ;;  %v2370_v28 = vadd.s32 127, %v2369_v48  ;;  %v6173_v40 = vmin.u32 %v2255_v42, %v8864_v5  ;;  %v2546_v0 = vsel %vm2536_vm15, %v2532_v60, 1326507024 }
 0x211   : > { %v2282_v9 = vadd.s32 3, %v2278_v6  ;;  %v2547_v1 = vsel %vm2535_vm2, %v2529_v31, %v2546_v0  ;;  %v8890_v26 = vmul.u32.u64.low %v8814_v20, %v2544_v24  ;;  %v8891_v34 = vmul.u32.u64.high %v8814_v20, %v2544_v24, %v8890_v26 }
 0x212   : > { %v2368_v47 = vor.u32 %v2367_v57, %v2366_v41  ;;  %v2371_v55 = vshll.u32 %v2370_v28, 23  ;;  %v2257_v27 = vclz %v6173_v40  ;;  %v2548_v62 = vsel %vm2534_vm9, %v2545_v56, %v2547_v1 }
 0x213   : > { %v8895_v13 = vand.u32 3, %v2386_v49  ;;  %v8897_v59 = vand.u32 3, %v2382_v22  ;;  %v8900_v60 = vmul.u32.u64.low %v8814_v20, %v2548_v62  ;;  %v8901_v32 = vmul.u32.u64.high %v8814_v20, %v2548_v62, %v8900_v60 }
 0x214   : > { %v2372_v58 = vor.u32 4788187, %v2371_v55  ;;  %v6174_v31 = vadd.s32 4294967294, %v2257_v27  ;;  %v8903_v36 = vand.u32 3, %v2278_v6  ;;  %v2401_v48 = vshrl.u32 %v2400_v15, 23 }
 0x215   : > { %10108 = vst [vmem:[#allocation7_spill] sm:$0xff] %v8897_v59  ;;  %v8907_v42 = vand.u32 3, %v2282_v9  ;;  %v2556_v39 = vmul.u32 %v8814_v20, %v2540_v50  ;;  %v2559_v49 = vadd.s32 1, %v8891_v34  ;;  %v2404_v22 = vand.u32 8388607, %v2397_v46  ;;  %v10109_v20 = vld [vmem:[#allocation11_spill] sm:$0xff] }
 0x216   : > { %v2373_v41 = vand.u32 2147483647, %v2372_v58  ;;  %v2375_v24 = vcvt.s32.f32 %v2368_v47  ;;  %vm6175_vm3 = vcmp.lt.s32.totalorder %v6174_v31, 0  ;;  %v6180_v56 = vadd.s32 4294967169, %v2401_v48  ;;  %v10129_v59 = vld [vmem:[#allocation20_spill] sm:$0xff] }
 0x217   : > { %v2260_v57 = vsel %vm6175_vm3, 0, %v6174_v31  ;;  %vm2558_vm13 = vc.u32 %v8901_v32, %v8890_v26  ;;  %vm1452_vm8 = vcmp.lt.s32.totalorder %v7967_v18, 2  ;;  %v1454_v15 = vxor.u32 2147483648, %v8147_v35 }
 0x218   : > { %v2376_v6 = vmul.f32 %v2375_v24, %v2373_v41  ;;  %v2261_v28 = vsub.s32 32, %v2260_v57  ;;  %v2265_v40 = vsub.s32 4294967266, %v2260_v57  ;;  %vm1449_vm12 = vweird.f32 %v10109_v20 }
 0x219   : > { %vm1453_vm14 = vcmp.eq.s32.totalorder %v7967_v18, 0  ;;  %v2262_v50 = vshll.u32 %v8864_v5, %v2260_v57  ;;  %vm2503_vm10 = vcmp.lt.s32.totalorder %v8678_v3, 0  ;;  %v2560_v0 = vsel %vm2558_vm13, %v2559_v49, %v8891_v34  ;;  %v10112_v5 = vld [vmem:[#allocation28_spill] sm:$0xff] }
 0x21a   : > { %v2405_v9 = vor.u32 8388608, %v2404_v22  ;;  %v2407_v1 = vadd.s32 1, %v6180_v56  ;;  %v2377_v47 = vxor.u32 2147483648, %v2376_v6  ;;  %v2263_v55 = vshrl.u32 %v8829_v38, %v2261_v28 }
 0x21b   : > { %v2266_v27 = vadd.s32 127, %v2265_v40  ;;  %vm8924_vm2 = vcmp.le.f32.partialorder %v2501_v21, 0.7853982  ;;  %v2561_v60 = vadd.s32 %v2560_v0, %v2556_v39  ;;  %v1455_v58 = vsel %vm1453_vm14, %v10112_v5, %v1454_v15 }
 0x21c   : > { %vm2408_vm15 = vcmp.gt.s32.totalorder %v2407_v1, 0  ;;  %vm1456_vm11 = vcmp.eq.s32.totalorder %v7967_v18, 2  ;;  %v1457_v34 = vxor.u32 2147483648, %v10112_v5  ;;  %v2378_v38 = vsel %vm2295_vm7, %v2377_v47, %v2376_v6 }
 0x21d   : > { %v2264_v31 = vor.u32 %v2263_v55, %v2262_v50  ;;  %v2267_v48 = vshll.u32 %v2266_v27, 23  ;;  %v2562_v49 = vadd.s32 536870912, %v2561_v60  ;;  %v2381_v21 = vsel %vm8797_vm4, %v8662_v30, %v2378_v38 }
 0x21e   : > { %v8939_v39 = vadd.s32 %v8890_v26, %v8901_v32  ;;  %v2409_v22 = vsel %vm2408_vm15, %v2407_v1, 0  ;;  %v1458_v41 = vsel %vm1456_vm11, %v1457_v34, %v8147_v35  ;;  %6812 = vcosq.f32 %v2381_v21 }
 0x21f   : > { %v2268_v24 = vor.u32 4788187, %v2267_v48  ;;  %v2563_v56 = vshrl.u32 %v2562_v49, 30  ;;  %v8944_v57 = vshll.u32 %v2405_v9, 8  ;;  %6814 = vsinq.f32 %v2381_v21 }
 0x220   : > { %v2271_v6 = vcvt.s32.f32 %v2264_v31  ;;  %v2411_v28 = vand.u32 31, %v2409_v22  ;;  %v1459_v4 = vsel %vm1452_vm8, %v1455_v58, %v1458_v41  ;;  %v2410_v32 = vshrl.u32 %v2409_v22, 5 }
 0x221   : > { %v2269_v40 = vand.u32 2147483647, %v2268_v24  ;;  %v2564_v50 = vshll.u32 %v2563_v56, 30  ;;  %v2587_v26 = vsub.s32 4, %v2563_v56  ;;  %v8952_v55 = vsel %vm1449_vm12, nan, %v1459_v4 }
 0x222   : > { %v2412_v0 = vsub.s32 32, %v2411_v28  ;;  %v2414_v1 = vshll.u32 %v10001_v10, %v2411_v28  ;;  %v2417_v47 = vshll.u32 %v10012_v44, %v2411_v28  ;;  %v2420_v58 = vshll.u32 %v10013_v17, %v2411_v28 }
 0x223   : > { %v2272_v9 = vmul.f32 %v2271_v6, %v2269_v40  ;;  %v8954_v27 = vsub.s32 %v2561_v60, %v2564_v50  ;;  %v2588_v18 = vsel %vm2503_vm10, %v2587_v26, %v2563_v56  ;;  %v2423_v49 = vshll.u32 %v10015_v53, %v2411_v28 }
 0x224   : > { %v2590_v38 = vsel %vm8924_vm2, 0, %v2588_v18  ;;  %v2415_v31 = vshrl.u32 %v10012_v44, %v2412_v0  ;;  %v2418_v48 = vshrl.u32 %v10013_v17, %v2412_v0  ;;  %v2413_v60 = vshrl.u32 %v10001_v10, %v2412_v0 }
 0x225   : > { %v2273_v21 = vxor.u32 2147483648, %v2272_v9  ;;  %v2567_v22 = vsub.s32 0, %v8954_v27  ;;  %v2594_v41 = vadd.s32 3, %v2590_v38  ;;  %v8966_v24 = vand.u32 3, %v2590_v38 }
 0x226   : > { %v2416_v56 = vor.u32 %v2415_v31, %v2414_v1  ;;  %v2421_v6 = vshrl.u32 %v10015_v53, %v2412_v0  ;;  %v2424_v4 = vshrl.u32 %v10016_v29, %v2412_v0  ;;  %v2419_v40 = vor.u32 %v2418_v48, %v2417_v47 }
 0x227   : > { %10113 = vst [vmem:[#allocation12_spill] sm:$0xff] %v8966_v24  ;;  %v2274_v44 = vsel %vm2191_vm6, %v2273_v21, %v2272_v9  ;;  %v6185_v17 = vmin.u32 %v2567_v22, %v8954_v27  ;;  %v2426_v50 = vshll.u32 %v10016_v29, %v2411_v28  ;;  %v2427_v1 = vshrl.u32 %v10000_v43, %v2412_v0  ;;  %v10114_v21 = vld [vmem:[#allocation21_spill] sm:$0xff] }
 0x228   : > { %v2277_v26 = vsel %vm8836_vm5, %v8665_v54, %v2274_v44  ;;  %v2422_v10 = vor.u32 %v2421_v6, %v2420_v58  ;;  %v2425_v18 = vor.u32 %v2424_v4, %v2423_v49  ;;  %v8978_v38 = vpop.eup %6812  ;;  %v8980_v31 = vand.u32 3, %v2594_v41  ;;  %v10115_v4 = vld [vmem:[#allocation10_spill] sm:$0xff] }
 0x229   : > { %6816 = vcosq.f32 %v2277_v26  ;;  %v2569_v53 = vclz %v6185_v17  ;;  %vm2429_vm7 = vcmp.lt.s32.totalorder %v2410_v32, 1  ;;  %v8982_v9 = vpop.eup %6814  ;;  %v2428_v47 = vor.u32 %v2427_v1, %v2426_v50 }
 0x22a   : > { %vm2430_vm4 = vcmp.lt.s32.totalorder %v2410_v32, 2  ;;  %vm2431_vm6 = vcmp.lt.s32.totalorder %v2410_v32, 3  ;;  %vm2432_vm9 = vcmp.lt.s32.totalorder %v2410_v32, 4  ;;  %v2433_v12 = vsel %vm2429_vm7, %v2413_v60, %v2416_v56  ;;  %v10116_v32 = vld [vmem:[#allocation27_spill] sm:$0xff] }
 0x22b   : > { %v6186_v29 = vadd.s32 4294967294, %v2569_v53  ;;  %v2434_v28 = vsel %vm2432_vm9, %v2422_v10, 2102212464  ;;  %v2437_v58 = vsel %vm2429_vm7, %v2416_v56, %v2419_v40  ;;  %v2438_v49 = vsel %vm2432_vm9, %v2425_v18, 920167782 }
 0x22c   : > { %v2435_v48 = vsel %vm2431_vm6, %v2419_v40, %v2434_v28  ;;  %v2441_v43 = vsel %vm2429_vm7, %v2419_v40, %v2422_v10  ;;  %v2442_v0 = vsel %vm2432_vm9, %v2428_v47, 1326507024  ;;  %vm1556_vm5 = vcmp.lt.s32.totalorder %v10114_v21, 2 }
 0x22d   : > { %vm6187_vm3 = vcmp.lt.s32.totalorder %v6186_v29, 0  ;;  %v2436_v22 = vsel %vm2430_vm4, %v2433_v12, %v2435_v48  ;;  %v2439_v41 = vsel %vm2431_vm6, %v2422_v10, %v2438_v49  ;;  %v2443_v6 = vsel %vm2431_vm6, %v2425_v18, %v2442_v0  ;;  %v10119_v48 = vld [vmem:[#allocation31_spill] sm:$0xff]  ;;  %v10120_v0 = vld [vmem:[#allocation37_spill] sm:$0xff] }
 0x22e   : > { %vm1553_vm13 = vweird.f32 %v10115_v4  ;;  %6818 = vsinq.f32 %v2277_v26  ;;  %v2572_v44 = vsel %vm6187_vm3, 0, %v6186_v29  ;;  %v2440_v17 = vsel %vm2430_vm4, %v2437_v58, %v2439_v41  ;;  %v10118_v58 = vld [vmem:[#allocation19_spill] sm:$0xff] }
 0x22f   : > { %v2444_v60 = vsel %vm2430_vm4, %v2441_v43, %v2443_v6  ;;  %v2573_v56 = vsub.s32 32, %v2572_v44  ;;  %v2574_v50 = vshll.u32 %v8954_v27, %v2572_v44  ;;  %v2577_v40 = vsub.s32 4294967266, %v2572_v44  ;;  %v10117_v27 = vld [vmem:[#allocation26_spill] sm:$0xff] }
 0x230   : > { %v2452_v1 = vmul.u32 %v8944_v57, %v2436_v22  ;;  %v8992_v53 = vmul.u32.u64.low %v8944_v57, %v2444_v60  ;;  %v8993_v47 = vmul.u32.u64.high %v8944_v57, %v2444_v60, %v8992_v53  ;;  %vm1557_vm8 = vcmp.eq.s32.totalorder %v10114_v21, 0 }
 0x231   : > { %v8996_v10 = vmul.u32.u64.low %v8944_v57, %v2440_v17  ;;  %v8997_v18 = vmul.u32.u64.high %v8944_v57, %v2440_v17, %v8996_v10  ;;  %v2575_v26 = vshrl.u32 %v8939_v39, %v2573_v56  ;;  %v2578_v29 = vadd.s32 127, %v2577_v40  ;;  %v10121_v53 = vld [vmem:[#allocation36_spill] sm:$0xff] }
 0x232   : > { %v9986_v12 = vxor.u32 2147483648, %v10116_v32  ;;  %vm1560_vm14 = vcmp.eq.s32.totalorder %v10114_v21, 2  ;;  %v9985_v28 = vxor.u32 2147483648, %v10117_v27  ;;  %vm1657_vm15 = vweird.f32 %v10118_v58 }
 0x233   : > { %vm1660_vm11 = vcmp.lt.s32.totalorder %v10119_v48, 2  ;;  %v9006_v49 = vpop.eup %6816  ;;  %v2576_v43 = vor.u32 %v2575_v26, %v2574_v50  ;;  %v2579_v57 = vshll.u32 %v2578_v29, 23  ;;  %v9984_v22 = vxor.u32 2147483648, %v10120_v0 }
 0x234   : > { %v1559_v39 = vsel %vm1557_vm8, %v10117_v27, %v9986_v12  ;;  %vm2454_vm7 = vc.u32 %v8993_v47, %v8996_v10  ;;  %v2455_v41 = vadd.s32 1, %v8997_v18  ;;  %v1562_v6 = vsel %vm1560_vm14, %v9985_v28, %v10116_v32 }
 0x235   : > { %vm1661_vm4 = vcmp.eq.s32.totalorder %v10119_v48, 0  ;;  %v2580_v44 = vor.u32 4788187, %v2579_v57  ;;  %v2583_v17 = vcvt.s32.f32 %v2576_v43  ;;  %v9019_v60 = vadd.s32 %v8996_v10, %v8993_v47 }
 0x236   : > { %v1563_v56 = vsel %vm1556_vm5, %v1559_v39, %v1562_v6  ;;  %vm2399_vm6 = vcmp.lt.s32.totalorder %v8803_v2, 0  ;;  %v2456_v50 = vsel %vm2454_vm7, %v2455_v41, %v8997_v18  ;;  %v1663_v26 = vsel %vm1661_vm4, %v10121_v53, %v9984_v22  ;;  %v10124_v39 = vld [vmem:[#allocation15_spill] sm:$0xff]  ;;  %v10125_v41 = vld [vmem:[#allocation24_spill] sm:$0xff] }
 0x237   : > { %v1564_v40 = vsel %vm1553_vm13, nan, %v1563_v56  ;;  %v1665_v29 = vxor.u32 2147483648, %v10121_v53  ;;  %v2581_v43 = vand.u32 2147483647, %v2580_v44  ;;  %vm9033_vm9 = vcmp.le.f32.partialorder %v2397_v46, 0.7853982 }
 0x238   : > { %v2457_v21 = vadd.s32 %v2456_v50, %v2452_v1  ;;  %v6688_v10 = vpack.i.bf16 %v1564_v40, %v8952_v55  ;;  %vm1664_vm5 = vcmp.eq.s32.totalorder %v10119_v48, 2  ;;  %v9039_v18 = vpop.eup %6818  ;;  %vm1761_vm3 = vweird.f32 %v10124_v39  ;;  %v10126_v6 = vld [vmem:[#allocation32_spill] sm:$0xff]  ;;  %v10127_v50 = vld [vmem:[#allocation29_spill] sm:$0xff] }
 0x239   : > { %v1666_v57 = vsel %vm1664_vm5, %v1665_v29, %v10120_v0  ;;  %vm1764_vm8 = vcmp.lt.s32.totalorder %v10125_v41, 2  ;;  %v1766_v44 = vxor.u32 2147483648, %v10126_v6  ;;  %v2584_v56 = vmul.f32 %v2583_v17, %v2581_v43  ;;  %v10128_v17 = vld [vmem:[#allocation22_spill] sm:$0xff] }
 0x23a   : > { %v2458_v46 = vadd.s32 536870912, %v2457_v21  ;;  %6689 = vrot.lane.b32.xlu0 %v6688_v10, %s6981_s21  ;;  %v1667_v1 = vsel %vm1660_vm11, %v1663_v26, %v1666_v57  ;;  %vm1765_vm14 = vcmp.eq.s32.totalorder %v10125_v41, 0  ;;  %vm1768_vm7 = vcmp.eq.s32.totalorder %v10125_v41, 2 }
 0x23b   : > { %v1668_v55 = vsel %vm1657_vm15, nan, %v1667_v1  ;;  %v1767_v40 = vsel %vm1765_vm14, %v10127_v50, %v1766_v44  ;;  %v1769_v22 = vxor.u32 2147483648, %v10127_v50  ;;  %v2585_v28 = vxor.u32 2147483648, %v2584_v56 }
 0x23c   : > { %v2459_v12 = vshrl.u32 %v2458_v46, 30  ;;  %vm3112_vm4 = vcmp.eq.s32.totalorder %v10128_v17, 0  ;;  %vm3115_vm5 = vcmp.eq.s32.totalorder %v10128_v17, 2  ;;  %vm3111_vm11 = vcmp.lt.s32.totalorder %v10128_v17, 2 }
 0x23d   : > { %v1770_v48 = vsel %vm1768_vm7, %v1769_v22, %v10126_v6  ;;  %v3114_v26 = vsel %vm3112_vm4, %v10112_v5, %v1454_v15  ;;  %v3117_v43 = vsel %vm3115_vm5, %v1457_v34, %v8147_v35  ;;  %v2586_v10 = vsel %vm2503_vm10, %v2585_v28, %v2584_v56 }
 0x23e   : > { %v2460_v57 = vshll.u32 %v2459_v12, 30  ;;  %v2483_v46 = vsub.s32 4, %v2459_v12  ;;  %v1771_v1 = vsel %vm1764_vm8, %v1767_v40, %v1770_v48  ;;  %v2589_v17 = vsel %vm8924_vm2, %v8678_v3, %v2586_v10  ;;  %v10132_v48 = vld [vmem:[#allocation30_spill] sm:$0xff] }
 0x23f   : > { %v1772_v24 = vsel %vm1761_vm3, nan, %v1771_v1  ;;  %v3118_v15 = vsel %vm3111_vm11, %v3114_v26, %v3117_v43  ;;  %vm3215_vm14 = vcmp.eq.s32.totalorder %v10129_v59, 0  ;;  %6820 = vcosq.f32 %v2589_v17 }
 0x240   : > { %v9074_v35 = vsub.s32 %v2457_v21, %v2460_v57  ;;  %v2484_v5 = vsel %vm2399_vm6, %v2483_v46, %v2459_v12  ;;  %v6693_v34 = vpack.i.bf16 %v1772_v24, %v1668_v55  ;;  %6822 = vsinq.f32 %v2589_v17 }
 0x241   : > { %v2486_v28 = vsel %vm9033_vm9, 0, %v2484_v5  ;;  %vm3214_vm10 = vcmp.lt.s32.totalorder %v10129_v59, 2  ;;  %v10130_v62 = vxor.u32 2147483648, %v10116_v32  ;;  %v3119_v21 = vsel %vm1449_vm12, nan, %v3118_v15 }
 0x242   : > { %v2463_v56 = vsub.s32 0, %v9074_v35  ;;  %v2490_v40 = vadd.s32 3, %v2486_v28  ;;  %6694 = vrot.lane.b32.xlu1 %v6693_v34, %s6981_s21  ;;  %vm3218_vm2 = vcmp.eq.s32.totalorder %v10129_v59, 2  ;;  %v9089_v24 = vand.u32 3, %v2486_v28 }
 0x243   : > { %v3217_v41 = vsel %vm3215_vm14, %v10117_v27, %v10130_v62  ;;  %v10131_v12 = vxor.u32 2147483648, %v10117_v27  ;;  %vm3317_vm8 = vcmp.lt.s32.totalorder %v10132_v48, 2  ;;  %vm3318_vm7 = vcmp.eq.s32.totalorder %v10132_v48, 0  ;;  %v10134_v27 = vld [vmem:[#allocation25_spill] sm:$0xff] }
 0x244   : > { %v6181_v26 = vmin.u32 %v2463_v56, %v9074_v35  ;;  %v10133_v10 = vxor.u32 2147483648, %v10120_v0  ;;  %vm3321_vm12 = vcmp.eq.s32.totalorder %v10132_v48, 2  ;;  %v9101_v59 = vand.u32 3, %v2490_v40  ;;  %v10136_v56 = vld [vmem:[#allocation34_spill] sm:$0xff] }
 0x245   : > { %v3220_v55 = vsel %vm3218_vm2, %v10131_v12, %v10116_v32  ;;  %v3323_v32 = vsel %vm3321_vm12, %v1665_v29, %v10120_v0  ;;  %vm3421_vm4 = vcmp.eq.s32.totalorder %v10134_v27, 0  ;;  %vm3420_vm5 = vcmp.lt.s32.totalorder %v10134_v27, 2 }
 0x246   : > { %v3221_v43 = vsel %vm3214_vm10, %v3217_v41, %v3220_v55  ;;  %v3320_v20 = vsel %vm3318_vm7, %v10121_v53, %v10133_v10  ;;  %v2465_v46 = vclz %v6181_v26  ;;  %v3423_v15 = vsel %vm3421_vm4, %v10127_v50, %v1766_v44  ;;  %v10137_v26 = vld [vmem:[#allocation17_spill] sm:$0xff] }
 0x247   : > { %v3222_v57 = vsel %vm1553_vm13, nan, %v3221_v43  ;;  %v3324_v17 = vsel %vm3317_vm8, %v3320_v20, %v3323_v32  ;;  %vm3424_vm11 = vcmp.eq.s32.totalorder %v10134_v27, 2  ;;  %vm1865_vm14 = vweird.f32 %v8076_v23 }
 0x248   : > { %v6698_v1 = vpack.i.bf16 %v3222_v57, %v3119_v21  ;;  %v3325_v5 = vsel %vm1657_vm15, nan, %v3324_v17  ;;  %v6182_v4 = vadd.s32 4294967294, %v2465_v46  ;;  %v3426_v0 = vsel %vm3424_vm11, %v1769_v22, %v10126_v6  ;;  %v10135_v22 = vld [vmem:[#allocation23_spill] sm:$0xff] }
 0x249   : > { %vm1868_vm13 = vcmp.lt.s32.totalorder %v8560_v51, 2  ;;  %v1870_v53 = vxor.u32 2147483648, %v8643_v11  ;;  %v3427_v29 = vsel %vm3420_vm5, %v3423_v15, %v3426_v0  ;;  %vm1869_vm10 = vcmp.eq.s32.totalorder %v8560_v51, 0  ;;  %v9120_v44 = vpop.eup %6820 }
 0x24a   : > { %6699 = vrot.lane.b32.xlu0 %v6698_v1, %s6990_s24  ;;  %vm1872_vm15 = vcmp.eq.s32.totalorder %v8560_v51, 2  ;;  %v1873_v58 = vxor.u32 2147483648, %v8634_v19  ;;  %vm6183_vm2 = vcmp.lt.s32.totalorder %v6182_v4, 0  ;;  %v3428_v50 = vsel %vm1761_vm3, nan, %v3427_v29  ;;  %v9126_v6 = vpop.eup %6822 }
 0x24b   : > { %v1871_v34 = vsel %vm1869_vm10, %v8634_v19, %v1870_v53  ;;  %vm1969_vm8 = vweird.f32 %v10135_v22  ;;  %v2468_v28 = vsel %vm6183_vm2, 0, %v6182_v4  ;;  %v6703_v62 = vpack.i.bf16 %v3428_v50, %v3325_v5 }
 0x24c   : > { %v1874_v41 = vsel %vm1872_vm15, %v1873_v58, %v8643_v11  ;;  %vm1972_vm7 = vcmp.lt.s32.totalorder %v10136_v56, 2  ;;  %v2469_v40 = vsub.s32 32, %v2468_v28  ;;  %v2473_v21 = vsub.s32 4294967266, %v2468_v28 }
 0x24d   : > { %v1875_v12 = vsel %vm1868_vm13, %v1871_v34, %v1874_v41  ;;  %vm1973_vm12 = vcmp.eq.s32.totalorder %v10136_v56, 0  ;;  %v2470_v39 = vshll.u32 %v9074_v35, %v2468_v28  ;;  %6704 = vrot.lane.b32.xlu1 %v6703_v62, %s6990_s24  ;;  %v1974_v48 = vxor.u32 2147483648, %v8623_v25  ;;  %v10138_v62 = vld [vmem:[#allocation35_spill] sm:$0xff] }
 0x24e   : > { %v1876_v55 = vsel %vm1865_vm14, nan, %v1875_v12  ;;  %v1977_v43 = vxor.u32 2147483648, %v10137_v26  ;;  %v2471_v10 = vshrl.u32 %v9019_v60, %v2469_v40  ;;  %v2474_v20 = vadd.s32 127, %v2473_v21 }
 0x24f   : > { %vm1976_vm3 = vcmp.eq.s32.totalorder %v10136_v56, 2  ;;  %vm2073_vm4 = vweird.f32 %v8262_v45  ;;  %v1975_v51 = vsel %vm1973_vm12, %v10137_v26, %v1974_v48  ;;  %vm2076_vm5 = vcmp.lt.s32.totalorder %v8699_v37, 2 }
 0x250   : > { %v1978_v35 = vsel %vm1976_vm3, %v1977_v43, %v8623_v25  ;;  %v2078_v57 = vxor.u32 2147483648, %v8851_v61  ;;  %v2472_v32 = vor.u32 %v2471_v10, %v2470_v39  ;;  %v2475_v27 = vshll.u32 %v2474_v20, 23  ;;  %v9172_v39 = vpop.permute.xlu0 %6669  ;;  %v10139_v20 = vld [vmem:[#allocation33_spill] sm:$0xff] }
 0x251   : > { %v1979_v46 = vsel %vm1972_vm7, %v1975_v51, %v1978_v35  ;;  %vm2077_vm11 = vcmp.eq.s32.totalorder %v8699_v37, 0  ;;  %vm2080_vm13 = vcmp.eq.s32.totalorder %v8699_v37, 2  ;;  %v2081_v17 = vxor.u32 2147483648, %v8843_v7 }
 0x252   : > { %v1980_v60 = vsel %vm1969_vm8, nan, %v1979_v46  ;;  %v2079_v1 = vsel %vm2077_vm11, %v8843_v7, %v2078_v57  ;;  %v2476_v15 = vor.u32 4788187, %v2475_v27  ;;  %v2479_v5 = vcvt.s32.f32 %v2472_v32  ;;  %v6675_v27 = vpop.permute.xlu1 %6674 }
 0x253   : > { %v6708_v4 = vpack.i.bf16 %v1980_v60, %v1876_v55  ;;  %vm2180_vm10 = vcmp.lt.s32.totalorder %v8565_v63, 2  ;;  %v2082_v0 = vsel %vm2080_vm13, %v2081_v17, %v8851_v61  ;;  %vm2181_vm15 = vcmp.eq.s32.totalorder %v8565_v63, 0 }
 0x254   : > { %v2182_v29 = vxor.u32 2147483648, %v8722_v16  ;;  %vm2184_vm2 = vcmp.eq.s32.totalorder %v8565_v63, 2  ;;  %v2477_v50 = vand.u32 2147483647, %v2476_v15  ;;  %v2083_v34 = vsel %vm2076_vm5, %v2079_v1, %v2082_v0 }
 0x255   : > { %6709 = vrot.lane.b32.xlu0 %v6708_v4, %s6981_s21  ;;  %v2185_v28 = vxor.u32 2147483648, %v8716_v52  ;;  %vm3523_vm7 = vcmp.lt.s32.totalorder %v10138_v62, 2  ;;  %v2084_v41 = vsel %vm2073_vm4, nan, %v2083_v34  ;;  %vm3524_vm12 = vcmp.eq.s32.totalorder %v10138_v62, 0  ;;  %v6957_v4 = vld [vmem:[%s7085_s19 + $0x10] sm:$0xff] }
 0x256   : > { %v2183_v56 = vsel %vm2181_vm15, %v8716_v52, %v2182_v29  ;;  %vm3527_vm3 = vcmp.eq.s32.totalorder %v10138_v62, 2  ;;  %v2480_v40 = vmul.f32 %v2479_v5, %v2477_v50  ;;  %v3526_v12 = vsel %vm3524_vm12, %v8634_v19, %v1870_v53  ;;  %v6685_v34 = vpop.permute.xlu1 %6684  ;;  %v9232_v62 = vld [vmem:[%s9897_s1 + $0x10] sm:$0x1f]  }
 0x257   : > { %v2186_v21 = vsel %vm2184_vm2, %v2185_v28, %v8722_v16  ;;  %v3529_v37 = vsel %vm3527_vm3, %v1873_v58, %v8643_v11  ;;  %vm2177_vm5 = vweird.f32 %v8102_v33  ;;  %vm3627_vm11 = vcmp.eq.s32.totalorder %v10139_v20, 0 }
 0x258   : > { %v2187_v55 = vsel %vm2180_vm10, %v2183_v56, %v2186_v21  ;;  %v3530_v10 = vsel %vm3523_vm7, %v3526_v12, %v3529_v37  ;;  %v2481_v51 = vxor.u32 2147483648, %v2480_v40  ;;  %vm3626_vm13 = vcmp.lt.s32.totalorder %v10139_v20, 2 }
 0x259   : > { %v2188_v35 = vsel %vm2177_vm5, nan, %v2187_v55  ;;  %v3629_v19 = vsel %vm3627_vm11, %v10137_v26, %v1974_v48  ;;  %v3531_v11 = vsel %vm1865_vm14, nan, %v3530_v10  ;;  %vm3630_vm15 = vcmp.eq.s32.totalorder %v10139_v20, 2 }
 0x25a   : > { %v6713_v53 = vpack.i.bf16 %v2188_v35, %v2084_v41  ;;  %vm3730_vm2 = vcmp.eq.s32.totalorder %v8701_v8, 0  ;;  %v2482_v63 = vsel %vm2399_vm6, %v2481_v51, %v2480_v40  ;;  %v3632_v58 = vsel %vm3630_vm15, %v1977_v43, %v8623_v25 }
 0x25b   : > { %v3732_v32 = vsel %vm3730_vm2, %v8843_v7, %v2078_v57  ;;  %vm3733_vm10 = vcmp.eq.s32.totalorder %v8701_v8, 2  ;;  %v2485_v48 = vsel %vm9033_vm9, %v8803_v2, %v2482_v63  ;;  %v3633_v23 = vsel %vm3626_vm13, %v3629_v19, %v3632_v58  ;;  %v9200_v7 = vpop.permute.xlu0 %6679 }
 0x25c   : > { %6714 = vrot.lane.b32.xlu1 %v6713_v53, %s6981_s21  ;;  %vm3729_vm14 = vcmp.lt.s32.totalorder %v8701_v8, 2  ;;  %v3735_v26 = vsel %vm3733_vm10, %v2081_v17, %v8851_v61  ;;  %6824 = vcosq.f32 %v2485_v48  ;;  %v3634_v25 = vsel %vm1969_vm8, nan, %v3633_v23 }
 0x25d   : > { %v3736_v43 = vsel %vm3729_vm14, %v3732_v32, %v3735_v26  ;;  %vm3833_vm6 = vcmp.eq.s32.totalorder %v8568_v14, 0  ;;  %6826 = vsinq.f32 %v2485_v48  ;;  %v6718_v47 = vpack.i.bf16 %v3634_v25, %v3531_v11 }
 0x25e   : > { %vm3832_vm9 = vcmp.lt.s32.totalorder %v8568_v14, 2  ;;  %v3835_v57 = vsel %vm3833_vm6, %v8716_v52, %v2182_v29  ;;  %v3737_v8 = vsel %vm2073_vm4, nan, %v3736_v43  ;;  %vm3836_vm7 = vcmp.eq.s32.totalorder %v8568_v14, 2  ;;  %v6956_v52 = vld [vmem:[%s7085_s19 + $0x18] sm:$0xff] }
 0x25f   : > { %v6672_v61 = vunpack.i.h.bf16 %v9172_v39  ;;  %v6677_v22 = vunpack.i.h.bf16 %v6675_v27  ;;  %6719 = vrot.lane.b32.xlu0 %v6718_v47, %s6990_s24  ;;  %v3838_v46 = vsel %vm3836_vm7, %v2185_v28, %v8722_v16  ;;  %v6671_v60 = vunpack.i.l.bf16 %v9172_v39 }
 0x260   : > { %v6676_v1 = vunpack.i.l.bf16 %v6675_v27  ;;  %v6682_v17 = vunpack.i.h.bf16 %v9200_v7  ;;  %v3839_v15 = vsel %vm3832_vm9, %v3835_v57, %v3838_v46  ;;  %v6681_v5 = vunpack.i.l.bf16 %v9200_v7 }
 0x261   : > { %v4384_v45 = vsel %vm873_vm1, %v6956_v52, %v6677_v22  ;;  %vm2281_vm8 = vweird.f32 %v8665_v54  ;;  %v3840_v14 = vsel %vm2177_vm5, nan, %v3839_v15  ;;  %vm2284_vm4 = vcmp.lt.s32.totalorder %v8907_v42, 2  ;;  %v10140_v22 = vld [vmem:[#allocation7_spill] sm:$0xff] }
 0x262   : > { %v4383_v0 = vsel %vm873_vm1, %v6957_v4, %v6676_v1  ;;  %v2286_v16 = vxor.u32 2147483648, %v9039_v18  ;;  %v6723_v29 = vpack.i.bf16 %v3840_v14, %v3737_v8  ;;  %vm2285_vm12 = vcmp.eq.s32.totalorder %v8907_v42, 0  ;;  %v6959_v52 = vld [vmem:[%s7085_s19 + $0x8] sm:$0xff] }
 0x263   : > { %vm2288_vm3 = vcmp.eq.s32.totalorder %v8907_v42, 2  ;;  %v2289_v50 = vxor.u32 2147483648, %v9006_v49  ;;  %vm2385_vm11 = vweird.f32 %v8662_v30  ;;  %vm2388_vm5 = vcmp.lt.s32.totalorder %v8895_v13, 2 }
 0x264   : > { %v2287_v28 = vsel %vm2285_vm12, %v9006_v49, %v2286_v16  ;;  %v2390_v33 = vxor.u32 2147483648, %v8982_v9  ;;  %6724 = vrot.lane.b32.xlu1 %v6723_v29, %s6990_s24  ;;  %vm2389_vm13 = vcmp.eq.s32.totalorder %v8895_v13, 0  ;;  %vm2392_vm15 = vcmp.eq.s32.totalorder %v8895_v13, 2 }
 0x265   : > { %v2290_v41 = vsel %vm2288_vm3, %v2289_v50, %v9039_v18  ;;  %v2393_v56 = vxor.u32 2147483648, %v8978_v38  ;;  %v6687_v12 = vunpack.i.h.bf16 %v6685_v34  ;;  %v6686_v37 = vunpack.i.l.bf16 %v6685_v34 }
 0x266   : > { %v2291_v40 = vsel %vm2284_vm4, %v2287_v28, %v2290_v41  ;;  %v2391_v21 = vsel %vm2389_vm13, %v8978_v38, %v2390_v33  ;;  %v9242_v55 = vpop.eup %6824  ;;  %vm4397_vm2 = vcmask 195584   ;;  %vm4470_vm10 = vcmask 1044480  }
 0x267   : > { %v2292_v10 = vsel %vm2281_vm8, nan, %v2291_v40  ;;  %v2394_v20 = vsel %vm2392_vm15, %v2393_v56, %v8982_v9  ;;  %v6827_v51 = vpop.eup %6826  ;;  %v4400_v42 = vsel %vm4397_vm2, %v4383_v0, %v6686_v37  ;;  %v4401_v19 = vsel %vm4397_vm2, %v4384_v45, %v6687_v12  ;;  %6580 = vmatprep.subr.msk.bf16.mxu0 %vm4470_vm10, %v9232_v62 }
 0x268   : > { %v2395_v35 = vsel %vm2388_vm5, %v2391_v21, %v2394_v20  ;;  %vm2489_vm14 = vweird.f32 %v8803_v2  ;;  %vm2492_vm6 = vcmp.lt.s32.totalorder %v9101_v59, 2  ;;  %vm2493_vm9 = vcmp.eq.s32.totalorder %v9101_v59, 0  ;;  %v6961_v21 = vld [vmem:[%s7085_s19 + $0x20] sm:$0xff] }
 0x269   : > { %v2396_v53 = vsel %vm2385_vm11, nan, %v2395_v35  ;;  %v2494_v11 = vxor.u32 2147483648, %v6827_v51  ;;  %vm2496_vm7 = vcmp.eq.s32.totalorder %v9101_v59, 2  ;;  %v2497_v13 = vxor.u32 2147483648, %v9242_v55 }
 0x26a   : > { %v6728_v63 = vpack.i.bf16 %v2396_v53, %v2292_v10  ;;  %vm2593_vm4 = vweird.f32 %v8678_v3  ;;  %vm2596_vm12 = vcmp.lt.s32.totalorder %v8980_v31, 2  ;;  %vm2597_vm3 = vcmp.eq.s32.totalorder %v8980_v31, 0 }
 0x26b   : > { %v2495_v58 = vsel %vm2493_vm9, %v9242_v55, %v2494_v11  ;;  %v2598_v32 = vxor.u32 2147483648, %v9126_v6  ;;  %v2498_v48 = vsel %vm2496_vm7, %v2497_v13, %v6827_v51  ;;  %vm2600_vm5 = vcmp.eq.s32.totalorder %v8980_v31, 2  ;;  %v6958_v31 = vld [vmem:[%s7085_s19] sm:$0xff] }
 0x26c   : > { %6729 = vrot.lane.b32.xlu0 %v6728_v63, %s6981_s21  ;;  %v2601_v23 = vxor.u32 2147483648, %v9120_v44  ;;  %vm3935_vm13 = vcmp.lt.s32.totalorder %v8903_v36, 2  ;;  %v2499_v26 = vsel %vm2492_vm6, %v2495_v58, %v2498_v48  ;;  %vm3936_vm15 = vcmp.eq.s32.totalorder %v8903_v36, 0 }
 0x26d   : > { %v2599_v27 = vsel %vm2597_vm3, %v9120_v44, %v2598_v32  ;;  %vm3939_vm9 = vcmp.eq.s32.totalorder %v8903_v36, 2  ;;  %v2500_v25 = vsel %vm2489_vm14, nan, %v2499_v26  ;;  %v3938_v47 = vsel %vm3936_vm15, %v9006_v49, %v2286_v16 }
 0x26e   : > { %v2602_v43 = vsel %vm2600_vm5, %v2601_v23, %v9126_v6  ;;  %v3941_v57 = vsel %vm3939_vm9, %v2289_v50, %v9039_v18  ;;  %vm4038_vm6 = vcmp.lt.s32.totalorder %v10140_v22, 2  ;;  %vm4039_vm7 = vcmp.eq.s32.totalorder %v10140_v22, 0 }
 0x26f   : > { %v2603_v59 = vsel %vm2596_vm12, %v2599_v27, %v2602_v43  ;;  %v3942_v8 = vsel %vm3935_vm13, %v3938_v47, %v3941_v57  ;;  %v4041_v1 = vsel %vm4039_vm7, %v8978_v38, %v2390_v33  ;;  %vm4042_vm3 = vcmp.eq.s32.totalorder %v10140_v22, 2  ;;  %v6752_v43 = vld [vmem:[%s9899_s3 + $0x8] sm:$0xff]  }
 0x270   : > { %v2604_v36 = vsel %vm2593_vm4, nan, %v2603_v59  ;;  %v3943_v46 = vsel %vm2281_vm8, nan, %v3942_v8  ;;  %v4044_v18 = vsel %vm4042_vm3, %v2393_v56, %v8982_v9  ;;  %v4381_v15 = vsel %vm873_vm1, %v6958_v31, %v6671_v60  ;;  %v6960_v56 = vld [vmem:[%s7085_s19 + $0x28] sm:$0xff] }
 0x271   : > { %v6733_v49 = vpack.i.bf16 %v2604_v36, %v2500_v25  ;;  %v4382_v45 = vsel %vm873_vm1, %v6959_v52, %v6672_v61  ;;  %v4045_v14 = vsel %vm4038_vm6, %v4041_v1, %v4044_v18  ;;  %v4398_v54 = vsel %vm4397_vm2, %v4381_v15, %v6681_v5  ;;  %v6751_v25 = vld [vmem:[%s9899_s3] sm:$0xff]   ;;  %v6964_v8 = vld [vmem:[%s7085_s19 + $0x48] sm:$0xff] }
 0x272   : > { %v4399_v38 = vsel %vm4397_vm2, %v4382_v45, %v6682_v17  ;;  %vm4445_vm8 = vcmask 343040   ;;  %v9304_v9 = vpack.c.bf16 %v4401_v19, %v4400_v42  ;;  %v4046_v60 = vsel %vm2385_vm11, nan, %v4045_v14  ;;  %v10141_v17 = vld [vmem:[#allocation12_spill] sm:$0xff]  ;;  %v6962_v19 = vld [vmem:[%s7085_s19 + $0x38] sm:$0xff]  ;;  %6438 = vmatprep.subr.bf16.mxu1 %v6751_v25  ;;  %v6965_v36 = vld [vmem:[%s7085_s19 + $0x40] sm:$0xff] }
 0x273   : > { %6734 = vrot.lane.b32.xlu1 %v6733_v49, %s6981_s21  ;;  %v9309_v39 = vpack.c.bf16 %v4399_v38, %v4398_v54  ;;  %v4472_v61 = vsel %vm4470_vm10, %v9232_v62, 0  ;;  %v6738_v4 = vpack.i.bf16 %v4046_v60, %v3943_v46  ;;  %vm4141_vm12 = vcmp.lt.s32.totalorder %v9089_v24, 2  ;;  %6439 = vmatpush3.bf16.msra.mxu1 %v6751_v25  ;;  %v6966_v54 = vld [vmem:[%s7085_s19 + $0x58] sm:$0xff]  ;;  %v6967_v60 = vld [vmem:[%s7085_s19 + $0x50] sm:$0xff] }
 0x274   : > { %6421 = vmatpush3.bf16.msra.mxu0 %v4472_v61  ;;  %vm4142_vm5 = vcmp.eq.s32.totalorder %v9089_v24, 0  ;;  %vm4145_vm13 = vcmp.eq.s32.totalorder %v9089_v24, 2  ;;  %vm4245_vm11 = vcmp.eq.s32.totalorder %v10141_v17, 0  ;;  %vm4248_vm15 = vcmp.eq.s32.totalorder %v10141_v17, 2  ;;  %6440 = vmatprep.subr.bf16.mxu1 %v6752_v43 }
 0x275   : > { %6422 = vmatprep.mubr.msk.bf16.mxu0 %vm4445_vm8, %v9309_v39  ;;  %v4144_v7 = vsel %vm4142_vm5, %v9242_v55, %v2494_v11  ;;  %v4147_v30 = vsel %vm4145_vm13, %v2497_v13, %v6827_v51  ;;  %6739 = vrot.lane.b32.xlu0 %v6738_v4, %s6990_s24  ;;  %vm4244_vm9 = vcmp.lt.s32.totalorder %v10141_v17, 2  ;;  %v4247_v0 = vsel %vm4245_vm11, %v9120_v44, %v2598_v32  ;;  %v6963_v11 = vld [vmem:[%s7085_s19 + $0x30] sm:$0xff] }
 0x276   : > { %v4148_v5 = vsel %vm4141_vm12, %v4144_v7, %v4147_v30  ;;  %v4250_v24 = vsel %vm4248_vm15, %v2601_v23, %v9126_v6 }
 0x277   : > { %v4149_v16 = vsel %vm2489_vm14, nan, %v4148_v5  ;;  %v4251_v29 = vsel %vm4244_vm9, %v4247_v0, %v4250_v24  ;;  %6423 = vmatmul.mubr.msk.bf16.vlgmr.msra.gmra.mrb[0].mxu0 %vm4445_vm8, %v9304_v9  ;;  %6441 = vmatpush3.bf16.msra.mxu1 %v6752_v43 }
 0x278   : > { %v4252_v50 = vsel %vm2593_vm4, nan, %v4251_v29 }
 0x279   : > { %v6743_v34 = vpack.i.bf16 %v4252_v50, %v4149_v16 }
 0x27b   : > { %6744 = vrot.lane.b32.xlu1 %v6743_v34, %s6990_s24  ;;  %v6968_v34 = vld [vmem:[%s7085_s19 + $0x68] sm:$0xff]  ;;  %s6993_s24 = smov 99  }
 0x2ac   : > { %v6690_v28 = vpop.permute.xlu0 %6689 }
 0x2ad   : > { %v6692_v33 = vunpack.i.h.bf16 %v6690_v28  ;;  %v6691_v62 = vunpack.i.l.bf16 %v6690_v28 }
 0x2af   : > { %v4386_v40 = vsel %vm873_vm1, %v6960_v56, %v6692_v33  ;;  %v4385_v12 = vsel %vm873_vm1, %v6961_v21, %v6691_v62  ;;  %v6969_v33 = vld [vmem:[%s7085_s19 + $0x60] sm:$0xff] }
 0x2b4   : > { %v6695_v44 = vpop.permute.xlu1 %6694 }
 0x2b5   : > { %v6697_v3 = vunpack.i.h.bf16 %v6695_v44  ;;  %v6696_v37 = vunpack.i.l.bf16 %v6695_v44 }
 0x2b7   : > { %v4388_v53 = vsel %vm873_vm1, %v6962_v19, %v6697_v3  ;;  %v4387_v63 = vsel %vm873_vm1, %v6963_v11, %v6696_v37  ;;  %v6970_v3 = vld [vmem:[%s7085_s19 + $0x78] sm:$0xff]  ;;  %v4583_v19 = vlaneseq  ;;  %v4579_v11 = vld [vmem:[%s9898_s2] sm:$0x1] }
 0x2bc   : > { %v6700_v41 = vpop.permute.xlu0 %6699 }
 0x2bd   : > { %v6702_v6 = vunpack.i.h.bf16 %v6700_v41  ;;  %v6701_v2 = vunpack.i.l.bf16 %v6700_v41 }
 0x2bf   : > { %v4402_v55 = vsel %vm4397_vm2, %v4385_v12, %v6701_v2  ;;  %v4403_v10 = vsel %vm4397_vm2, %v4386_v40, %v6702_v6  ;;  %v6705_v51 = vpop.permute.xlu1 %6704 }
 0x2c0   : > { %v9338_v20 = vpack.c.bf16 %v4403_v10, %v4402_v55  ;;  %v6707_v35 = vunpack.i.h.bf16 %v6705_v51  ;;  %v6706_v42 = vunpack.i.l.bf16 %v6705_v51  ;;  %v6971_v55 = vld [vmem:[%s7085_s19 + $0x70] sm:$0xff]  ;;  %s6991_s19 = smov 96  }
 0x2c2   : > { %6426 = vmatprep.mubr.msk.bf16.mxu0 %vm4445_vm8, %v9338_v20  ;;  %v4404_v13 = vsel %vm4397_vm2, %v4387_v63, %v6706_v42  ;;  %v4405_v58 = vsel %vm4397_vm2, %v4388_v53, %v6707_v35  ;;  %v4584_v53 = vshrl.u32 %v4583_v19, 7  ;;  %v4581_v63 = vpack.i.b16 %v4579_v11, %v4579_v11  ;;  %v6755_v11 = vld [vmem:[%s9906_s10] sm:$0xff]  }
 0x2c3   : > { %v9348_v32 = vpack.c.bf16 %v4405_v58, %v4404_v13 }
 0x2c4   : > { %v9401_v13 = vsub.s32 0, %v4584_v53 }
 0x2c5   : > { %6427 = vmatmul.mubr.msk.bf16.gmra.mrb[4].mxu0 %vm4445_vm8, %v9348_v32 }
 0x2c7   : > { %v6710_v48 = vpop.permute.xlu0 %6709 }
 0x2c8   : > { %v6712_v23 = vunpack.i.h.bf16 %v6710_v48  ;;  %v6711_v26 = vunpack.i.l.bf16 %v6710_v48 }
 0x2ca   : > { %v4390_v22 = vsel %vm873_vm1, %v6964_v8, %v6712_v23  ;;  %v4389_v46 = vsel %vm873_vm1, %v6965_v36, %v6711_v26  ;;  %v9404_v23 = vrot.slane %v4581_v63, %v9401_v13 }
 0x2ce   : > { %v6715_v27 = vpop.permute.xlu1 %6714 }
 0x2cf   : > { %v6717_v1 = vunpack.i.h.bf16 %v6715_v27  ;;  %v6716_v49 = vunpack.i.l.bf16 %v6715_v27 }
 0x2d1   : > { %v6720_v47 = vpop.permute.xlu0 %6719  ;;  %v4392_v38 = vsel %vm873_vm1, %v6966_v54, %v6717_v1  ;;  %v4391_v61 = vsel %vm873_vm1, %v6967_v60, %v6716_v49  ;;  %v6753_v60 = vld [vmem:[%s9901_s5] sm:$0xff]  }
 0x2d2   : > { %v6722_v57 = vunpack.i.h.bf16 %v6720_v47  ;;  %v6721_v59 = vunpack.i.l.bf16 %v6720_v47  ;;  %6458 = vmatprep.subr.bf16.mxu0 %v6753_v60  ;;  %6560 = vmatprep.subr.bf16.mxu1 %v6753_v60 }
 0x2d3   : > { %6459 = vmatpush3.bf16.msra.mxu0 %v6753_v60 }
 0x2d4   : > { %v4406_v18 = vsel %vm4397_vm2, %v4389_v46, %v6721_v59  ;;  %v4407_v31 = vsel %vm4397_vm2, %v4390_v22, %v6722_v57  ;;  %v6992_v59 = vmov 0  }
 0x2d5   : > { %v9364_v15 = vpack.c.bf16 %v4407_v31, %v4406_v18 }
 0x2d6   : > { %v6725_v52 = vpop.permute.xlu1 %6724 }
 0x2d7   : > { %v6727_v45 = vunpack.i.h.bf16 %v6725_v52  ;;  %v6726_v14 = vunpack.i.l.bf16 %v6725_v52  ;;  %6430 = vmatprep.mubr.msk.bf16.mxu0 %vm4445_vm8, %v9364_v15 }
 0x2d9   : > { %v4408_v4 = vsel %vm4397_vm2, %v4391_v61, %v6726_v14  ;;  %v4409_v7 = vsel %vm4397_vm2, %v4392_v38, %v6727_v45  ;;  %v6754_v61 = vld [vmem:[%s9901_s5 + $0x8] sm:$0xff]  }
 0x2da   : > { %v9374_v30 = vpack.c.bf16 %v4409_v7, %v4408_v4  ;;  %6460 = vmatprep.subr.bf16.mxu0 %v6754_v61 }
 0x2db   : > { %6461 = vmatpush3.bf16.msra.mxu0 %v6754_v61 }
 0x2dc   : > { %6431 = vmatmul.mubr.msk.bf16.gmra.mrb[8].mxu0 %vm4445_vm8, %v9374_v30 }
 0x2de   : > { %v6730_v17 = vpop.permute.xlu0 %6729 }
 0x2df   : > { %v6732_v5 = vunpack.i.h.bf16 %v6730_v17  ;;  %v6731_v0 = vunpack.i.l.bf16 %v6730_v17 }
 0x2e1   : > { %v4394_v28 = vsel %vm873_vm1, %v6968_v34, %v6732_v5  ;;  %v4393_v62 = vsel %vm873_vm1, %v6969_v33, %v6731_v0 }
 0x2e5   : > { %v6735_v24 = vpop.permute.xlu1 %6734 }
 0x2e6   : > { %v6737_v44 = vunpack.i.h.bf16 %v6735_v24  ;;  %v6736_v41 = vunpack.i.l.bf16 %v6735_v24 }
 0x2e7   : > { %v6740_v16 = vpop.permute.xlu0 %6739 }
 0x2e8   : > { %v6742_v29 = vunpack.i.h.bf16 %v6740_v16  ;;  %v6741_v50 = vunpack.i.l.bf16 %v6740_v16  ;;  %v4396_v37 = vsel %vm873_vm1, %v6970_v3, %v6737_v44  ;;  %v4395_v10 = vsel %vm873_vm1, %v6971_v55, %v6736_v41 }
 0x2e9   : > { %vm4619_vm1 = vcmask 261120  }
 0x2ea   : > { %v4410_v6 = vsel %vm4397_vm2, %v4393_v62, %v6741_v50  ;;  %v4411_v2 = vsel %vm4397_vm2, %v4394_v28, %v6742_v29 }
 0x2eb   : > { %v9384_v56 = vpack.c.bf16 %v4411_v2, %v4410_v6 }
 0x2ed   : > { %v6745_v40 = vpop.permute.xlu1 %6744  ;;  %6434 = vmatprep.mubr.msk.bf16.mxu0 %vm4445_vm8, %v9384_v56 }
 0x2ee   : > { %v6747_v21 = vunpack.i.h.bf16 %v6745_v40  ;;  %v6746_v12 = vunpack.i.l.bf16 %v6745_v40 }
 0x2f0   : > { %v4412_v51 = vsel %vm4397_vm2, %v4395_v10, %v6746_v12  ;;  %v4413_v35 = vsel %vm4397_vm2, %v4396_v37, %v6747_v21  ;;  %v4749_v12 = vld [vmem:[%s9900_s4] sm:$0x1] }
 0x2f1   : > { %v9394_v42 = vpack.c.bf16 %v4413_v35, %v4412_v51  ;;  %v4751_v3 = vpack.i.b16 %v4749_v12, %v4749_v12 }
 0x2f3   : > { %6435 = vmatmul.mubr.msk.bf16.gmra.mrb[12].mxu0 %vm4445_vm8, %v9394_v42  ;;  %v4756_v10 = vrot.slane %v4751_v3, %v9401_v13 }
 0x34a   : > { %v6424_v58 = vpop.f32.mrb[0].mxu0 }
 0x34b   : > { %v4508_v48 = vpop.f32.mrb[1].mxu0 }
 0x34c   : > { %v6425_v26 = vpop.f32.mrb[2].mxu0 }
 0x34d   : > { %v4572_v27 = vpack.c.bf16 %v6425_v26, %v6424_v58  ;;  %v4511_v25 = vpop.f32.mrb[3].mxu0 }
 0x34e   : > { %v4571_v43 = vpack.c.bf16 %v4511_v25, %v4508_v48 }
 0x34f   : > { %v4588_v47 = vadd.bf16 %v9404_v23, %v4572_v27  ;;  %4928 = vrot.lane.b32.xlu1 %v4572_v27, %s6991_s19 }
 0x350   : > { %v4587_v57 = vadd.bf16 %v9404_v23, %v4571_v43  ;;  %4926 = vrot.lane.b32.xlu0 %v4571_v43, %s6991_s19 }
 0x351   : > { %v4596_v22 = vmax.bf16 %v6992_v59, %v4588_v47 }
 0x352   : > { %v4595_v8 = vmax.bf16 %v6992_v59, %v4587_v57 }
 0x354   : > { %6442 = vmatprep.mubr.msk.bf16.mxu1 %vm4619_vm1, %v4595_v8 }
 0x355   : > { %6443 = vmatmul.mubr.msk.bf16.vlgmr.msra.gmra.mrb[0].mxu1 %vm4619_vm1, %v4596_v22 }
 0x356   : > { %6562 = vmatpush3.bf16.msra.mxu1 %v6753_v60 }
 0x357   : > { %6561 = vmatprep.subr.bf16.mxu1 %v6754_v61 }
 0x35a   : > { %6563 = vmatpush3.bf16.msra.mxu1 %v6754_v61 }
 0x35b   : > { %6498 = vmatprep.subr.bf16.mxu1 %v6755_v11 }
 0x398   : > { %v6428_v36 = vpop.f32.mrb[4].mxu0 }
 0x399   : > { %v4524_v46 = vpop.f32.mrb[5].mxu0 }
 0x39a   : > { %v6429_v1 = vpop.f32.mrb[6].mxu0 }
 0x39b   : > { %v4574_v49 = vpack.c.bf16 %v6429_v1, %v6428_v36  ;;  %v4527_v18 = vpop.f32.mrb[7].mxu0 }
 0x39c   : > { %v4573_v31 = vpack.c.bf16 %v4527_v18, %v4524_v46 }
 0x39d   : > { %v4590_v52 = vadd.bf16 %v9404_v23, %v4574_v49  ;;  %4932 = vrot.lane.b32.xlu1 %v4574_v49, %s6991_s19 }
 0x39e   : > { %v4589_v45 = vadd.bf16 %v9404_v23, %v4573_v31  ;;  %4930 = vrot.lane.b32.xlu0 %v4573_v31, %s6991_s19  ;;  %v6758_v31 = vld [vmem:[%s9903_s7] sm:$0xff]  }
 0x39f   : > { %v4598_v54 = vmax.bf16 %v6992_v59, %v4590_v52  ;;  %v6759_v52 = vld [vmem:[%s9903_s7 + $0x8] sm:$0xff]   ;;  %6478 = vmatprep.subr.bf16.mxu0 %v6758_v31 }
 0x3a0   : > { %v4597_v14 = vmax.bf16 %v6992_v59, %v4589_v45 }
 0x3a2   : > { %6446 = vmatprep.mubr.msk.bf16.mxu1 %vm4619_vm1, %v4597_v14 }
 0x3a3   : > { %6447 = vmatmul.mubr.msk.bf16.gmra.mrb[4].mxu1 %vm4619_vm1, %v4598_v54 }
 0x3af   : > { %v6432_v38 = vpop.f32.mrb[8].mxu0 }
 0x3b0   : > { %v4540_v4 = vpop.f32.mrb[9].mxu0 }
 0x3b1   : > { %v6433_v7 = vpop.f32.mrb[10].mxu0 }
 0x3b2   : > { %v4576_v17 = vpack.c.bf16 %v6433_v7, %v6432_v38  ;;  %v4543_v5 = vpop.f32.mrb[11].mxu0  ;;  %v6756_v7 = vld [vmem:[%s9906_s10 + $0x8] sm:$0xff]  }
 0x3b3   : > { %v4575_v0 = vpack.c.bf16 %v4543_v5, %v4540_v4 }
 0x3b4   : > { %v4592_v24 = vadd.bf16 %v9404_v23, %v4576_v17  ;;  %4936 = vrot.lane.b32.xlu1 %v4576_v17, %s6991_s19  ;;  %v6757_v17 = vld [vmem:[%s9906_s10 + $0x10] sm:$0x1f]  }
 0x3b5   : > { %v4591_v16 = vadd.bf16 %v9404_v23, %v4575_v0  ;;  %4934 = vrot.lane.b32.xlu0 %v4575_v0, %s6991_s19  ;;  %v5458_v5 = vsel %vm4470_vm10, %v6757_v17, 0 }
 0x3b6   : > { %v4600_v50 = vmax.bf16 %v6992_v59, %v4592_v24 }
 0x3b7   : > { %v4599_v29 = vmax.bf16 %v6992_v59, %v4591_v16 }
 0x3b9   : > { %6450 = vmatprep.mubr.msk.bf16.mxu1 %vm4619_vm1, %v4599_v29 }
 0x3ba   : > { %6451 = vmatmul.mubr.msk.bf16.gmra.mrb[8].mxu1 %vm4619_vm1, %v4600_v50 }
 0x3c6   : > { %v6436_v34 = vpop.f32.mrb[12].mxu0 }
 0x3c7   : > { %v4556_v28 = vpop.f32.mrb[13].mxu0 }
 0x3c8   : > { %v6437_v33 = vpop.f32.mrb[14].mxu0 }
 0x3c9   : > { %v4578_v62 = vpack.c.bf16 %v6437_v33, %v6436_v34  ;;  %v4559_v44 = vpop.f32.mrb[15].mxu0 }
 0x3ca   : > { %v4577_v41 = vpack.c.bf16 %v4559_v44, %v4556_v28 }
 0x3cb   : > { %v4594_v6 = vadd.bf16 %v9404_v23, %v4578_v62  ;;  %4940 = vrot.lane.b32.xlu1 %v4578_v62, %s6991_s19 }
 0x3cc   : > { %v4593_v2 = vadd.bf16 %v9404_v23, %v4577_v41  ;;  %4938 = vrot.lane.b32.xlu0 %v4577_v41, %s6991_s19 }
 0x3cd   : > { %v4602_v21 = vmax.bf16 %v6992_v59, %v4594_v6 }
 0x3ce   : > { %v4601_v40 = vmax.bf16 %v6992_v59, %v4593_v2 }
 0x3d0   : > { %6454 = vmatprep.mubr.msk.bf16.mxu1 %vm4619_vm1, %v4601_v40 }
 0x3d1   : > { %6455 = vmatmul.mubr.msk.bf16.gmra.mrb[12].mxu1 %vm4619_vm1, %v4602_v21  ;;  %v4927_v21 = vpop.permute.xlu0 %4926 }
 0x428   : > { %v6444_v37 = vpop.f32.mrb[0].mxu1 }
 0x429   : > { %v4678_v55 = vpop.f32.mrb[1].mxu1 }
 0x42a   : > { %v6445_v51 = vpop.f32.mrb[2].mxu1 }
 0x42b   : > { %v4742_v35 = vpack.c.bf16 %v6445_v51, %v6444_v37  ;;  %v4681_v19 = vpop.f32.mrb[3].mxu1 }
 0x42c   : > { %v4741_v53 = vpack.c.bf16 %v4681_v19, %v4678_v55 }
 0x42d   : > { %v4758_v63 = vadd.bf16 %v4756_v10, %v4742_v35 }
 0x42e   : > { %v4757_v58 = vadd.bf16 %v4756_v10, %v4741_v53 }
 0x42f   : > { %v4766_v23 = vmax.bf16 %v6992_v59, %v4758_v63 }
 0x430   : > { %v4765_v48 = vmax.bf16 %v6992_v59, %v4757_v58  ;;  %v4931_v58 = vpop.permute.xlu0 %4930 }
 0x432   : > { %6462 = vmatprep.mubr.msk.bf16.mxu0 %vm4619_vm1, %v4765_v48 }
 0x433   : > { %6463 = vmatmul.mubr.msk.bf16.vlgmr.msra.gmra.mrb[16].mxu0 %vm4619_vm1, %v4766_v23 }
 0x434   : > { %6479 = vmatpush3.bf16.msra.mxu0 %v6758_v31 }
 0x435   : > { %6480 = vmatprep.subr.bf16.mxu0 %v6759_v52 }
 0x438   : > { %6481 = vmatpush3.bf16.msra.mxu0 %v6759_v52  ;;  %v6760_v52 = vld [vmem:[%s9905_s9] sm:$0xff]  }
 0x476   : > { %v6448_v26 = vpop.f32.mrb[4].mxu1 }
 0x477   : > { %v4694_v27 = vpop.f32.mrb[5].mxu1 }
 0x478   : > { %v6449_v25 = vpop.f32.mrb[6].mxu1 }
 0x479   : > { %v4744_v43 = vpack.c.bf16 %v6449_v25, %v6448_v26  ;;  %v4697_v47 = vpop.f32.mrb[7].mxu1 }
 0x47a   : > { %v4743_v57 = vpack.c.bf16 %v4697_v47, %v4694_v27 }
 0x47b   : > { %v4760_v8 = vadd.bf16 %v4756_v10, %v4744_v43 }
 0x47c   : > { %v4759_v22 = vadd.bf16 %v4756_v10, %v4743_v57 }
 0x47d   : > { %v4768_v46 = vmax.bf16 %v6992_v59, %v4760_v8 }
 0x47e   : > { %v4767_v36 = vmax.bf16 %v6992_v59, %v4759_v22 }
 0x480   : > { %6466 = vmatprep.mubr.msk.bf16.mxu0 %vm4619_vm1, %v4767_v36 }
 0x481   : > { %6467 = vmatmul.mubr.msk.bf16.gmra.mrb[20].mxu0 %vm4619_vm1, %v4768_v46 }
 0x48d   : > { %v6452_v1 = vpop.f32.mrb[8].mxu1 }
 0x48e   : > { %v4710_v49 = vpop.f32.mrb[9].mxu1 }
 0x48f   : > { %v6453_v18 = vpop.f32.mrb[10].mxu1 }
 0x490   : > { %v4746_v45 = vpack.c.bf16 %v6453_v18, %v6452_v1  ;;  %v4713_v14 = vpop.f32.mrb[11].mxu1 }
 0x491   : > { %v4745_v54 = vpack.c.bf16 %v4713_v14, %v4710_v49  ;;  %v4935_v49 = vpop.permute.xlu0 %4934 }
 0x492   : > { %v4762_v38 = vadd.bf16 %v4756_v10, %v4746_v45  ;;  %v6761_v45 = vld [vmem:[%s9905_s9 + $0x8] sm:$0xff]  }
 0x493   : > { %v4761_v60 = vadd.bf16 %v4756_v10, %v4745_v54 }
 0x494   : > { %v4770_v4 = vmax.bf16 %v6992_v59, %v4762_v38 }
 0x495   : > { %v4769_v61 = vmax.bf16 %v6992_v59, %v4761_v60 }
 0x497   : > { %6470 = vmatprep.mubr.msk.bf16.mxu1 %vm4619_vm1, %v4769_v61 }
 0x498   : > { %6471 = vmatmul.mubr.msk.bf16.vlgmr.msra.gmra.mrb[16].mxu1 %vm4619_vm1, %v4770_v4 }
 0x499   : > { %6499 = vmatpush3.bf16.msra.mxu1 %v6755_v11 }
 0x49a   : > { %6500 = vmatprep.subr.bf16.mxu1 %v6756_v7 }
 0x49d   : > { %6501 = vmatpush3.bf16.msra.mxu1 %v6756_v7 }
 0x49e   : > { %6581 = vmatprep.subr.msk.bf16.mxu1 %vm4470_vm10, %v6757_v17 }
 0x4a1   : > { %6503 = vmatpush3.bf16.msra.mxu1 %v5458_v5 }
 0x4a2   : > { %6520 = vmatprep.subr.bf16.mxu1 %v6760_v52 }
 0x4a4   : > { %v6456_v0 = vpop.f32.mrb[12].mxu1 }
 0x4a5   : > { %v4726_v24 = vpop.f32.mrb[13].mxu1 }
 0x4a6   : > { %v6457_v16 = vpop.f32.mrb[14].mxu1 }
 0x4a7   : > { %v4748_v29 = vpack.c.bf16 %v6457_v16, %v6456_v0  ;;  %v4729_v50 = vpop.f32.mrb[15].mxu1  ;;  %v4939_v16 = vpop.permute.xlu0 %4938 }
 0x4a8   : > { %v4747_v34 = vpack.c.bf16 %v4729_v50, %v4726_v24 }
 0x4a9   : > { %v4764_v28 = vadd.bf16 %v4756_v10, %v4748_v29 }
 0x4aa   : > { %v4763_v33 = vadd.bf16 %v4756_v10, %v4747_v34 }
 0x4ab   : > { %v4772_v44 = vmax.bf16 %v6992_v59, %v4764_v28 }
 0x4ac   : > { %v4771_v62 = vmax.bf16 %v6992_v59, %v4763_v33 }
 0x4ae   : > { %6474 = vmatprep.mubr.msk.bf16.mxu1 %vm4619_vm1, %v4771_v62 }
 0x4af   : > { %6475 = vmatmul.mubr.msk.bf16.gmra.mrb[20].mxu1 %vm4619_vm1, %v4772_v44  ;;  %v9536_v44 = vld [vmem:[%s9904_s8] ss:$0 sm:$0xff] }
 0x4b0   : > { %6504 = vmatprep.mubr.msk.bf16.mxu1 %vm4445_vm8, %v9309_v39 }
 0x4b7   : > { %6505 = vmatmul.mubr.msk.bf16.vlgmr.msra.gmra.mrb[24].mxu1 %vm4445_vm8, %v9304_v9  ;;  %v4958_v9 = vld [vmem:[%s9902_s6] sm:$0x1] }
 0x4b8   : > { %6508 = vmatprep.mubr.msk.bf16.mxu1 %vm4445_vm8, %v9338_v20  ;;  %v4960_v39 = vpack.i.b16 %v4958_v9, %v4958_v9  ;;  %6521 = vmatpush3.bf16.msra.mxu1 %v6760_v52 }
 0x4b9   : > { %6522 = vmatprep.subr.bf16.mxu1 %v6761_v45 }
 0x4bc   : > { %6523 = vmatpush3.bf16.msra.mxu1 %v6761_v45 }
 0x4bf   : > { %6509 = vmatmul.mubr.msk.bf16.gmra.mrb[28].mxu1 %vm4445_vm8, %v9348_v32 }
 0x4c0   : > { %6512 = vmatprep.mubr.msk.bf16.mxu1 %vm4445_vm8, %v9364_v15  ;;  %v9501_v15 = vrot.slane %v4960_v39, %v9401_v13 }
 0x4c7   : > { %6513 = vmatmul.mubr.msk.bf16.gmra.mrb[32].mxu1 %vm4445_vm8, %v9374_v30  ;;  %v4929_v30 = vpop.permute.xlu1 %4928 }
 0x4c8   : > { %6516 = vmatprep.mubr.msk.bf16.mxu1 %vm4445_vm8, %v9384_v56 }
 0x4cb   : > { %v4933_v11 = vpop.permute.xlu1 %4932 }
 0x4cf   : > { %6517 = vmatmul.mubr.msk.bf16.gmra.mrb[36].mxu1 %vm4445_vm8, %v9394_v42  ;;  %v4937_v46 = vpop.permute.xlu1 %4936 }
 0x4d3   : > { %v4941_v0 = vpop.permute.xlu1 %4940 }
 0x506   : > { %v6464_v20 = vpop.f32.mrb[16].mxu0 }
 0x507   : > { %v4847_v41 = vpop.f32.mrb[17].mxu0 }
 0x508   : > { %v6465_v32 = vpop.f32.mrb[18].mxu0 }
 0x509   : > { %v4911_v6 = vpack.c.bf16 %v6465_v32, %v6464_v20  ;;  %v4850_v2 = vpop.f32.mrb[19].mxu0 }
 0x50a   : > { %v4910_v40 = vpack.c.bf16 %v4850_v2, %v4847_v41 }
 0x50b   : > { %v4951_v56 = vadd.bf16 %v4929_v30, %v4911_v6 }
 0x50c   : > { %v4950_v12 = vadd.bf16 %v4927_v21, %v4910_v40 }
 0x50d   : > { %v4967_v42 = vadd.bf16 %v9501_v15, %v4951_v56 }
 0x50e   : > { %v4966_v3 = vadd.bf16 %v9501_v15, %v4950_v12 }
 0x50f   : > { %v4975_v55 = vmax.bf16 %v6992_v59, %v4967_v42 }
 0x510   : > { %v4974_v37 = vmax.bf16 %v6992_v59, %v4966_v3 }
 0x512   : > { %6482 = vmatprep.mubr.msk.bf16.mxu0 %vm4619_vm1, %v4974_v37 }
 0x513   : > { %6483 = vmatmul.mubr.msk.bf16.vlgmr.msra.gmra.mrb[24].mxu0 %vm4619_vm1, %v4975_v55 }
 0x554   : > { %v6468_v10 = vpop.f32.mrb[20].mxu0 }
 0x555   : > { %v4863_v51 = vpop.f32.mrb[21].mxu0 }
 0x556   : > { %v6469_v35 = vpop.f32.mrb[22].mxu0 }
 0x557   : > { %v4913_v19 = vpack.c.bf16 %v6469_v35, %v6468_v10  ;;  %v4866_v53 = vpop.f32.mrb[23].mxu0 }
 0x558   : > { %v4912_v63 = vpack.c.bf16 %v4866_v53, %v4863_v51 }
 0x559   : > { %v4953_v48 = vadd.bf16 %v4933_v11, %v4913_v19 }
 0x55a   : > { %v4952_v23 = vadd.bf16 %v4931_v58, %v4912_v63 }
 0x55b   : > { %v4969_v26 = vadd.bf16 %v9501_v15, %v4953_v48 }
 0x55c   : > { %v4968_v27 = vadd.bf16 %v9501_v15, %v4952_v23 }
 0x55d   : > { %v4977_v43 = vmax.bf16 %v6992_v59, %v4969_v26 }
 0x55e   : > { %v4976_v25 = vmax.bf16 %v6992_v59, %v4968_v27 }
 0x560   : > { %6486 = vmatprep.mubr.msk.bf16.mxu0 %vm4619_vm1, %v4976_v25 }
 0x561   : > { %6487 = vmatmul.mubr.msk.bf16.gmra.mrb[28].mxu0 %vm4619_vm1, %v4977_v43 }
 0x56b   : > { %v6472_v47 = vpop.f32.mrb[16].mxu1 }
 0x56c   : > { %v4879_v57 = vpop.f32.mrb[17].mxu1 }
 0x56d   : > { %v6473_v8 = vpop.f32.mrb[18].mxu1 }
 0x56e   : > { %v4915_v22 = vpack.c.bf16 %v6473_v8, %v6472_v47  ;;  %v4882_v36 = vpop.f32.mrb[19].mxu1 }
 0x56f   : > { %v4914_v1 = vpack.c.bf16 %v4882_v36, %v4879_v57 }
 0x570   : > { %v4955_v18 = vadd.bf16 %v4937_v46, %v4915_v22 }
 0x571   : > { %v4954_v31 = vadd.bf16 %v4935_v49, %v4914_v1 }
 0x572   : > { %v4971_v14 = vadd.bf16 %v9501_v15, %v4955_v18 }
 0x573   : > { %v4970_v54 = vadd.bf16 %v9501_v15, %v4954_v31 }
 0x574   : > { %v4979_v60 = vmax.bf16 %v6992_v59, %v4971_v14 }
 0x575   : > { %v4978_v38 = vmax.bf16 %v6992_v59, %v4970_v54 }
 0x577   : > { %6490 = vmatprep.mubr.msk.bf16.mxu0 %vm4619_vm1, %v4978_v38 }
 0x578   : > { %6491 = vmatmul.mubr.msk.bf16.gmra.mrb[32].mxu0 %vm4619_vm1, %v4979_v60 }
 0x582   : > { %v6476_v61 = vpop.f32.mrb[20].mxu1 }
 0x583   : > { %v4895_v4 = vpop.f32.mrb[21].mxu1 }
 0x584   : > { %v6477_v7 = vpop.f32.mrb[22].mxu1 }
 0x585   : > { %v4917_v17 = vpack.c.bf16 %v6477_v7, %v6476_v61  ;;  %v4898_v5 = vpop.f32.mrb[23].mxu1 }
 0x586   : > { %v4916_v24 = vpack.c.bf16 %v4898_v5, %v4895_v4 }
 0x587   : > { %v4957_v29 = vadd.bf16 %v4941_v0, %v4917_v17 }
 0x588   : > { %v4956_v50 = vadd.bf16 %v4939_v16, %v4916_v24 }
 0x589   : > { %v4973_v34 = vadd.bf16 %v9501_v15, %v4957_v29 }
 0x58a   : > { %v4972_v28 = vadd.bf16 %v9501_v15, %v4956_v50 }
 0x58b   : > { %v4981_v62 = vmax.bf16 %v6992_v59, %v4973_v34 }
 0x58c   : > { %v4980_v33 = vmax.bf16 %v6992_v59, %v4972_v28 }
 0x58e   : > { %6494 = vmatprep.mubr.msk.bf16.mxu0 %vm4619_vm1, %v4980_v33 }
 0x58f   : > { %6495 = vmatmul.mubr.msk.bf16.gmra.mrb[36].mxu0 %vm4619_vm1, %v4981_v62 }
 0x5e6   : > { %v6484_v9 = vpop.f32.mrb[24].mxu0 }
 0x5e7   : > { %v9539_v39 = vadd.f32 %v6484_v9, %v9536_v44  ;;  %v5063_v20 = vpop.f32.mrb[25].mxu0 }
 0x5e8   : > { %v9542_v41 = vadd.f32 %v9536_v44, %v5063_v20  ;;  %v6485_v32 = vpop.f32.mrb[26].mxu0 }
 0x5e9   : > { %v5176_v6 = vand.u32 2147483647, %v9539_v39  ;;  %v9546_v15 = vadd.f32 %v6485_v32, %v9536_v44  ;;  %v5066_v2 = vpop.f32.mrb[27].mxu0  ;;  %v5128_v45 = vmax.f32 %v9539_v39, 0.0  ;;  %vm5144_vm2 = vcmp.ne.f32.partialorder %v9539_v39, %v9539_v39 }
 0x5ea   : > { %v5174_v30 = vand.u32 2147483647, %v9542_v41  ;;  %v9550_v40 = vadd.f32 %v9536_v44, %v5066_v2  ;;  %v5126_v61 = vmax.f32 %v9542_v41, 0.0  ;;  %vm5142_vm3 = vcmp.ne.f32.partialorder %v9542_v41, %v9542_v41 }
 0x5eb   : > { %v5192_v21 = vsub.f32 0.0, %v5176_v6  ;;  %v5177_v56 = vand.u32 2147483647, %v9546_v15  ;;  %v5415_v12 = vpack.c.bf16 %v9546_v15, %v9539_v39  ;;  %v5129_v28 = vmax.f32 %v9546_v15, 0.0 }
 0x5ec   : > { %v5190_v42 = vsub.f32 0.0, %v5174_v30  ;;  %v5175_v3 = vand.u32 2147483647, %v9550_v40  ;;  %v5414_v37 = vpack.c.bf16 %v9550_v40, %v9542_v41  ;;  %v5127_v9 = vmax.f32 %v9550_v40, 0.0 }
 0x5ed   : > { %v5210_v55 = vmul.f32 1.442695, %v5192_v21  ;;  %v5193_v10 = vsub.f32 0.0, %v5177_v56  ;;  %v5423_v11 = vmax.bf16 %v6992_v59, %v5415_v12  ;;  %vm5145_vm7 = vcmp.ne.f32.partialorder %v9546_v15, %v9546_v15 }
 0x5ee   : > { %v5206_v51 = vmul.f32 1.442695, %v5190_v42  ;;  %v5191_v35 = vsub.f32 0.0, %v5175_v3  ;;  %v5422_v19 = vmax.bf16 %v6992_v59, %v5414_v37  ;;  %vm5143_vm8 = vcmp.ne.f32.partialorder %v9550_v40, %v9550_v40 }
 0x5ef   : > { %6828 = vpow2.f32 %v5210_v55  ;;  %v5212_v53 = vmul.f32 1.442695, %v5193_v10 }
 0x5f0   : > { %6830 = vpow2.f32 %v5206_v51  ;;  %v5208_v63 = vmul.f32 1.442695, %v5191_v35  ;;  %6524 = vmatprep.mubr.msk.bf16.mxu1 %vm4619_vm1, %v5422_v19 }
 0x5f1   : > { %6832 = vpow2.f32 %v5212_v53  ;;  %6525 = vmatmul.mubr.msk.bf16.vlgmr.msra.gmra.mrb[24].mxu1 %vm4619_vm1, %v5423_v11 }
 0x5f2   : > { %6834 = vpow2.f32 %v5208_v63 }
 0x5f9   : > { %v6829_v58 = vpop.eup %6828 }
 0x5fa   : > { %v6831_v48 = vpop.eup %6830  ;;  %v5256_v23 = vadd.f32 1.0, %v6829_v58  ;;  %v5259_v57 = vmul.f32 -0.5, %v6829_v58  ;;  %v5262_v1 = vand.u32 2147483647, %v6829_v58 }
 0x5fb   : > { %v6833_v26 = vpop.eup %6832  ;;  %v5238_v27 = vadd.f32 1.0, %v6831_v48  ;;  %v5241_v8 = vmul.f32 -0.5, %v6831_v48  ;;  %v5244_v31 = vand.u32 2147483647, %v6831_v48 }
 0x5fc   : > { %v6835_v25 = vpop.eup %6834  ;;  %6836 = vlog2.f32 %v5256_v23  ;;  %v5265_v43 = vadd.f32 1.0, %v6833_v26  ;;  %v5268_v22 = vmul.f32 -0.5, %v6833_v26  ;;  %v5260_v36 = vadd.f32 1.0, %v5259_v57 }
 0x5fd   : > { %6838 = vlog2.f32 %v5238_v27  ;;  %v5247_v47 = vadd.f32 1.0, %v6835_v25  ;;  %v5250_v46 = vmul.f32 -0.5, %v6835_v25  ;;  %v5242_v49 = vadd.f32 1.0, %v5241_v8 }
 0x5fe   : > { %6840 = vlog2.f32 %v5265_v43  ;;  %v5269_v18 = vadd.f32 1.0, %v5268_v22  ;;  %v5271_v14 = vand.u32 2147483647, %v6833_v26  ;;  %v5261_v60 = vmul.f32 %v6829_v58, %v5260_v36 }
 0x5ff   : > { %6842 = vlog2.f32 %v5247_v47  ;;  %v5251_v4 = vadd.f32 1.0, %v5250_v46  ;;  %vm5263_vm10 = vcmp.lt.f32.partialorder %v5262_v1, 0.0004427343  ;;  %v5243_v5 = vmul.f32 %v6831_v48, %v5242_v49 }
 0x600   : > { %v5253_v0 = vand.u32 2147483647, %v6835_v25  ;;  %v5270_v29 = vmul.f32 %v6833_v26, %v5269_v18  ;;  %vm5245_vm14 = vcmp.lt.f32.partialorder %v5244_v31, 0.0004427343  ;;  %vm5272_vm4 = vcmp.lt.f32.partialorder %v5271_v14, 0.0004427343 }
 0x601   : > { %v5252_v32 = vmul.f32 %v6835_v25, %v5251_v4 }
 0x602   : > { %vm5254_vm6 = vcmp.lt.f32.partialorder %v5253_v0, 0.0004427343 }
 0x606   : > { %v6837_v52 = vpop.eup %6836 }
 0x607   : > { %v6839_v54 = vpop.eup %6838  ;;  %v5258_v38 = vmul.f32 0.6931472, %v6837_v52 }
 0x608   : > { %v6841_v7 = vpop.eup %6840  ;;  %v5240_v17 = vmul.f32 0.6931472, %v6839_v54 }
 0x609   : > { %v5264_v24 = vsel %vm5263_vm10, %v5261_v60, %v5258_v38  ;;  %v5267_v16 = vmul.f32 0.6931472, %v6841_v7  ;;  %v6843_v50 = vpop.eup %6842 }
 0x60a   : > { %v5384_v34 = vadd.f32 %v5264_v24, %v5128_v45  ;;  %v5246_v33 = vsel %vm5245_vm14, %v5243_v5, %v5240_v17  ;;  %v5249_v20 = vmul.f32 0.6931472, %v6843_v50 }
 0x60b   : > { %v5273_v62 = vsel %vm5272_vm4, %v5270_v29, %v5267_v16  ;;  %v5382_v30 = vadd.f32 %v5246_v33, %v5126_v61 }
 0x60c   : > { %v5400_v6 = vsel %vm5144_vm2, %v9539_v39, %v5384_v34  ;;  %v5385_v2 = vadd.f32 %v5273_v62, %v5129_v28  ;;  %v5255_v21 = vsel %vm5254_vm6, %v5252_v32, %v5249_v20 }
 0x60d   : > { %5998 = vrot.lane.b32.xlu0 %v5400_v6, %s6993_s24  ;;  %v5383_v12 = vadd.f32 %v5255_v21, %v5127_v9  ;;  %v5398_v39 = vsel %vm5142_vm3, %v9542_v41, %v5382_v30 }
 0x60e   : > { %v5401_v56 = vsel %vm5145_vm7, %v9546_v15, %v5385_v2 }
 0x60f   : > { %6000 = vrot.lane.b32.xlu1 %v5401_v56, %s6993_s24  ;;  %v5399_v42 = vsel %vm5143_vm8, %v9550_v40, %v5383_v12 }
 0x611   : > { %5994 = vrot.lane.b32.xlu0 %v5398_v39, %s6993_s24 }
 0x613   : > { %5996 = vrot.lane.b32.xlu1 %v5399_v42, %s6993_s24 }
 0x634   : > { %v6488_v3 = vpop.f32.mrb[28].mxu0 }
 0x635   : > { %v9586_v15 = vadd.f32 %v6488_v3, %v9536_v44  ;;  %v5079_v37 = vpop.f32.mrb[29].mxu0 }
 0x636   : > { %v9589_v55 = vadd.f32 %v9536_v44, %v5079_v37  ;;  %v6489_v10 = vpop.f32.mrb[30].mxu0 }
 0x637   : > { %v5180_v41 = vand.u32 2147483647, %v9586_v15  ;;  %v9593_v51 = vadd.f32 %v6489_v10, %v9536_v44  ;;  %v5082_v35 = vpop.f32.mrb[31].mxu0  ;;  %v5132_v54 = vmax.f32 %v9586_v15, 0.0  ;;  %vm5148_vm11 = vcmp.ne.f32.partialorder %v9586_v15, %v9586_v15 }
 0x638   : > { %v5178_v19 = vand.u32 2147483647, %v9589_v55  ;;  %v9597_v40 = vadd.f32 %v9536_v44, %v5082_v35  ;;  %v5130_v5 = vmax.f32 %v9589_v55, 0.0  ;;  %vm5146_vm2 = vcmp.ne.f32.partialorder %v9589_v55, %v9589_v55 }
 0x639   : > { %v5196_v53 = vsub.f32 0.0, %v5180_v41  ;;  %v5181_v11 = vand.u32 2147483647, %v9593_v51  ;;  %v5417_v63 = vpack.c.bf16 %v9593_v51, %v9586_v15  ;;  %v5133_v4 = vmax.f32 %v9593_v51, 0.0 }
 0x63a   : > { %v5194_v58 = vsub.f32 0.0, %v5178_v19  ;;  %v5179_v48 = vand.u32 2147483647, %v9597_v40  ;;  %v5416_v23 = vpack.c.bf16 %v9597_v40, %v9589_v55  ;;  %vm5149_vm15 = vcmp.ne.f32.partialorder %v9593_v51, %v9593_v51 }
 0x63b   : > { %v5218_v26 = vmul.f32 1.442695, %v5196_v53  ;;  %v5197_v27 = vsub.f32 0.0, %v5181_v11  ;;  %v5425_v8 = vmax.bf16 %v6992_v59, %v5417_v63  ;;  %vm5147_vm10 = vcmp.ne.f32.partialorder %v9597_v40, %v9597_v40 }
 0x63c   : > { %v5214_v25 = vmul.f32 1.442695, %v5194_v58  ;;  %v5195_v43 = vsub.f32 0.0, %v5179_v48  ;;  %v5424_v47 = vmax.bf16 %v6992_v59, %v5416_v23  ;;  %v6762_v58 = vld [vmem:[%s9908_s12] sm:$0xff]   ;;  %v6763_v48 = vld [vmem:[%s9908_s12 + $0x8] sm:$0xff]  }
 0x63d   : > { %6844 = vpow2.f32 %v5218_v26  ;;  %v5220_v57 = vmul.f32 1.442695, %v5197_v27  ;;  %6540 = vmatprep.subr.bf16.mxu0 %v6762_v58 }
 0x63e   : > { %6846 = vpow2.f32 %v5214_v25  ;;  %v5216_v22 = vmul.f32 1.442695, %v5195_v43  ;;  %6528 = vmatprep.mubr.msk.bf16.mxu1 %vm4619_vm1, %v5424_v47  ;;  %6541 = vmatpush3.bf16.msra.mxu0 %v6762_v58 }
 0x63f   : > { %6848 = vpow2.f32 %v5220_v57  ;;  %6529 = vmatmul.mubr.msk.bf16.gmra.mrb[28].mxu1 %vm4619_vm1, %v5425_v8  ;;  %6542 = vmatprep.subr.bf16.mxu0 %v6763_v48 }
 0x640   : > { %6850 = vpow2.f32 %v5216_v22 }
 0x642   : > { %6543 = vmatpush3.bf16.msra.mxu0 %v6763_v48 }
 0x647   : > { %v6845_v36 = vpop.eup %6844 }
 0x648   : > { %v6847_v46 = vpop.eup %6846  ;;  %v5292_v1 = vadd.f32 1.0, %v6845_v36  ;;  %v5295_v45 = vmul.f32 -0.5, %v6845_v36  ;;  %v5298_v38 = vand.u32 2147483647, %v6845_v36 }
 0x649   : > { %v9609_v49 = vpop.eup %6848  ;;  %v5274_v18 = vadd.f32 1.0, %v6847_v46  ;;  %v5277_v0 = vmul.f32 -0.5, %v6847_v46  ;;  %v5280_v62 = vand.u32 2147483647, %v6847_v46 }
 0x64a   : > { %6852 = vlog2.f32 %v5292_v1  ;;  %v5301_v31 = vadd.f32 1.0, %v9609_v49  ;;  %v9612_v52 = vpop.eup %6850  ;;  %v5304_v16 = vmul.f32 -0.5, %v9609_v49  ;;  %v5296_v28 = vadd.f32 1.0, %v5295_v45 }
 0x64b   : > { %v6492_v14 = vpop.f32.mrb[32].mxu0  ;;  %6854 = vlog2.f32 %v5274_v18  ;;  %v5283_v34 = vadd.f32 1.0, %v9612_v52  ;;  %vm9633_vm12 = vcmp.lt.f32.partialorder %v5298_v38, 0.0004427343  ;;  %v5278_v30 = vadd.f32 1.0, %v5277_v0 }
 0x64c   : > { %v9616_v60 = vadd.f32 %v6492_v14, %v9536_v44  ;;  %6856 = vlog2.f32 %v5301_v31  ;;  %v5095_v61 = vpop.f32.mrb[33].mxu0  ;;  %v5305_v39 = vadd.f32 1.0, %v5304_v16  ;;  %v5286_v41 = vmul.f32 -0.5, %v9612_v52 }
 0x64d   : > { %v9620_v7 = vadd.f32 %v9536_v44, %v5095_v61  ;;  %v6493_v17 = vpop.f32.mrb[34].mxu0  ;;  %6858 = vlog2.f32 %v5283_v34  ;;  %v5307_v53 = vand.u32 2147483647, %v9609_v49  ;;  %v5297_v27 = vmul.f32 %v6845_v36, %v5296_v28 }
 0x64e   : > { %v5184_v24 = vand.u32 2147483647, %v9616_v60  ;;  %v9626_v29 = vadd.f32 %v6493_v17, %v9536_v44  ;;  %v5098_v50 = vpop.f32.mrb[35].mxu0  ;;  %v5279_v57 = vmul.f32 %v6847_v46, %v5278_v30  ;;  %vm9654_vm5 = vcmp.lt.f32.partialorder %v5280_v62, 0.0004427343 }
 0x64f   : > { %v5182_v33 = vand.u32 2147483647, %v9620_v7  ;;  %v9631_v9 = vadd.f32 %v9536_v44, %v5098_v50  ;;  %v5306_v36 = vmul.f32 %v9609_v49, %v5305_v39  ;;  %v5287_v18 = vadd.f32 1.0, %v5286_v41 }
 0x650   : > { %v5200_v32 = vsub.f32 0.0, %v5184_v24  ;;  %v5185_v6 = vand.u32 2147483647, %v9626_v29  ;;  %v5419_v3 = vpack.c.bf16 %v9626_v29, %v9616_v60  ;;  %vm5308_vm13 = vcmp.lt.f32.partialorder %v5307_v53, 0.0004427343 }
 0x651   : > { %v5198_v2 = vsub.f32 0.0, %v5182_v33  ;;  %v5183_v21 = vand.u32 2147483647, %v9631_v9  ;;  %v5418_v56 = vpack.c.bf16 %v9631_v9, %v9620_v7  ;;  %v5289_v45 = vand.u32 2147483647, %v9612_v52 }
 0x652   : > { %v5226_v12 = vmul.f32 1.442695, %v5200_v32  ;;  %v5201_v42 = vsub.f32 0.0, %v5185_v6  ;;  %v5427_v63 = vmax.bf16 %v6992_v59, %v5419_v3  ;;  %v5288_v0 = vmul.f32 %v9612_v52, %v5287_v18 }
 0x653   : > { %v5222_v37 = vmul.f32 1.442695, %v5198_v2  ;;  %v5199_v10 = vsub.f32 0.0, %v5183_v21  ;;  %v5426_v35 = vmax.bf16 %v6992_v59, %v5418_v56  ;;  %v5131_v16 = vmax.f32 %v9597_v40, 0.0 }
 0x654   : > { %v6853_v19 = vpop.eup %6852  ;;  %6860 = vpow2.f32 %v5226_v12  ;;  %v5228_v11 = vmul.f32 1.442695, %v5201_v42  ;;  %vm5290_vm9 = vcmp.lt.f32.partialorder %v5289_v45, 0.0004427343  ;;  %v5136_v2 = vmax.f32 %v9616_v60, 0.0 }
 0x655   : > { %v6855_v23 = vpop.eup %6854  ;;  %v5294_v26 = vmul.f32 0.6931472, %v6853_v19  ;;  %6862 = vpow2.f32 %v5222_v37  ;;  %v5224_v25 = vmul.f32 1.442695, %v5199_v10  ;;  %6532 = vmatprep.mubr.msk.bf16.mxu1 %vm4619_vm1, %v5426_v35  ;;  %v5137_v12 = vmax.f32 %v9626_v29, 0.0 }
 0x656   : > { %v6857_v43 = vpop.eup %6856  ;;  %6864 = vpow2.f32 %v5228_v11  ;;  %v5276_v47 = vmul.f32 0.6931472, %v6855_v23  ;;  %6533 = vmatmul.mubr.msk.bf16.gmra.mrb[32].mxu1 %vm4619_vm1, %v5427_v63  ;;  %v5134_v42 = vmax.f32 %v9620_v7, 0.0  ;;  %vm5152_vm7 = vcmp.ne.f32.partialorder %v9616_v60, %v9616_v60 }
 0x657   : > { %v5300_v22 = vsel %vm9633_vm12, %v5297_v27, %v5294_v26  ;;  %v5303_v1 = vmul.f32 0.6931472, %v6857_v43  ;;  %6866 = vpow2.f32 %v5224_v25  ;;  %v6859_v38 = vpop.eup %6858  ;;  %vm5153_vm3 = vcmp.ne.f32.partialorder %v9626_v29, %v9626_v29 }
 0x658   : > { %v5388_v31 = vadd.f32 %v5300_v22, %v5132_v54  ;;  %v5282_v46 = vsel %vm9654_vm5, %v5279_v57, %v5276_v47  ;;  %v5285_v17 = vmul.f32 0.6931472, %v6859_v38  ;;  %vm5150_vm8 = vcmp.ne.f32.partialorder %v9620_v7, %v9620_v7 }
 0x659   : > { %v5309_v14 = vsel %vm5308_vm13, %v5306_v36, %v5303_v1  ;;  %v5386_v54 = vadd.f32 %v5282_v46, %v5130_v5  ;;  %vm5151_vm5 = vcmp.ne.f32.partialorder %v9631_v9, %v9631_v9 }
 0x65a   : > { %v5404_v61 = vsel %vm5148_vm11, %v9586_v15, %v5388_v31  ;;  %v5389_v49 = vadd.f32 %v5309_v14, %v5133_v4  ;;  %v5291_v15 = vsel %vm5290_vm9, %v5288_v0, %v5285_v17 }
 0x65b   : > { %6006 = vrot.lane.b32.xlu0 %v5404_v61, %s6993_s24  ;;  %v5402_v5 = vsel %vm5146_vm2, %v9589_v55, %v5386_v54  ;;  %v5387_v50 = vadd.f32 %v5291_v15, %v5131_v16 }
 0x65c   : > { %v5405_v24 = vsel %vm5149_vm15, %v9593_v51, %v5389_v49 }
 0x65d   : > { %6008 = vrot.lane.b32.xlu1 %v5405_v24, %s6993_s24  ;;  %v5403_v28 = vsel %vm5147_vm10, %v9597_v40, %v5387_v50 }
 0x65e   : > { %v9681_v4 = vpop.eup %6860 }
 0x65f   : > { %v9684_v34 = vpop.eup %6862  ;;  %6002 = vrot.lane.b32.xlu0 %v5402_v5, %s6993_s24  ;;  %v5328_v51 = vadd.f32 1.0, %v9681_v4  ;;  %v5331_v30 = vmul.f32 -0.5, %v9681_v4  ;;  %v5334_v19 = vand.u32 2147483647, %v9681_v4 }
 0x660   : > { %v9690_v52 = vpop.eup %6864  ;;  %v5310_v33 = vadd.f32 1.0, %v9684_v34  ;;  %v5313_v41 = vmul.f32 -0.5, %v9684_v34  ;;  %v5316_v23 = vand.u32 2147483647, %v9684_v34 }
 0x661   : > { %6004 = vrot.lane.b32.xlu1 %v5403_v28, %s6993_s24  ;;  %6868 = vlog2.f32 %v5328_v51  ;;  %v5337_v62 = vadd.f32 1.0, %v9690_v52  ;;  %v9699_v6 = vpop.eup %6866  ;;  %v5340_v37 = vmul.f32 -0.5, %v9690_v52  ;;  %v5332_v58 = vadd.f32 1.0, %v5331_v30 }
 0x662   : > { %v6496_v55 = vpop.f32.mrb[36].mxu0  ;;  %6870 = vlog2.f32 %v5310_v33  ;;  %v5319_v63 = vadd.f32 1.0, %v9699_v6  ;;  %v5314_v57 = vadd.f32 1.0, %v5313_v41  ;;  %v5343_v31 = vand.u32 2147483647, %v9690_v52 }
 0x663   : > { %v9697_v20 = vadd.f32 %v6496_v55, %v9536_v44  ;;  %v5111_v32 = vpop.f32.mrb[37].mxu0  ;;  %6872 = vlog2.f32 %v5337_v62  ;;  %v5341_v43 = vadd.f32 1.0, %v5340_v37  ;;  %v5322_v45 = vmul.f32 -0.5, %v9699_v6 }
 0x664   : > { %v9704_v40 = vadd.f32 %v9536_v44, %v5111_v32  ;;  %v6497_v21 = vpop.f32.mrb[38].mxu0  ;;  %6874 = vlog2.f32 %v5319_v63  ;;  %v5333_v61 = vmul.f32 %v9681_v4, %v5332_v58  ;;  %vm5335_vm14 = vcmp.lt.f32.partialorder %v5334_v19, 0.0004427343 }
 0x665   : > { %v5188_v56 = vand.u32 2147483647, %v9697_v20  ;;  %v9709_v39 = vadd.f32 %v6497_v21, %v9536_v44  ;;  %v5114_v3 = vpop.f32.mrb[39].mxu0  ;;  %v5315_v0 = vmul.f32 %v9684_v34, %v5314_v57  ;;  %v5342_v15 = vmul.f32 %v9690_v52, %v5341_v43 }
 0x666   : > { %v5186_v10 = vand.u32 2147483647, %v9704_v40  ;;  %v9716_v35 = vadd.f32 %v9536_v44, %v5114_v3  ;;  %vm5317_vm4 = vcmp.lt.f32.partialorder %v5316_v23, 0.0004427343  ;;  %vm5344_vm6 = vcmp.lt.f32.partialorder %v5343_v31, 0.0004427343 }
 0x667   : > { %v5204_v53 = vsub.f32 0.0, %v5188_v56  ;;  %v5189_v11 = vand.u32 2147483647, %v9709_v39  ;;  %v5421_v36 = vpack.c.bf16 %v9709_v39, %v9697_v20  ;;  %v5323_v50 = vadd.f32 1.0, %v5322_v45 }
 0x668   : > { %v5202_v48 = vsub.f32 0.0, %v5186_v10  ;;  %v5187_v26 = vand.u32 2147483647, %v9716_v35  ;;  %v5420_v44 = vpack.c.bf16 %v9716_v35, %v9704_v40  ;;  %v5325_v28 = vand.u32 2147483647, %v9699_v6 }
 0x669   : > { %v5234_v27 = vmul.f32 1.442695, %v5204_v53  ;;  %v5205_v25 = vsub.f32 0.0, %v5189_v11  ;;  %v5429_v49 = vmax.bf16 %v6992_v59, %v5421_v36  ;;  %vm5154_vm15 = vcmp.ne.f32.partialorder %v9704_v40, %v9704_v40 }
 0x66a   : > { %v5230_v47 = vmul.f32 1.442695, %v5202_v48  ;;  %v5203_v8 = vsub.f32 0.0, %v5187_v26  ;;  %v5428_v1 = vmax.bf16 %v6992_v59, %v5420_v44  ;;  %vm5326_vm12 = vcmp.lt.f32.partialorder %v5325_v28, 0.0004427343 }
 0x66b   : > { %6876 = vpow2.f32 %v5234_v27  ;;  %v5236_v22 = vmul.f32 1.442695, %v5205_v25  ;;  %v6869_v18 = vpop.eup %6868  ;;  %vm5155_vm10 = vcmp.ne.f32.partialorder %v9716_v35, %v9716_v35 }
 0x66c   : > { %6878 = vpow2.f32 %v5230_v47  ;;  %v5232_v46 = vmul.f32 1.442695, %v5203_v8  ;;  %v6871_v14 = vpop.eup %6870  ;;  %v5330_v38 = vmul.f32 0.6931472, %v6869_v18  ;;  %6536 = vmatprep.mubr.msk.bf16.mxu1 %vm4619_vm1, %v5428_v1  ;;  %v5138_v18 = vmax.f32 %v9704_v40, 0.0 }
 0x66d   : > { %6880 = vpow2.f32 %v5236_v22  ;;  %v6873_v54 = vpop.eup %6872  ;;  %v5312_v17 = vmul.f32 0.6931472, %v6871_v14  ;;  %6537 = vmatmul.mubr.msk.bf16.gmra.mrb[36].mxu1 %vm4619_vm1, %v5429_v49  ;;  %v5140_v14 = vmax.f32 %v9697_v20, 0.0 }
 0x66e   : > { %6882 = vpow2.f32 %v5232_v46  ;;  %v5336_v24 = vsel %vm5335_vm14, %v5333_v61, %v5330_v38  ;;  %v5339_v16 = vmul.f32 0.6931472, %v6873_v54  ;;  %v6875_v62 = vpop.eup %6874  ;;  %vm5156_vm14 = vcmp.ne.f32.partialorder %v9697_v20, %v9697_v20 }
 0x66f   : > { %v5392_v5 = vadd.f32 %v5336_v24, %v5136_v2  ;;  %v5318_v4 = vsel %vm5317_vm4, %v5315_v0, %v5312_v17  ;;  %v5321_v32 = vmul.f32 0.6931472, %v6875_v62  ;;  %v5324_v2 = vmul.f32 %v9699_v6, %v5323_v50 }
 0x670   : > { %v5345_v51 = vsel %vm5344_vm6, %v5342_v15, %v5339_v16  ;;  %v5390_v55 = vadd.f32 %v5318_v4, %v5134_v42  ;;  %v5139_v24 = vmax.f32 %v9716_v35, 0.0  ;;  %vm5157_vm4 = vcmp.ne.f32.partialorder %v9709_v39, %v9709_v39 }
 0x671   : > { %v5408_v34 = vsel %vm5152_vm7, %v9616_v60, %v5392_v5  ;;  %v5393_v33 = vadd.f32 %v5345_v51, %v5137_v12  ;;  %v5135_v60 = vmax.f32 %v9631_v9, 0.0  ;;  %v5327_v12 = vsel %vm5326_vm12, %v5324_v2, %v5321_v32 }
 0x672   : > { %6014 = vrot.lane.b32.xlu0 %v5408_v34, %s6993_s24  ;;  %v5406_v56 = vsel %vm5150_vm8, %v9620_v7, %v5390_v55  ;;  %v5141_v51 = vmax.f32 %v9709_v39, 0.0 }
 0x673   : > { %v5409_v52 = vsel %vm5153_vm3, %v9626_v29, %v5393_v33  ;;  %v5391_v29 = vadd.f32 %v5327_v12, %v5135_v60 }
 0x674   : > { %6016 = vrot.lane.b32.xlu1 %v5409_v52, %s6993_s24 }
 0x675   : > { %v6877_v30 = vpop.eup %6876  ;;  %v5407_v41 = vsel %vm5151_vm5, %v9631_v9, %v5391_v29 }
 0x676   : > { %v6879_v21 = vpop.eup %6878  ;;  %v5364_v42 = vadd.f32 1.0, %v6877_v30  ;;  %6010 = vrot.lane.b32.xlu0 %v5406_v56, %s6993_s24  ;;  %v5367_v53 = vmul.f32 -0.5, %v6877_v30  ;;  %v5370_v26 = vand.u32 2147483647, %v6877_v30 }
 0x677   : > { %v6881_v3 = vpop.eup %6880  ;;  %v5346_v37 = vadd.f32 1.0, %v6879_v21  ;;  %v5349_v7 = vmul.f32 -0.5, %v6879_v21  ;;  %v5352_v23 = vand.u32 2147483647, %v6879_v21 }
 0x678   : > { %v6883_v6 = vpop.eup %6882  ;;  %6884 = vlog2.f32 %v5364_v42  ;;  %v5373_v10 = vadd.f32 1.0, %v6881_v3  ;;  %6012 = vrot.lane.b32.xlu1 %v5407_v41, %s6993_s24  ;;  %v5376_v63 = vmul.f32 -0.5, %v6881_v3  ;;  %v5368_v48 = vadd.f32 1.0, %v5367_v53 }
 0x679   : > { %6886 = vlog2.f32 %v5346_v37  ;;  %v5355_v19 = vadd.f32 1.0, %v6883_v6  ;;  %v5358_v11 = vmul.f32 -0.5, %v6883_v6  ;;  %v5350_v58 = vadd.f32 1.0, %v5349_v7 }
 0x67a   : > { %6888 = vlog2.f32 %v5373_v10  ;;  %v5361_v43 = vand.u32 2147483647, %v6883_v6  ;;  %v5377_v9 = vadd.f32 1.0, %v5376_v63  ;;  %v5369_v22 = vmul.f32 %v6877_v30, %v5368_v48 }
 0x67b   : > { %6890 = vlog2.f32 %v5355_v19  ;;  %v5359_v44 = vadd.f32 1.0, %v5358_v11  ;;  %v5351_v8 = vmul.f32 %v6879_v21, %v5350_v58  ;;  %v5379_v1 = vand.u32 2147483647, %v6881_v3 }
 0x67c   : > { %vm5353_vm13 = vcmp.lt.f32.partialorder %v5352_v23, 0.0004427343  ;;  %vm9756_vm11 = vcmp.lt.f32.partialorder %v5370_v26, 0.0004427343  ;;  %v5378_v0 = vmul.f32 %v6881_v3, %v5377_v9  ;;  %vm5362_vm9 = vcmp.lt.f32.partialorder %v5361_v43, 0.0004427343 }
 0x67d   : > { %v5360_v17 = vmul.f32 %v6883_v6, %v5359_v44  ;;  %vm5380_vm2 = vcmp.lt.f32.partialorder %v5379_v1, 0.0004427343 }
 0x682   : > { %v6885_v27 = vpop.eup %6884 }
 0x683   : > { %v6887_v25 = vpop.eup %6886  ;;  %v5366_v47 = vmul.f32 0.6931472, %v6885_v27 }
 0x684   : > { %v5348_v57 = vmul.f32 0.6931472, %v6887_v25  ;;  %v6889_v36 = vpop.eup %6888 }
 0x685   : > { %v6891_v46 = vpop.eup %6890  ;;  %v5372_v38 = vsel %vm9756_vm11, %v5369_v22, %v5366_v47  ;;  %v5375_v61 = vmul.f32 0.6931472, %v6889_v36 }
 0x686   : > { %v5354_v45 = vsel %vm5353_vm13, %v5351_v8, %v5348_v57  ;;  %v5357_v54 = vmul.f32 0.6931472, %v6891_v46  ;;  %v5396_v5 = vadd.f32 %v5372_v38, %v5140_v14  ;;  %v9804_v46 = vld [vmem:[%s9909_s13] ss:$0 sm:$0xff] }
 0x687   : > { %v5394_v49 = vadd.f32 %v5354_v45, %v5138_v18  ;;  %v5381_v4 = vsel %vm5380_vm2, %v5378_v0, %v5375_v61 }
 0x688   : > { %v5363_v15 = vsel %vm5362_vm9, %v5360_v17, %v5357_v54  ;;  %v5397_v34 = vadd.f32 %v5381_v4, %v5141_v51 }
 0x689   : > { %v5410_v16 = vsel %vm5154_vm15, %v9704_v40, %v5394_v49  ;;  %v5395_v50 = vadd.f32 %v5363_v15, %v5139_v24  ;;  %v5412_v40 = vsel %vm5156_vm14, %v9697_v20, %v5396_v5 }
 0x68a   : > { %6018 = vrot.lane.b32.xlu0 %v5410_v16, %s6993_s24  ;;  %v5413_v33 = vsel %vm5157_vm4, %v9709_v39, %v5397_v34 }
 0x68b   : > { %v5411_v28 = vsel %vm5155_vm10, %v9716_v35, %v5395_v50  ;;  %v5698_v35 = vld [vmem:[%s9907_s11] sm:$0x1] }
 0x68c   : > { %6020 = vrot.lane.b32.xlu1 %v5411_v28, %s6993_s24  ;;  %v5700_v55 = vpack.i.b16 %v5698_v35, %v5698_v35  ;;  %v5999_v35 = vpop.permute.xlu0 %5998 }
 0x68e   : > { %6022 = vrot.lane.b32.xlu0 %v5412_v40, %s6993_s24  ;;  %v5705_v32 = vrot.slane %v5700_v55, %v9401_v13  ;;  %v6001_v55 = vpop.permute.xlu1 %6000 }
 0x690   : > { %6024 = vrot.lane.b32.xlu1 %v5413_v33, %s6993_s24 }
 0x6c4   : > { %v6526_v62 = vpop.f32.mrb[24].mxu1 }
 0x6c5   : > { %v5627_v52 = vpop.f32.mrb[25].mxu1 }
 0x6c6   : > { %v6527_v2 = vpop.f32.mrb[26].mxu1 }
 0x6c7   : > { %v5691_v20 = vpack.c.bf16 %v6527_v2, %v6526_v62  ;;  %v5630_v30 = vpop.f32.mrb[27].mxu1  ;;  %v5995_v2 = vpop.permute.xlu0 %5994 }
 0x6c8   : > { %v5690_v60 = vpack.c.bf16 %v5630_v30, %v5627_v52  ;;  %v5997_v30 = vpop.permute.xlu1 %5996 }
 0x6c9   : > { %v5707_v21 = vadd.bf16 %v5705_v32, %v5691_v20 }
 0x6ca   : > { %v5706_v56 = vadd.bf16 %v5705_v32, %v5690_v60 }
 0x6cb   : > { %v5715_v39 = vmax.bf16 %v6992_v59, %v5707_v21 }
 0x6cc   : > { %v5714_v12 = vmax.bf16 %v6992_v59, %v5706_v56 }
 0x6ce   : > { %6544 = vmatprep.mubr.msk.bf16.mxu0 %vm4619_vm1, %v5714_v12 }
 0x6cf   : > { %6545 = vmatmul.mubr.msk.bf16.vlgmr.msra.gmra.mrb[40].mxu0 %vm4619_vm1, %v5715_v39 }
 0x712   : > { %v6530_v42 = vpop.f32.mrb[28].mxu1 }
 0x713   : > { %v5643_v3 = vpop.f32.mrb[29].mxu1 }
 0x714   : > { %v6531_v29 = vpop.f32.mrb[30].mxu1 }
 0x715   : > { %v5693_v37 = vpack.c.bf16 %v6531_v29, %v6530_v42  ;;  %v5646_v6 = vpop.f32.mrb[31].mxu1 }
 0x716   : > { %v5692_v13 = vpack.c.bf16 %v5646_v6, %v5643_v3 }
 0x717   : > { %v5709_v10 = vadd.bf16 %v5705_v32, %v5693_v37 }
 0x718   : > { %v5708_v41 = vadd.bf16 %v5705_v32, %v5692_v13 }
 0x719   : > { %v5717_v7 = vmax.bf16 %v6992_v59, %v5709_v10 }
 0x71a   : > { %v5716_v19 = vmax.bf16 %v6992_v59, %v5708_v41 }
 0x71c   : > { %6548 = vmatprep.mubr.msk.bf16.mxu0 %vm4619_vm1, %v5716_v19 }
 0x71d   : > { %6549 = vmatmul.mubr.msk.bf16.gmra.mrb[44].mxu0 %vm4619_vm1, %v5717_v7 }
 0x729   : > { %v6534_v53 = vpop.f32.mrb[32].mxu1 }
 0x72a   : > { %v5659_v11 = vpop.f32.mrb[33].mxu1 }
 0x72b   : > { %v6535_v63 = vpop.f32.mrb[34].mxu1 }
 0x72c   : > { %v5695_v58 = vpack.c.bf16 %v6535_v63, %v6534_v53  ;;  %v5662_v48 = vpop.f32.mrb[35].mxu1 }
 0x72d   : > { %v5694_v23 = vpack.c.bf16 %v5662_v48, %v5659_v11 }
 0x72e   : > { %v5711_v26 = vadd.bf16 %v5705_v32, %v5695_v58 }
 0x72f   : > { %v5710_v27 = vadd.bf16 %v5705_v32, %v5694_v23 }
 0x730   : > { %v5719_v44 = vmax.bf16 %v6992_v59, %v5711_v26  ;;  %v6007_v26 = vpop.permute.xlu0 %6006 }
 0x731   : > { %v5718_v25 = vmax.bf16 %v6992_v59, %v5710_v27 }
 0x733   : > { %6552 = vmatprep.mubr.msk.bf16.mxu0 %vm4619_vm1, %v5718_v25 }
 0x734   : > { %6553 = vmatmul.mubr.msk.bf16.gmra.mrb[48].mxu0 %vm4619_vm1, %v5719_v44 }
 0x740   : > { %v6538_v43 = vpop.f32.mrb[36].mxu1 }
 0x741   : > { %v5675_v47 = vpop.f32.mrb[37].mxu1 }
 0x742   : > { %v6539_v9 = vpop.f32.mrb[38].mxu1 }
 0x743   : > { %v5697_v57 = vpack.c.bf16 %v6539_v9, %v6538_v43  ;;  %v5678_v8 = vpop.f32.mrb[39].mxu1 }
 0x744   : > { %v5696_v22 = vpack.c.bf16 %v5678_v8, %v5675_v47  ;;  %v6009_v47 = vpop.permute.xlu1 %6008 }
 0x745   : > { %v5713_v1 = vadd.bf16 %v5705_v32, %v5697_v57 }
 0x746   : > { %v5712_v36 = vadd.bf16 %v5705_v32, %v5696_v22 }
 0x747   : > { %v5721_v31 = vmax.bf16 %v6992_v59, %v5713_v1 }
 0x748   : > { %v5720_v18 = vmax.bf16 %v6992_v59, %v5712_v36 }
 0x74a   : > { %6556 = vmatprep.mubr.msk.bf16.mxu0 %vm4619_vm1, %v5720_v18 }
 0x74b   : > { %6557 = vmatmul.mubr.msk.bf16.gmra.mrb[52].mxu0 %vm4619_vm1, %v5721_v31  ;;  %vm6042_vm1 = vcmask 31768  }
 0x7a2   : > { %v6546_v45 = vpop.f32.mrb[40].mxu0 }
 0x7a3   : > { %v5812_v14 = vadd.f32 %v6546_v45, %v9804_v46  ;;  %v5803_v38 = vpop.f32.mrb[41].mxu0 }
 0x7a4   : > { %v5804_v61 = vadd.f32 %v9804_v46, %v5803_v38  ;;  %v6547_v49 = vpop.f32.mrb[42].mxu0  ;;  %v6003_v38 = vpop.permute.xlu0 %6002 }
 0x7a5   : > { %v6328_v54 = vmul.f32 -1.442695, %v5812_v14  ;;  %v5815_v17 = vadd.f32 %v6547_v49, %v9804_v46  ;;  %v5806_v59 = vpop.f32.mrb[43].mxu0  ;;  %v6005_v49 = vpop.permute.xlu1 %6004 }
 0x7a6   : > { %v6326_v0 = vmul.f32 -1.442695, %v5804_v61  ;;  %v5807_v24 = vadd.f32 %v9804_v46, %v5806_v59 }
 0x7a7   : > { %6892 = vpow2.f32 %v6328_v54  ;;  %v6329_v16 = vmul.f32 -1.442695, %v5815_v17 }
 0x7a8   : > { %6894 = vpow2.f32 %v6326_v0  ;;  %v6327_v15 = vmul.f32 -1.442695, %v5807_v24 }
 0x7a9   : > { %6896 = vpow2.f32 %v6329_v16 }
 0x7aa   : > { %6898 = vpow2.f32 %v6327_v15 }
 0x7b1   : > { %v6893_v5 = vpop.eup %6892 }
 0x7b2   : > { %v6895_v4 = vpop.eup %6894  ;;  %v5916_v50 = vadd.f32 1.0, %v6893_v5 }
 0x7b3   : > { %v6897_v51 = vpop.eup %6896  ;;  %v5914_v28 = vadd.f32 1.0, %v6895_v4  ;;  %v6015_v4 = vpop.permute.xlu0 %6014 }
 0x7b4   : > { %v6899_v34 = vpop.eup %6898  ;;  %6900 = vrcp.f32 %v5916_v50  ;;  %v5917_v40 = vadd.f32 1.0, %v6897_v51 }
 0x7b5   : > { %6902 = vrcp.f32 %v5914_v28  ;;  %v5915_v33 = vadd.f32 1.0, %v6899_v34  ;;  %v6017_v34 = vpop.permute.xlu1 %6016 }
 0x7b6   : > { %6904 = vrcp.f32 %v5917_v40 }
 0x7b7   : > { %6906 = vrcp.f32 %v5915_v33 }
 0x7be   : > { %v6901_v62 = vpop.eup %6900 }
 0x7bf   : > { %v6903_v52 = vpop.eup %6902  ;;  %5964 = vst.msk [vmem:[%s9815_s22 + $0x10] sm:$0xff] %vm856_vm0, %v6901_v62 }
 0x7c0   : > { %v6905_v32 = vpop.eup %6904  ;;  %6045 = vst.msk [vmem:[%s9815_s22 + $0x10] sm:$0xff] %vm6042_vm1, %v5999_v35 }
 0x7c1   : > { %5962 = vst.msk [vmem:[%s9815_s22] sm:$0xff] %vm856_vm0, %v6903_v52  ;;  %v6907_v20 = vpop.eup %6906  ;;  %5965 = vst.msk [vmem:[%s9815_s22 + $0x18] sm:$0xff] %vm856_vm0, %v6905_v32 }
 0x7c2   : > { %6043 = vst.msk [vmem:[%s9815_s22] sm:$0xff] %vm6042_vm1, %v5995_v2  ;;  %6046 = vst.msk [vmem:[%s9815_s22 + $0x18] sm:$0xff] %vm6042_vm1, %v6001_v55 }
 0x7c3   : > { %5963 = vst.msk [vmem:[%s9815_s22 + $0x8] sm:$0xff] %vm856_vm0, %v6907_v20 }
 0x7c4   : > { %6044 = vst.msk [vmem:[%s9815_s22 + $0x8] sm:$0xff] %vm6042_vm1, %v5997_v30 }
 0x7f0   : > { %v6550_v60 = vpop.f32.mrb[44].mxu0 }
 0x7f1   : > { %v5828_v21 = vadd.f32 %v6550_v60, %v9804_v46  ;;  %v5819_v56 = vpop.f32.mrb[45].mxu0 }
 0x7f2   : > { %v5820_v12 = vadd.f32 %v9804_v46, %v5819_v56  ;;  %v6551_v39 = vpop.f32.mrb[46].mxu0 }
 0x7f3   : > { %v6332_v42 = vmul.f32 -1.442695, %v5828_v21  ;;  %v5831_v3 = vadd.f32 %v6551_v39, %v9804_v46  ;;  %v5822_v29 = vpop.f32.mrb[47].mxu0  ;;  %v6011_v21 = vpop.permute.xlu0 %6010 }
 0x7f4   : > { %v6330_v37 = vmul.f32 -1.442695, %v5820_v12  ;;  %v5823_v6 = vadd.f32 %v9804_v46, %v5822_v29 }
 0x7f5   : > { %6908 = vpow2.f32 %v6332_v42  ;;  %v6333_v13 = vmul.f32 -1.442695, %v5831_v3 }
 0x7f6   : > { %6910 = vpow2.f32 %v6330_v37  ;;  %v6331_v10 = vmul.f32 -1.442695, %v5823_v6 }
 0x7f7   : > { %6912 = vpow2.f32 %v6333_v13 }
 0x7f8   : > { %6914 = vpow2.f32 %v6331_v10 }
 0x7ff   : > { %v6909_v41 = vpop.eup %6908 }
 0x800   : > { %v6911_v19 = vpop.eup %6910  ;;  %v5920_v7 = vadd.f32 1.0, %v6909_v41  ;;  %v6019_v41 = vpop.permute.xlu0 %6018 }
 0x801   : > { %v6913_v53 = vpop.eup %6912  ;;  %v5918_v11 = vadd.f32 1.0, %v6911_v19 }
 0x802   : > { %v6915_v63 = vpop.eup %6914  ;;  %6916 = vrcp.f32 %v5920_v7  ;;  %v5921_v58 = vadd.f32 1.0, %v6913_v53 }
 0x803   : > { %6918 = vrcp.f32 %v5918_v11  ;;  %v5919_v48 = vadd.f32 1.0, %v6915_v63 }
 0x804   : > { %6920 = vrcp.f32 %v5921_v58  ;;  %v6023_v11 = vpop.permute.xlu0 %6022 }
 0x805   : > { %6922 = vrcp.f32 %v5919_v48 }
 0x807   : > { %v6554_v23 = vpop.f32.mrb[48].mxu0 }
 0x808   : > { %v5844_v27 = vadd.f32 %v6554_v23, %v9804_v46  ;;  %v5835_v25 = vpop.f32.mrb[49].mxu0 }
 0x809   : > { %v5836_v44 = vadd.f32 %v9804_v46, %v5835_v25  ;;  %v6555_v43 = vpop.f32.mrb[50].mxu0 }
 0x80a   : > { %v6336_v9 = vmul.f32 -1.442695, %v5844_v27  ;;  %v5847_v57 = vadd.f32 %v6555_v43, %v9804_v46  ;;  %v5838_v8 = vpop.f32.mrb[51].mxu0 }
 0x80b   : > { %v6334_v22 = vmul.f32 -1.442695, %v5836_v44  ;;  %v5839_v1 = vadd.f32 %v9804_v46, %v5838_v8 }
 0x80c   : > { %v6917_v36 = vpop.eup %6916  ;;  %6924 = vpow2.f32 %v6336_v9  ;;  %v6337_v18 = vmul.f32 -1.442695, %v5847_v57 }
 0x80d   : > { %v6919_v31 = vpop.eup %6918  ;;  %5968 = vst.msk [vmem:[%s9815_s22 + $0x30] sm:$0xff] %vm856_vm0, %v6917_v36  ;;  %6926 = vpow2.f32 %v6334_v22  ;;  %v6335_v45 = vmul.f32 -1.442695, %v5839_v1 }
 0x80e   : > { %v6921_v14 = vpop.eup %6920  ;;  %6049 = vst.msk [vmem:[%s9815_s22 + $0x30] sm:$0xff] %vm6042_vm1, %v6007_v26  ;;  %6928 = vpow2.f32 %v6337_v18 }
 0x80f   : > { %5966 = vst.msk [vmem:[%s9815_s22 + $0x20] sm:$0xff] %vm856_vm0, %v6919_v31  ;;  %v6923_v61 = vpop.eup %6922  ;;  %5969 = vst.msk [vmem:[%s9815_s22 + $0x38] sm:$0xff] %vm856_vm0, %v6921_v14  ;;  %6930 = vpow2.f32 %v6335_v45 }
 0x810   : > { %6047 = vst.msk [vmem:[%s9815_s22 + $0x20] sm:$0xff] %vm6042_vm1, %v6003_v38  ;;  %6050 = vst.msk [vmem:[%s9815_s22 + $0x38] sm:$0xff] %vm6042_vm1, %v6009_v47 }
 0x811   : > { %5967 = vst.msk [vmem:[%s9815_s22 + $0x28] sm:$0xff] %vm856_vm0, %v6923_v61 }
 0x812   : > { %6048 = vst.msk [vmem:[%s9815_s22 + $0x28] sm:$0xff] %vm6042_vm1, %v6005_v49 }
 0x816   : > { %v6925_v54 = vpop.eup %6924 }
 0x817   : > { %v6927_v17 = vpop.eup %6926  ;;  %v5924_v59 = vadd.f32 1.0, %v6925_v54 }
 0x818   : > { %v6929_v0 = vpop.eup %6928  ;;  %v5922_v24 = vadd.f32 1.0, %v6927_v17 }
 0x819   : > { %v6931_v16 = vpop.eup %6930  ;;  %6932 = vrcp.f32 %v5924_v59  ;;  %v5925_v15 = vadd.f32 1.0, %v6929_v0 }
 0x81a   : > { %6934 = vrcp.f32 %v5922_v24  ;;  %v5923_v5 = vadd.f32 1.0, %v6931_v16 }
 0x81b   : > { %6936 = vrcp.f32 %v5925_v15 }
 0x81c   : > { %6938 = vrcp.f32 %v5923_v5 }
 0x81e   : > { %v6558_v50 = vpop.f32.mrb[52].mxu0 }
 0x81f   : > { %v5860_v51 = vadd.f32 %v6558_v50, %v9804_v46  ;;  %v5851_v28 = vpop.f32.mrb[53].mxu0 }
 0x820   : > { %v5852_v40 = vadd.f32 %v9804_v46, %v5851_v28  ;;  %v6559_v33 = vpop.f32.mrb[54].mxu0 }
 0x821   : > { %v6340_v35 = vmul.f32 -1.442695, %v5860_v51  ;;  %v5863_v55 = vadd.f32 %v6559_v33, %v9804_v46  ;;  %v5854_v62 = vpop.f32.mrb[55].mxu0 }
 0x822   : > { %v6338_v32 = vmul.f32 -1.442695, %v5852_v40  ;;  %v5855_v2 = vadd.f32 %v9804_v46, %v5854_v62  ;;  %v6013_v46 = vpop.permute.xlu1 %6012 }
 0x823   : > { %v6933_v52 = vpop.eup %6932  ;;  %6940 = vpow2.f32 %v6340_v35  ;;  %v6341_v30 = vmul.f32 -1.442695, %v5863_v55 }
 0x824   : > { %v6935_v20 = vpop.eup %6934  ;;  %5972 = vst.msk [vmem:[%s9815_s22 + $0x50] sm:$0xff] %vm856_vm0, %v6933_v52  ;;  %6942 = vpow2.f32 %v6338_v32  ;;  %v6339_v56 = vmul.f32 -1.442695, %v5855_v2 }
 0x825   : > { %v6937_v60 = vpop.eup %6936  ;;  %6053 = vst.msk [vmem:[%s9815_s22 + $0x50] sm:$0xff] %vm6042_vm1, %v6015_v4  ;;  %6944 = vpow2.f32 %v6341_v30 }
 0x826   : > { %5970 = vst.msk [vmem:[%s9815_s22 + $0x40] sm:$0xff] %vm856_vm0, %v6935_v20  ;;  %v6939_v12 = vpop.eup %6938  ;;  %5973 = vst.msk [vmem:[%s9815_s22 + $0x58] sm:$0xff] %vm856_vm0, %v6937_v60  ;;  %6946 = vpow2.f32 %v6339_v56  ;;  %v6021_v19 = vpop.permute.xlu1 %6020 }
 0x827   : > { %6051 = vst.msk [vmem:[%s9815_s22 + $0x40] sm:$0xff] %vm6042_vm1, %v6011_v21  ;;  %6054 = vst.msk [vmem:[%s9815_s22 + $0x58] sm:$0xff] %vm6042_vm1, %v6017_v34 }
 0x828   : > { %5971 = vst.msk [vmem:[%s9815_s22 + $0x48] sm:$0xff] %vm856_vm0, %v6939_v12 }
 0x829   : > { %6052 = vst.msk [vmem:[%s9815_s22 + $0x48] sm:$0xff] %vm6042_vm1, %v6013_v46 }
 0x82a   : > { %v6025_v48 = vpop.permute.xlu1 %6024 }
 0x82d   : > { %v6941_v39 = vpop.eup %6940 }
 0x82e   : > { %v6943_v42 = vpop.eup %6942  ;;  %v5928_v3 = vadd.f32 1.0, %v6941_v39 }
 0x82f   : > { %v6945_v29 = vpop.eup %6944  ;;  %v5926_v37 = vadd.f32 1.0, %v6943_v42 }
 0x830   : > { %v6947_v6 = vpop.eup %6946  ;;  %6948 = vrcp.f32 %v5928_v3  ;;  %v5929_v13 = vadd.f32 1.0, %v6945_v29 }
 0x831   : > { %6950 = vrcp.f32 %v5926_v37  ;;  %v5927_v10 = vadd.f32 1.0, %v6947_v6 }
 0x832   : > { %6952 = vrcp.f32 %v5929_v13 }
 0x833   : > { %6954 = vrcp.f32 %v5927_v10 }
 0x83a   : > { %v6949_v7 = vpop.eup %6948 }
 0x83b   : > { %v6951_v53 = vpop.eup %6950  ;;  %5976 = vst.msk [vmem:[%s9815_s22 + $0x70] sm:$0xff] %vm856_vm0, %v6949_v7 }
 0x83c   : > { %v6953_v63 = vpop.eup %6952  ;;  %6057 = vst.msk [vmem:[%s9815_s22 + $0x70] sm:$0xff] %vm6042_vm1, %v6023_v11 }
 0x83d   : > { %5974 = vst.msk [vmem:[%s9815_s22 + $0x60] sm:$0xff] %vm856_vm0, %v6951_v53  ;;  %v6955_v58 = vpop.eup %6954  ;;  %5977 = vst.msk [vmem:[%s9815_s22 + $0x78] sm:$0xff] %vm856_vm0, %v6953_v63 }
 0x83e   : > { %6055 = vst.msk [vmem:[%s9815_s22 + $0x60] sm:$0xff] %vm6042_vm1, %v6019_v41  ;;  %6058 = vst.msk [vmem:[%s9815_s22 + $0x78] sm:$0xff] %vm6042_vm1, %v6025_v48 }
 0x83f   : > { %5975 = vst.msk [vmem:[%s9815_s22 + $0x68] sm:$0xff] %vm856_vm0, %v6955_v58 }
 0x840   : > { %6056 = vst.msk [vmem:[%s9815_s22 + $0x68] sm:$0xff] %vm6042_vm1, %v6021_v19 }
 0x841 PF: > { %s24_s29 = sadd.s32 1, %s6978_s29  }
 0x842   : > { %p21_p4 = scmp.ge.s32.totalorder %s24_s29, 4  }
 0x844   :  { %23 = sbr.rel (!%p21_p4) target bundleno = 1 (0x1), region = 106 }

</bundles_post_ra>
